<compile_context>
chip_gen: v7x
topology: tpu7x:2x2x1
jax: 0.10.0
libtpu: 0.0.40
codegen_flags: <defaults>
</compile_context>

<pallas_src>
import functools

import numpy as np

import jax
import jax.numpy as jnp
from jax.experimental import pallas as pl
from jax.experimental.pallas import tpu as pltpu


def _round_up(n, m):
    return ((n + m - 1) // m) * m


# ---------------------------------------------------------------------------
# Fused kernel: conv(as matmul)+ReLU -> fc1+ReLU -> [dropout: identity]
#               -> fc2 (class-dim padded to 128) -> softmax
# One batch tile of `tile_b` rows per grid step; weights stay VMEM-resident.
# ---------------------------------------------------------------------------
def _fused_forward_kernel(x_ref, wc_ref, bc_ref, w1_ref, b1_ref,
                          w2_ref, b2_ref, o_ref):
    # x_ref : (TB, C_in*H*W)         activations (bf16 or f32, lane-dense)
    # wc_ref: (C_in*H*W, C_out*H*W)  folded 3x3 "same" conv weights
    # bc_ref: (1, C_out*H*W)         conv bias broadcast over spatial (f32)
    # w1_ref: (C_out*H*W, 512)       fc1 weights
    # b1_ref: (1, 512)               fc1 bias (f32)
    # w2_ref: (512, 128)             fc2 weights, zero-padded classes
    # b2_ref: (1, 128)               fc2 bias, -1e30 on padded classes (f32)
    # o_ref : (TB, 128)              softmax probabilities (padded classes = 0)
    x = x_ref[...]

    # Conv2d(3x3, pad=1) folded into one MXU matmul + bias + ReLU.
    a = jnp.dot(x.astype(wc_ref.dtype), wc_ref[...],
                preferred_element_type=jnp.float32) + bc_ref[...]
    a = jnp.maximum(a, 0.0)                 # (TB, C_out*H*W), PyTorch flatten order

    # fc1 + ReLU
    h = jnp.dot(a.astype(w1_ref.dtype), w1_ref[...],
                preferred_element_type=jnp.float32) + b1_ref[...]
    h = jnp.maximum(h, 0.0)                 # (TB, 512)

    # TODO(synk): nn.Dropout is identity at inference; training-mode stochastic
    # masking is intentionally not implemented here.

    # fc2 into the padded 128-wide class dim (padded logits get -1e30 bias,
    # added in f32, so exp() underflows to exactly 0).
    logits = jnp.dot(h.astype(w2_ref.dtype), w2_ref[...],
                     preferred_element_type=jnp.float32) + b2_ref[...]

    # Numerically stable softmax with EXACT normalization (the approx EUP
    # reciprocal was not accurate enough for row sums == 1 at tight tolerance).
    m = jnp.max(logits, axis=-1, keepdims=True)
    e = jnp.exp(logits - m)
    denom = jnp.sum(e, axis=-1, keepdims=True)
    o_ref[...] = (e / denom).astype(o_ref.dtype)


# ---------------------------------------------------------------------------
# One-time weight preparation (hoisted OUT of the per-call forward):
#   * fold the 3x3 "same" conv into a dense (C_in*H*W, C_out*H*W) matrix
#   * pad the class dim to 128 lanes
#   * cast matmul operands to `matmul_dtype` (bf16 by default)
# ---------------------------------------------------------------------------
def prepare_params(params, image_height, image_width, *,
                   matmul_dtype=jnp.bfloat16):
    H, W = int(image_height), int(image_width)
    HW = H * W
    conv_w = np.asarray(params["conv_w"], np.float32)   # (C_out, C_in, 3, 3)
    conv_b = np.asarray(params["conv_b"], np.float32)   # (C_out,)
    fc1_w = np.asarray(params["fc1_w"], np.float32)     # (C_out*H*W, hidden)
    fc1_b = np.asarray(params["fc1_b"], np.float32)     # (hidden,)
    fc2_w = np.asarray(params["fc2_w"], np.float32)     # (hidden, num_classes)
    fc2_b = np.asarray(params["fc2_b"], np.float32)     # (num_classes,)

    C_out, C_in = conv_w.shape[0], conv_w.shape[1]
    hidden = fc1_w.shape[1]
    num_classes = fc2_w.shape[1]
    f_in, f_mid = C_in * HW, C_out * HW
    n_pad = _round_up(num_classes, 128)

    w_item = jnp.dtype(matmul_dtype).itemsize
    wc_bytes = f_in * f_mid * w_item
    # TODO(synk): for larger images the folded conv matrix grows as (H*W)^2;
    # beyond ~48 MiB it needs a K/N-tiled grid axis with an accumulator (or an
    # unfused conv path) to fit v7x's 64 MiB VMEM.
    if wc_bytes > 48 * 1024 * 1024:
        raise ValueError(
            f"folded conv matrix is {wc_bytes/2**20:.1f} MiB; tile it over a "
            "second grid axis before scaling the image size this far.")

    # 0/1 selection tensors encoding the 3x3 "same"-padding shifts.
    sh = np.zeros((3, H, H), np.float32)
    sw = np.zeros((3, W, W), np.float32)
    for k in range(3):
        for a in range(H):
            s = a + k - 1
            if 0 <= s < H:
                sh[k, a, s] = 1.0
        for a in range(W):
            s = a + k - 1
            if 0 <= s < W:
                sw[k, a, s] = 1.0

    # Row order = ci*HW + hi*W + wi  (matches x.reshape(B,-1) on NCHW input)
    # Col order = co*HW + ho*W + wo  (matches PyTorch's .view(B,-1) flatten)
    wc = np.einsum("oikl,kah,lbw->ihwoab", conv_w, sh, sw).reshape(f_in, f_mid)
    bc = np.repeat(conv_b, HW).reshape(1, f_mid)

    # Pad the class dim to 128: zero weight columns, -1e30 bias -> exp() == 0.
    w2p = np.zeros((hidden, n_pad), np.float32)
    w2p[:, :num_classes] = fc2_w
    b2p = np.full((1, n_pad), -1e30, np.float32)
    b2p[0, :num_classes] = fc2_b.reshape(-1)

    prepared = {
        "wc": jnp.asarray(wc, matmul_dtype),
        "bc": jnp.asarray(bc, jnp.float32),
        "w1": jnp.asarray(fc1_w, matmul_dtype),
        "b1": jnp.asarray(fc1_b.reshape(1, hidden), jnp.float32),
        "w2": jnp.asarray(w2p, matmul_dtype),
        "b2": jnp.asarray(b2p, jnp.float32),
    }
    return prepared, num_classes


# ---------------------------------------------------------------------------
# Forward wrapper: batch tiling + pallas_call (no per-call weight work).
# ---------------------------------------------------------------------------
def conv_classifier_forward(x, prepared, *, num_classes, tile_b=None):
    B = x.shape[0]
    wc, bc = prepared["wc"], prepared["bc"]
    w1, b1 = prepared["w1"], prepared["b1"]
    w2, b2 = prepared["w2"], prepared["b2"]
    f_in, f_mid = wc.shape
    hidden = w1.shape[1]
    n_pad = w2.shape[1]
    matmul_dtype = wc.dtype
    assert x.shape[1] * x.shape[2] * x.shape[3] == f_in

    # Batch tile: large enough to amortize per-step overhead, but capped at
    # ceil(B/2) so v7x's two TensorCores both get grid steps; always a
    # multiple of 8 sublanes.
    if tile_b is None:
        tile_b = max(8, min(512, _round_up(pl.cdiv(B, 2), 8)))
    else:
        tile_b = max(8, _round_up(int(tile_b), 8))
    b_pad = _round_up(B, tile_b)

    # Lane-dense activations in the matmul dtype (halves x DMA for bf16).
    x_flat = x.reshape(B, f_in).astype(matmul_dtype)
    if b_pad != B:
        x_flat = jnp.pad(x_flat, ((0, b_pad - B), (0, 0)))

    w_item = jnp.dtype(matmul_dtype).itemsize
    weight_elems = f_in * f_mid + f_mid * hidden + hidden * n_pad
    flops = 2 * b_pad * (f_in * f_mid + f_mid * hidden + hidden * n_pad)
    transcendentals = b_pad * n_pad
    bytes_accessed = (b_pad * f_in * w_item + b_pad * n_pad * 4 +
                      weight_elems * w_item + (f_mid + hidden + n_pad) * 4)

    # Rough VMEM need (worst case: weights still double-buffered) -> scoped limit.
    vmem_need = (2 * weight_elems * w_item
                 + 2 * tile_b * (f_in * w_item + n_pad * 4)
                 + 4 * tile_b * (f_mid + hidden + n_pad))
    vmem_limit = int(min(64 * 1024 * 1024,
                         max(32 * 1024 * 1024, int(vmem_need * 1.25))))

    def _resident_spec(shape):
        # Grid-invariant operand: single pipeline buffer saves VMEM; fall back
        # gracefully if this JAX version doesn't accept pipeline_mode.
        idx = lambda i: (0, 0)
        try:
            return pl.BlockSpec(shape, idx, pipeline_mode=pl.Buffered(1))
        except (TypeError, AttributeError):
            return pl.BlockSpec(shape, idx)

    grid = (b_pad // tile_b,)
    out = pl.pallas_call(
        _fused_forward_kernel,
        out_shape=jax.ShapeDtypeStruct((b_pad, n_pad), jnp.float32),
        grid=grid,
        in_specs=[
            pl.BlockSpec((tile_b, f_in), lambda i: (i, 0)),   # x (batch-tiled)
            _resident_spec((f_in, f_mid)),                    # folded conv W
            _resident_spec((1, f_mid)),                       # conv bias
            _resident_spec((f_mid, hidden)),                  # fc1 W
            _resident_spec((1, hidden)),                      # fc1 b
            _resident_spec((hidden, n_pad)),                  # fc2 W (padded)
            _resident_spec((1, n_pad)),                       # fc2 b (padded)
        ],
        out_specs=pl.BlockSpec((tile_b, n_pad), lambda i: (i, 0)),
        compiler_params=pltpu.CompilerParams(
            dimension_semantics=("parallel",),
            vmem_limit_bytes=vmem_limit),
        cost_estimate=pl.CostEstimate(
            flops=flops, transcendentals=transcendentals,
            bytes_accessed=bytes_accessed),
    )(x_flat, wc, bc, w1, b1, w2, b2)

    return out[:B, :num_classes]


# ---------------------------------------------------------------------------
# Parameter init + pure-JAX reference (for validation)
# ---------------------------------------------------------------------------
def init_params(key, image_height, image_width, in_channels,
                out_channels=4, num_classes=6):
    ks = jax.random.split(key, 6)
    feat = image_height * image_width * out_channels
    return {
        "conv_w": 0.1 * jax.random.normal(
            ks[0], (out_channels, in_channels, 3, 3), jnp.float32),
        "conv_b": 0.1 * jax.random.normal(ks[1], (out_channels,), jnp.float32),
        "fc1_w": 0.02 * jax.random.normal(ks[2], (feat, 512), jnp.float32),
        "fc1_b": 0.02 * jax.random.normal(ks[3], (512,), jnp.float32),
        "fc2_w": 0.05 * jax.random.normal(ks[4], (512, num_classes), jnp.float32),
        "fc2_b": 0.05 * jax.random.normal(ks[5], (num_classes,), jnp.float32),
    }


def reference_forward(x, params):
    y = jax.lax.conv_general_dilated(
        x, params["conv_w"], window_strides=(1, 1), padding=((1, 1), (1, 1)),
        dimension_numbers=("NCHW", "OIHW", "NCHW"))
    y = jnp.maximum(y + params["conv_b"][None, :, None, None], 0.0)
    f = y.reshape(y.shape[0], -1)
    h = jnp.maximum(f @ params["fc1_w"] + params["fc1_b"], 0.0)
    logits = h @ params["fc2_w"] + params["fc2_b"]
    return jax.nn.softmax(logits, axis=1)


if __name__ == "__main__":
    B, C_in, H, W = 2, 4, 16, 16
    num_classes = 6
    key = jax.random.PRNGKey(0)
    kx, kp = jax.random.split(key)
    x = jax.random.normal(kx, (B, C_in, H, W), jnp.float32)
    params = init_params(kp, H, W, C_in, out_channels=4,
                         num_classes=num_classes)

    # One-time weight folding / padding (hoisted out of the jitted forward).
    prep_bf16, nc = prepare_params(params, H, W, matmul_dtype=jnp.bfloat16)
    prep_f32, _ = prepare_params(params, H, W, matmul_dtype=jnp.float32)

    fwd = jax.jit(functools.partial(conv_classifier_forward, num_classes=nc))
    ref = reference_forward(x, params)

    # Default (bf16 weights, f32 accumulation) path.
    probs = jax.block_until_ready(fwd(x, prep_bf16))
    assert probs.shape == (B, num_classes)
    assert bool(jnp.all(jnp.isfinite(probs)))
    assert bool(jnp.allclose(jnp.sum(probs, axis=1), 1.0, atol=1e-3))
    assert bool(jnp.allclose(probs, ref, atol=2e-2, rtol=2e-2))

    # f32 weights path for tight numerical parity with the XLA reference.
    probs_f32 = jax.block_until_ready(fwd(x, prep_f32))
    assert bool(jnp.allclose(jnp.sum(probs_f32, axis=1), 1.0, atol=1e-3))
    assert bool(jnp.allclose(probs_f32, ref, atol=2e-3, rtol=2e-3))

    print("KERNEL_OK")
</pallas_src>

<mosaic_0001>
module attributes {stable_mosaic.version = 11 : i64} {
  func.func @_fused_forward_kernel(%arg0: i32, %arg1: memref<8x1024xbf16, #tpu.memory_space<vmem>>, %arg2: memref<1024x1024xbf16, #tpu.memory_space<vmem>>, %arg3: memref<1x1024xf32, #tpu.memory_space<vmem>>, %arg4: memref<1024x512xbf16, #tpu.memory_space<vmem>>, %arg5: memref<1x512xf32, #tpu.memory_space<vmem>>, %arg6: memref<512x128xbf16, #tpu.memory_space<vmem>>, %arg7: memref<1x128xf32, #tpu.memory_space<vmem>>, %arg8: memref<8x128xf32, #tpu.memory_space<vmem>>) attributes {dimension_semantics = [#tpu.dimension_semantics<parallel>], iteration_bounds = array<i64: 1>, scalar_prefetch = 0 : i64, scratch_operands = 0 : i64, tpu.core_type = #tpu.core_type<tc>, window_params = [{transform_indices = @transform_0, window_bounds = array<i64: 8, 1024>}, {pipeline_mode = #tpu.pipeline_mode<synchronous>, transform_indices = @transform_1, window_bounds = array<i64: 1024, 1024>}, {pipeline_mode = #tpu.pipeline_mode<synchronous>, transform_indices = @transform_2, window_bounds = array<i64: 1, 1024>}, {pipeline_mode = #tpu.pipeline_mode<synchronous>, transform_indices = @transform_3, window_bounds = array<i64: 1024, 512>}, {pipeline_mode = #tpu.pipeline_mode<synchronous>, transform_indices = @transform_4, window_bounds = array<i64: 1, 512>}, {pipeline_mode = #tpu.pipeline_mode<synchronous>, transform_indices = @transform_5, window_bounds = array<i64: 512, 128>}, {pipeline_mode = #tpu.pipeline_mode<synchronous>, transform_indices = @transform_6, window_bounds = array<i64: 1, 128>}, {transform_indices = @transform_7, window_bounds = array<i64: 8, 128>}]} {
    %c0 = arith.constant 0 : index
    %c0_0 = arith.constant 0 : index
    %0 = vector.load %arg1[%c0, %c0_0] : memref<8x1024xbf16, #tpu.memory_space<vmem>>, vector<8x1024xbf16>
    %c0_1 = arith.constant 0 : index
    %c0_2 = arith.constant 0 : index
    %1 = vector.load %arg2[%c0_1, %c0_2] : memref<1024x1024xbf16, #tpu.memory_space<vmem>>, vector<1024x1024xbf16>
    %cst = arith.constant dense<0.000000e+00> : vector<8x1024xf32>
    %2 = tpu.matmul %0, %1, %cst {dimension_numbers = #tpu.dot_dimension_numbers<[1], [0], [0], [1], [0, 0, 1, 1], [], []>} : vector<8x1024xbf16>, vector<1024x1024xbf16>, vector<8x1024xf32> -> vector<8x1024xf32>
    %c0_3 = arith.constant 0 : index
    %c0_4 = arith.constant 0 : index
    %3 = vector.load %arg3[%c0_3, %c0_4] : memref<1x1024xf32, #tpu.memory_space<vmem>>, vector<1x1024xf32>
    %4 = vector.broadcast %3 : vector<1x1024xf32> to vector<8x1024xf32>
    %5 = arith.addf %2, %4 : vector<8x1024xf32>
    %cst_5 = arith.constant 0.000000e+00 : f32
    %6 = vector.broadcast %cst_5 : f32 to vector<8x1024xf32>
    %7 = arith.maximumf %5, %6 : vector<8x1024xf32>
    %8 = arith.truncf %7 : vector<8x1024xf32> to vector<8x1024xbf16>
    %c0_6 = arith.constant 0 : index
    %c0_7 = arith.constant 0 : index
    %9 = vector.load %arg4[%c0_6, %c0_7] : memref<1024x512xbf16, #tpu.memory_space<vmem>>, vector<1024x512xbf16>
    %cst_8 = arith.constant dense<0.000000e+00> : vector<8x512xf32>
    %10 = tpu.matmul %8, %9, %cst_8 {dimension_numbers = #tpu.dot_dimension_numbers<[1], [0], [0], [1], [0, 0, 1, 1], [], []>} : vector<8x1024xbf16>, vector<1024x512xbf16>, vector<8x512xf32> -> vector<8x512xf32>
    %c0_9 = arith.constant 0 : index
    %c0_10 = arith.constant 0 : index
    %11 = vector.load %arg5[%c0_9, %c0_10] : memref<1x512xf32, #tpu.memory_space<vmem>>, vector<1x512xf32>
    %12 = vector.broadcast %11 : vector<1x512xf32> to vector<8x512xf32>
    %13 = arith.addf %10, %12 : vector<8x512xf32>
    %cst_11 = arith.constant 0.000000e+00 : f32
    %14 = vector.broadcast %cst_11 : f32 to vector<8x512xf32>
    %15 = arith.maximumf %13, %14 : vector<8x512xf32>
    %16 = arith.truncf %15 : vector<8x512xf32> to vector<8x512xbf16>
    %c0_12 = arith.constant 0 : index
    %c0_13 = arith.constant 0 : index
    %17 = vector.load %arg6[%c0_12, %c0_13] : memref<512x128xbf16, #tpu.memory_space<vmem>>, vector<512x128xbf16>
    %cst_14 = arith.constant dense<0.000000e+00> : vector<8x128xf32>
    %18 = tpu.matmul %16, %17, %cst_14 {dimension_numbers = #tpu.dot_dimension_numbers<[1], [0], [0], [1], [0, 0, 1, 1], [], []>} : vector<8x512xbf16>, vector<512x128xbf16>, vector<8x128xf32> -> vector<8x128xf32>
    %c0_15 = arith.constant 0 : index
    %c0_16 = arith.constant 0 : index
    %19 = vector.load %arg7[%c0_15, %c0_16] : memref<1x128xf32, #tpu.memory_space<vmem>>, vector<1x128xf32>
    %20 = vector.broadcast %19 : vector<1x128xf32> to vector<8x128xf32>
    %21 = arith.addf %18, %20 : vector<8x128xf32>
    %cst_17 = arith.constant dense<0xFF800000> : vector<8xf32>
    %22 = vector.multi_reduction <maximumf>, %21, %cst_17 [1] : vector<8x128xf32> to vector<8xf32>
    %23 = vector.shape_cast %22 : vector<8xf32> to vector<8x1xf32>
    %24 = vector.broadcast %23 : vector<8x1xf32> to vector<8x128xf32>
    %25 = arith.subf %21, %24 : vector<8x128xf32>
    %26 = math.exp %25 : vector<8x128xf32>
    %cst_18 = arith.constant dense<0.000000e+00> : vector<8xf32>
    %27 = vector.multi_reduction <add>, %26, %cst_18 [1] : vector<8x128xf32> to vector<8xf32>
    %28 = vector.shape_cast %27 : vector<8xf32> to vector<8x1xf32>
    %29 = vector.broadcast %28 : vector<8x1xf32> to vector<8x128xf32>
    %30 = arith.divf %26, %29 : vector<8x128xf32>
    %c0_19 = arith.constant 0 : index
    %c0_20 = arith.constant 0 : index
    %31 = vector.load %arg8[%c0_19, %c0_20] : memref<8x128xf32, #tpu.memory_space<vmem>>, vector<8x128xf32>
    tpu.vector_store %arg8[%c0_19, %c0_20], %30 {strides = array<i32>} : memref<8x128xf32, #tpu.memory_space<vmem>>, vector<8x128xf32>,
    return
  }
  func.func @transform_0(%arg0: i32) -> (i32, i32) {
    %c0_i32 = arith.constant 0 : i32
    %c0_i32_0 = arith.constant 0 : i32
    return %arg0, %c0_i32 : i32, i32
  }
  func.func @transform_1(%arg0: i32) -> (i32, i32) {
    %c0_i32 = arith.constant 0 : i32
    %c0_i32_0 = arith.constant 0 : i32
    %c0_i32_1 = arith.constant 0 : i32
    return %c0_i32, %c0_i32_0 : i32, i32
  }
  func.func @transform_2(%arg0: i32) -> (i32, i32) {
    %c0_i32 = arith.constant 0 : i32
    %c0_i32_0 = arith.constant 0 : i32
    %c0_i32_1 = arith.constant 0 : i32
    return %c0_i32, %c0_i32_0 : i32, i32
  }
  func.func @transform_3(%arg0: i32) -> (i32, i32) {
    %c0_i32 = arith.constant 0 : i32
    %c0_i32_0 = arith.constant 0 : i32
    %c0_i32_1 = arith.constant 0 : i32
    return %c0_i32, %c0_i32_0 : i32, i32
  }
  func.func @transform_4(%arg0: i32) -> (i32, i32) {
    %c0_i32 = arith.constant 0 : i32
    %c0_i32_0 = arith.constant 0 : i32
    %c0_i32_1 = arith.constant 0 : i32
    return %c0_i32, %c0_i32_0 : i32, i32
  }
  func.func @transform_5(%arg0: i32) -> (i32, i32) {
    %c0_i32 = arith.constant 0 : i32
    %c0_i32_0 = arith.constant 0 : i32
    %c0_i32_1 = arith.constant 0 : i32
    return %c0_i32, %c0_i32_0 : i32, i32
  }
  func.func @transform_6(%arg0: i32) -> (i32, i32) {
    %c0_i32 = arith.constant 0 : i32
    %c0_i32_0 = arith.constant 0 : i32
    %c0_i32_1 = arith.constant 0 : i32
    return %c0_i32, %c0_i32_0 : i32, i32
  }
  func.func @transform_7(%arg0: i32) -> (i32, i32) {
    %c0_i32 = arith.constant 0 : i32
    %c0_i32_0 = arith.constant 0 : i32
    return %arg0, %c0_i32 : i32, i32
  }
}

</mosaic_0001>

<bundles_post_ra>
// kernel: conv_classifier_forward.1
= control target key start
LH: loop header
LB: loop body
LE: loop exit
PB: predicated region body
PF: predicated region fallthrough
CT: control target
= control target key end

     0   :  { %12 = vsyncpa [#allocation3], 0  ;;  %s7955_s0 = inlined_call_operand.vmem [shape: bf16[8,1024], index: 0, kind: input, shape index: {}]   ;;  %s7956_s1 = inlined_call_operand.hbm [shape: bf16[1024,1024], index: 1, kind: input, shape index: {}]   ;;  %s7957_s2 = inlined_call_operand.hbm [shape: f32[1,1024], index: 2, kind: input, shape index: {}]   ;;  %s7958_s3 = inlined_call_operand.hbm [shape: bf16[1024,512], index: 3, kind: input, shape index: {}]   ;;  %s7959_s4 = inlined_call_operand.hbm [shape: f32[1,512], index: 4, kind: input, shape index: {}]   ;;  %s7960_s5 = inlined_call_operand.hbm [shape: bf16[512,128], index: 5, kind: input, shape index: {}]   ;;  %s7961_s6 = inlined_call_operand.hbm [shape: f32[1,128], index: 6, kind: input, shape index: {}]   ;;  %s7962_s7 = inlined_call_operand.vmem [shape: f32[8,128], index: 7, kind: output, shape index: {}]  }
   0x1   :  { %13 = vsyncpa [#allocation5], 0 }
   0x2   :  { %14 = vsyncpa [#allocation8], 0 }
   0x3   :  { %15 = vsyncpa [#allocation11], 0  ;;  %s7694_s24 = smov [#allocation4]   ;;  %s7695_s26 = smov [#allocation7]  }
   0x4   :  { %s36_s25 = sshll.u32 %s7694_s24, 4  ;;  %s58_s27 = sshll.u32 %s7695_s26, 4  ;;  %s37_s25 = int_to_ptr.vmem [resolvable:$true] %s36_s25  ;;  %s59_s27 = int_to_ptr.vmem [resolvable:$true] %s58_s27 }
   0x5   :  { %s7554_s30 = scalar_lea.hbm %s7957_s2, 128 }
   0x6   :  { %p7555_p0 = scmp.ne.s32.totalorder %s7957_s2, %s7554_s30  ;;  %p7558_p1 = scmp.lt.u32.totalorder %s7554_s30, %s7957_s2 }
   0x8   :  { %p7560_p2 = pnand %p7558_p1, %p7555_p0 }
   0xa   :  { %7563 = shalt.err (!%p7560_p2)
}
   0xb   :  { %s7564_s12 = scalar_lea.vmem %s37_s25, 128  ;;  %p7569_p4 = scmp.lt.s32.totalorder %s37_s25, %s37_s25 }
   0xc   :  { %p7565_p3 = scmp.ne.s32.totalorder %s37_s25, %s7564_s12  ;;  %p7570_p5 = scmp.lt.s32.totalorder %s7564_s12, %s7564_s12 }
   0xe   :  { %p7571_p6 = por %p7570_p5, %p7569_p4 }
  0x10   :  { %p7572_p7 = pnand %p7571_p6, %p7565_p3 }
  0x12   :  { %7575 = shalt.err (!%p7572_p7)
}
  0x13   :  { %39 = dma.hbm_to_vmem [thread:$0]  %s7957_s2, 128, %s37_s25, [#allocation5]  }
  0x14   :  { %s7576_s17 = scalar_lea.hbm %s7959_s4, 64 }
  0x15   :  { %p7577_p8 = scmp.ne.s32.totalorder %s7959_s4, %s7576_s17  ;;  %p7580_p9 = scmp.lt.u32.totalorder %s7576_s17, %s7959_s4 }
  0x17   :  { %p7582_p10 = pnand %p7580_p9, %p7577_p8 }
  0x19   :  { %7585 = shalt.err (!%p7582_p10)
}
  0x1a   :  { %s7586_s22 = scalar_lea.vmem %s59_s27, 64  ;;  %p7591_p12 = scmp.lt.s32.totalorder %s59_s27, %s59_s27 }
  0x1b   :  { %p7587_p11 = scmp.ne.s32.totalorder %s59_s27, %s7586_s22  ;;  %p7592_p13 = scmp.lt.s32.totalorder %s7586_s22, %s7586_s22 }
  0x1d   :  { %p7593_p0 = por %p7592_p13, %p7591_p12 }
  0x1f   :  { %p7594_p1 = pnand %p7593_p0, %p7587_p11 }
  0x21   :  { %7597 = shalt.err (!%p7594_p1)
}
  0x22   :  { %61 = dma.hbm_to_vmem [thread:$0]  %s7959_s4, 64, %s59_s27, [#allocation8]  }
  0x23   :  { %s7696_s24 = smov [#allocation2]   ;;  %s7598_s29 = scalar_lea.hbm %s7956_s1, 65536 }
  0x24   :  { %s23_s25 = sshll.u32 %s7696_s24, 4  ;;  %p7599_p2 = scmp.ne.s32.totalorder %s7956_s1, %s7598_s29  ;;  %s24_s25 = int_to_ptr.vmem [resolvable:$true] %s23_s25 }
  0x25   :  { %p7602_p3 = scmp.lt.u32.totalorder %s7598_s29, %s7956_s1 }
  0x27   :  { %p7604_p4 = pnand %p7602_p3, %p7599_p2 }
  0x29   :  { %7607 = shalt.err (!%p7604_p4)
}
  0x2a   :  { %s7608_s11 = scalar_lea.vmem %s24_s25, 65536  ;;  %p7613_p6 = scmp.lt.s32.totalorder %s24_s25, %s24_s25 }
  0x2b   :  { %p7609_p5 = scmp.ne.s32.totalorder %s24_s25, %s7608_s11  ;;  %p7614_p7 = scmp.lt.s32.totalorder %s7608_s11, %s7608_s11 }
  0x2d   :  { %p7615_p8 = por %p7614_p7, %p7613_p6 }
  0x2f   :  { %p7616_p9 = pnand %p7615_p8, %p7609_p5 }
  0x31   :  { %7619 = shalt.err (!%p7616_p9)
}
  0x32   :  { %s7697_s4 = smov 512   ;;  %s7698_s27 = smov 32  }
  0x33   :  { %29 = dma.hbm_to_vmem [thread:$0]  %s7956_s1, 65536, %s24_s25, [#allocation3], %s7697_s4, %s7697_s4, %s7698_s27  }
  0x34   :  { %s7699_s14 = smov [#allocation6]   ;;  %s7620_s18 = scalar_lea.hbm %s7958_s3, 32768 }
  0x35   :  { %s45_s15 = sshll.u32 %s7699_s14, 4  ;;  %p7621_p10 = scmp.ne.s32.totalorder %s7958_s3, %s7620_s18  ;;  %s46_s15 = int_to_ptr.vmem [resolvable:$true] %s45_s15 }
  0x36   :  { %p7624_p11 = scmp.lt.u32.totalorder %s7620_s18, %s7958_s3 }
  0x38   :  { %p7626_p12 = pnand %p7624_p11, %p7621_p10 }
  0x3a   :  { %7629 = shalt.err (!%p7626_p12)
}
  0x3b   :  { %s7630_s2 = scalar_lea.vmem %s46_s15, 32768  ;;  %p7635_p0 = scmp.lt.s32.totalorder %s46_s15, %s46_s15 }
  0x3c   :  { %p7631_p13 = scmp.ne.s32.totalorder %s46_s15, %s7630_s2  ;;  %p7636_p1 = scmp.lt.s32.totalorder %s7630_s2, %s7630_s2 }
  0x3e   :  { %p7637_p2 = por %p7636_p1, %p7635_p0 }
  0x40   :  { %p7638_p3 = pnand %p7637_p2, %p7631_p13 }
  0x42   :  { %7641 = shalt.err (!%p7638_p3)
}
  0x43   :  { %s7700_s1 = smov 256   ;;  %s7701_s23 = smov 16  }
  0x44   :  { %51 = dma.hbm_to_vmem [thread:$0]  %s7958_s3, 32768, %s46_s15, [#allocation5], %s7700_s1, %s7700_s1, %s7701_s23  }
  0x45   :  { %s7702_s26 = smov [#allocation9]   ;;  %s7642_s8 = scalar_lea.hbm %s7960_s5, 4096 }
  0x46   :  { %s67_s28 = sshll.u32 %s7702_s26, 4  ;;  %p7643_p4 = scmp.ne.s32.totalorder %s7960_s5, %s7642_s8  ;;  %s68_s28 = int_to_ptr.vmem [resolvable:$true] %s67_s28 }
  0x47   :  { %p7646_p5 = scmp.lt.u32.totalorder %s7642_s8, %s7960_s5 }
  0x49   :  { %p7648_p6 = pnand %p7646_p5, %p7643_p4 }
  0x4b   :  { %7651 = shalt.err (!%p7648_p6)
}
  0x4c   :  { %s7652_s27 = scalar_lea.vmem %s68_s28, 4096  ;;  %p7657_p8 = scmp.lt.s32.totalorder %s68_s28, %s68_s28 }
  0x4d   :  { %p7653_p7 = scmp.ne.s32.totalorder %s68_s28, %s7652_s27  ;;  %p7658_p9 = scmp.lt.s32.totalorder %s7652_s27, %s7652_s27 }
  0x4f   :  { %p7659_p10 = por %p7658_p9, %p7657_p8 }
  0x51   :  { %p7660_p11 = pnand %p7659_p10, %p7653_p7 }
  0x53   :  { %7663 = shalt.err (!%p7660_p11)
}
  0x54   :  { %s7703_s3 = smov 64   ;;  %s7704_s12 = smov 4  }
  0x55   :  { %73 = dma.hbm_to_vmem [thread:$0]  %s7960_s5, 4096, %s68_s28, [#allocation8], %s7703_s3, %s7703_s3, %s7704_s12  }
  0x56   :  { %s7705_s15 = smov [#allocation10]   ;;  %s7664_s19 = scalar_lea.hbm %s7961_s6, 16 }
  0x57   :  { %s80_s16 = sshll.u32 %s7705_s15, 4  ;;  %p7665_p12 = scmp.ne.s32.totalorder %s7961_s6, %s7664_s19  ;;  %s81_s16 = int_to_ptr.vmem [resolvable:$true] %s80_s16 }
  0x58   :  { %p7668_p13 = scmp.lt.u32.totalorder %s7664_s19, %s7961_s6 }
  0x5a   :  { %p7670_p0 = pnand %p7668_p13, %p7665_p12 }
  0x5c   :  { %7673 = shalt.err (!%p7670_p0)
}
  0x5d   :  { %s7674_s1 = scalar_lea.vmem %s81_s16, 16  ;;  %s7678_s5 = scalar_lea.vmem %s81_s16, 32 }
  0x5e   :  { %p7675_p1 = scmp.ne.s32.totalorder %s81_s16, %s7674_s1  ;;  %p7679_p2 = scmp.lt.s32.totalorder %s81_s16, %s81_s16 }
  0x5f   :  { %p7680_p3 = scmp.lt.s32.totalorder %s7678_s5, %s7674_s1 }
  0x61   :  { %p7681_p4 = por %p7680_p3, %p7679_p2 }
  0x63   :  { %p7682_p5 = pnand %p7681_p4, %p7675_p1 }
  0x65   :  { %7685 = shalt.err (!%p7682_p5)
}
  0x66   :  { %83 = dma.hbm_to_vmem [thread:$0]  %s7961_s6, 16, %s81_s16, [#allocation11]  }
  0x67   :  { %7686 = dma.done.wait [#allocation3], 65536  }
  0x68   :  { %7687 = vsyncadd [#allocation3], 4294901760 }
  0x69   :  { %7688 = dma.done.wait [#allocation5], 32896  }
  0x6a   :  { %7689 = vsyncadd [#allocation5], 4294934400 }
  0x6b   :  { %7690 = dma.done.wait [#allocation8], 4160  }
  0x6c   :  { %7691 = vsyncadd [#allocation8], 4294963136 }
  0x6d   :  { %7692 = dma.done.wait [#allocation11], 16  }
  0x6e   :  { %7693 = vsyncadd [#allocation11], 4294967280  ;;  %v107_v0 = vld [vmem:[#allocation2] sm:$0xff]  ;;  %v108_v2 = vld [vmem:[#allocation2 + $0x8] sm:$0xff] }
  0x6f   :  { %v111_v1 = vld [vmem:[#allocation2 + $0x20] sm:$0xff]  ;;  %v112_v4 = vld [vmem:[#allocation2 + $0x28] sm:$0xff] }
  0x70   :  { %v6185_v3 = vcombine.high %v107_v0, %v111_v1  ;;  %v6184_v5 = vcombine.low %v107_v0, %v111_v1  ;;  %v115_v6 = vld [vmem:[#allocation2 + $0x40] sm:$0xff]  ;;  %v6187_v8 = vcombine.high %v108_v2, %v112_v4  ;;  %v6186_v9 = vcombine.low %v108_v2, %v112_v4  ;;  %v116_v11 = vld [vmem:[#allocation2 + $0x48] sm:$0xff] }
  0x71   :  { %v119_v7 = vld [vmem:[#allocation2 + $0x60] sm:$0xff]  ;;  %v120_v12 = vld [vmem:[#allocation2 + $0x68] sm:$0xff] }
  0x72   :  { %v6193_v10 = vcombine.high %v115_v6, %v119_v7  ;;  %v123_v13 = vld [vmem:[#allocation2 + $0x80] sm:$0xff]  ;;  %3249 = vmatprep.subr.bf16.mxu0 %v6185_v3  ;;  %v6195_v14 = vcombine.high %v116_v11, %v120_v12  ;;  %v124_v16 = vld [vmem:[#allocation2 + $0x88] sm:$0xff]  ;;  %3413 = vmatprep.subr.bf16.mxu1 %v6187_v8  ;;  %v6192_v18 = vcombine.low %v115_v6, %v119_v7 }
  0x73   :  { %v127_v15 = vld [vmem:[#allocation2 + $0xa0] sm:$0xff]  ;;  %v128_v17 = vld [vmem:[#allocation2 + $0xa8] sm:$0xff]  ;;  %3250 = vmatpush1.bf16.msra.mxu0 %v6184_v5  ;;  %3414 = vmatpush1.bf16.msra.mxu1 %v6186_v9  ;;  %v6194_v19 = vcombine.low %v116_v11, %v120_v12 }
  0x74   :  { %3251 = vmatprep.subr.bf16.mxu0 %v6193_v10  ;;  %v6201_v20 = vcombine.high %v123_v13, %v127_v15  ;;  %3415 = vmatprep.subr.bf16.mxu1 %v6195_v14  ;;  %v6203_v21 = vcombine.high %v124_v16, %v128_v17  ;;  %v131_v22 = vld [vmem:[#allocation2 + $0xc0] sm:$0xff]  ;;  %v132_v24 = vld [vmem:[#allocation2 + $0xc8] sm:$0xff]  ;;  %v6200_v26 = vcombine.low %v123_v13, %v127_v15 }
  0x75   :  { %v135_v23 = vld [vmem:[#allocation2 + $0xe0] sm:$0xff]  ;;  %v136_v25 = vld [vmem:[#allocation2 + $0xe8] sm:$0xff]  ;;  %v6202_v27 = vcombine.low %v124_v16, %v128_v17 }
  0x76   :  { %v6209_v28 = vcombine.high %v131_v22, %v135_v23  ;;  %v6211_v29 = vcombine.high %v132_v24, %v136_v25  ;;  %v139_v30 = vld [vmem:[#allocation2 + $0x100] sm:$0xff]  ;;  %v140_v32 = vld [vmem:[#allocation2 + $0x108] sm:$0xff]  ;;  %v6208_v34 = vcombine.low %v131_v22, %v135_v23  ;;  %v6210_v35 = vcombine.low %v132_v24, %v136_v25 }
  0x77   :  { %3252 = vmatpush1.bf16.msra.mxu0 %v6192_v18  ;;  %3416 = vmatpush1.bf16.msra.mxu1 %v6194_v19  ;;  %v143_v31 = vld [vmem:[#allocation2 + $0x120] sm:$0xff]  ;;  %v144_v33 = vld [vmem:[#allocation2 + $0x128] sm:$0xff] }
  0x78   :  { %3253 = vmatprep.subr.bf16.mxu0 %v6201_v20  ;;  %3417 = vmatprep.subr.bf16.mxu1 %v6203_v21  ;;  %v6217_v36 = vcombine.high %v139_v30, %v143_v31  ;;  %v6219_v37 = vcombine.high %v140_v32, %v144_v33  ;;  %v147_v38 = vld [vmem:[#allocation2 + $0x140] sm:$0xff]  ;;  %v148_v40 = vld [vmem:[#allocation2 + $0x148] sm:$0xff]  ;;  %v6216_v42 = vcombine.low %v139_v30, %v143_v31 }
  0x79   :  { %v151_v39 = vld [vmem:[#allocation2 + $0x160] sm:$0xff]  ;;  %v152_v41 = vld [vmem:[#allocation2 + $0x168] sm:$0xff]  ;;  %v6218_v43 = vcombine.low %v140_v32, %v144_v33 }
  0x7a   :  { %v6225_v44 = vcombine.high %v147_v38, %v151_v39  ;;  %v6227_v45 = vcombine.high %v148_v40, %v152_v41  ;;  %v155_v46 = vld [vmem:[#allocation2 + $0x180] sm:$0xff]  ;;  %v156_v48 = vld [vmem:[#allocation2 + $0x188] sm:$0xff]  ;;  %v6224_v50 = vcombine.low %v147_v38, %v151_v39  ;;  %v6226_v51 = vcombine.low %v148_v40, %v152_v41 }
  0x7b   :  { %3254 = vmatpush1.bf16.msra.mxu0 %v6200_v26  ;;  %3418 = vmatpush1.bf16.msra.mxu1 %v6202_v27  ;;  %v159_v47 = vld [vmem:[#allocation2 + $0x1a0] sm:$0xff]  ;;  %v160_v49 = vld [vmem:[#allocation2 + $0x1a8] sm:$0xff] }
  0x7c   :  { %3255 = vmatprep.subr.bf16.mxu0 %v6209_v28  ;;  %3419 = vmatprep.subr.bf16.mxu1 %v6211_v29  ;;  %v6233_v52 = vcombine.high %v155_v46, %v159_v47  ;;  %v7821_v53 = vld [vmem:[%s7955_s0] sm:$0xff]  ;;  %v6235_v54 = vcombine.high %v156_v48, %v160_v49  ;;  %v164_v58 = vld [vmem:[#allocation2 + $0x1c8] sm:$0xff]  ;;  %v6232_v60 = vcombine.low %v155_v46, %v159_v47 }
  0x7d   :  { %v163_v55 = vld [vmem:[#allocation2 + $0x1c0] sm:$0xff]  ;;  %v7825_v57 = vcombine.high %v7821_v53, %v7821_v53  ;;  %v168_v59 = vld [vmem:[#allocation2 + $0x1e8] sm:$0xff]  ;;  %v6234_v61 = vcombine.low %v156_v48, %v160_v49 }
  0x7e   :  { %v167_v56 = vld [vmem:[#allocation2 + $0x1e0] sm:$0xff]  ;;  %v6243_v63 = vcombine.high %v164_v58, %v168_v59  ;;  %v172_v2 = vld [vmem:[#allocation2 + $0x208] sm:$0xff]  ;;  %v6242_v5 = vcombine.low %v164_v58, %v168_v59 }
  0x7f   :  { %3256 = vmatpush1.bf16.msra.mxu0 %v6208_v34  ;;  %3420 = vmatpush1.bf16.msra.mxu1 %v6210_v35  ;;  %v6241_v62 = vcombine.high %v163_v55, %v167_v56  ;;  %v171_v0 = vld [vmem:[#allocation2 + $0x200] sm:$0xff]  ;;  %v176_v3 = vld [vmem:[#allocation2 + $0x228] sm:$0xff]  ;;  %v6240_v4 = vcombine.low %v163_v55, %v167_v56 }
  0x80   :  { %3257 = vmatprep.subr.bf16.mxu0 %v6217_v36  ;;  %3421 = vmatprep.subr.bf16.mxu1 %v6219_v37  ;;  %v175_v1 = vld [vmem:[#allocation2 + $0x220] sm:$0xff]  ;;  %v6251_v7 = vcombine.high %v172_v2, %v176_v3  ;;  %v180_v10 = vld [vmem:[#allocation2 + $0x248] sm:$0xff]  ;;  %v6250_v13 = vcombine.low %v172_v2, %v176_v3 }
  0x81   :  { %3281 = vmatprep.mubr.bf16.mxu0 %v7825_v57  ;;  %3445 = vmatprep.mubr.bf16.mxu1 %v7825_v57  ;;  %v6249_v6 = vcombine.high %v171_v0, %v175_v1  ;;  %v179_v8 = vld [vmem:[#allocation2 + $0x240] sm:$0xff]  ;;  %v184_v11 = vld [vmem:[#allocation2 + $0x268] sm:$0xff]  ;;  %v6248_v12 = vcombine.low %v171_v0, %v175_v1 }
  0x82   :  { %v183_v9 = vld [vmem:[#allocation2 + $0x260] sm:$0xff]  ;;  %v6259_v15 = vcombine.high %v180_v10, %v184_v11  ;;  %v188_v18 = vld [vmem:[#allocation2 + $0x288] sm:$0xff]  ;;  %v6258_v21 = vcombine.low %v180_v10, %v184_v11 }
  0x83   :  { %3258 = vmatpush1.bf16.msra.mxu0 %v6216_v42  ;;  %3422 = vmatpush1.bf16.msra.mxu1 %v6218_v43  ;;  %v6257_v14 = vcombine.high %v179_v8, %v183_v9  ;;  %v187_v16 = vld [vmem:[#allocation2 + $0x280] sm:$0xff]  ;;  %v192_v19 = vld [vmem:[#allocation2 + $0x2a8] sm:$0xff]  ;;  %v6256_v20 = vcombine.low %v179_v8, %v183_v9 }
  0x84   :  { %3259 = vmatprep.subr.bf16.mxu0 %v6225_v44  ;;  %3423 = vmatprep.subr.bf16.mxu1 %v6227_v45  ;;  %v191_v17 = vld [vmem:[#allocation2 + $0x2a0] sm:$0xff]  ;;  %v6267_v23 = vcombine.high %v188_v18, %v192_v19  ;;  %v196_v26 = vld [vmem:[#allocation2 + $0x2c8] sm:$0xff]  ;;  %v6266_v29 = vcombine.low %v188_v18, %v192_v19 }
  0x85   :  { %v6265_v22 = vcombine.high %v187_v16, %v191_v17  ;;  %v195_v24 = vld [vmem:[#allocation2 + $0x2c0] sm:$0xff]  ;;  %v200_v27 = vld [vmem:[#allocation2 + $0x2e8] sm:$0xff]  ;;  %v6264_v28 = vcombine.low %v187_v16, %v191_v17 }
  0x86   :  { %v199_v25 = vld [vmem:[#allocation2 + $0x2e0] sm:$0xff]  ;;  %v6275_v31 = vcombine.high %v196_v26, %v200_v27  ;;  %v204_v34 = vld [vmem:[#allocation2 + $0x308] sm:$0xff]  ;;  %v6274_v37 = vcombine.low %v196_v26, %v200_v27 }
  0x87   :  { %3260 = vmatpush1.bf16.msra.mxu0 %v6224_v50  ;;  %3424 = vmatpush1.bf16.msra.mxu1 %v6226_v51  ;;  %v6273_v30 = vcombine.high %v195_v24, %v199_v25  ;;  %v203_v32 = vld [vmem:[#allocation2 + $0x300] sm:$0xff]  ;;  %v208_v35 = vld [vmem:[#allocation2 + $0x328] sm:$0xff]  ;;  %v6272_v36 = vcombine.low %v195_v24, %v199_v25 }
  0x88   :  { %3261 = vmatprep.subr.bf16.mxu0 %v6233_v52  ;;  %3425 = vmatprep.subr.bf16.mxu1 %v6235_v54  ;;  %v207_v33 = vld [vmem:[#allocation2 + $0x320] sm:$0xff]  ;;  %v6283_v39 = vcombine.high %v204_v34, %v208_v35  ;;  %v212_v42 = vld [vmem:[#allocation2 + $0x348] sm:$0xff]  ;;  %v6282_v45 = vcombine.low %v204_v34, %v208_v35 }
  0x89   :  { %v6281_v38 = vcombine.high %v203_v32, %v207_v33  ;;  %v211_v40 = vld [vmem:[#allocation2 + $0x340] sm:$0xff]  ;;  %v216_v43 = vld [vmem:[#allocation2 + $0x368] sm:$0xff]  ;;  %v6280_v44 = vcombine.low %v203_v32, %v207_v33 }
  0x8a   :  { %v215_v41 = vld [vmem:[#allocation2 + $0x360] sm:$0xff]  ;;  %v6291_v47 = vcombine.high %v212_v42, %v216_v43  ;;  %v220_v50 = vld [vmem:[#allocation2 + $0x388] sm:$0xff]  ;;  %v6290_v54 = vcombine.low %v212_v42, %v216_v43 }
  0x8b   :  { %3262 = vmatpush1.bf16.msra.mxu0 %v6232_v60  ;;  %3426 = vmatpush1.bf16.msra.mxu1 %v6234_v61  ;;  %v6289_v46 = vcombine.high %v211_v40, %v215_v41  ;;  %v219_v48 = vld [vmem:[#allocation2 + $0x380] sm:$0xff]  ;;  %v224_v51 = vld [vmem:[#allocation2 + $0x3a8] sm:$0xff]  ;;  %v6288_v52 = vcombine.low %v211_v40, %v215_v41 }
  0x8c   :  { %3263 = vmatprep.subr.bf16.mxu0 %v6241_v62  ;;  %3427 = vmatprep.subr.bf16.mxu1 %v6243_v63  ;;  %v223_v49 = vld [vmem:[#allocation2 + $0x3a0] sm:$0xff]  ;;  %v6299_v56 = vcombine.high %v220_v50, %v224_v51  ;;  %v228_v60 = vld [vmem:[#allocation2 + $0x3c8] sm:$0xff]  ;;  %v6298_v63 = vcombine.low %v220_v50, %v224_v51 }
  0x8d   :  { %v6297_v55 = vcombine.high %v219_v48, %v223_v49  ;;  %v227_v58 = vld [vmem:[#allocation2 + $0x3c0] sm:$0xff]  ;;  %v232_v61 = vld [vmem:[#allocation2 + $0x3e8] sm:$0xff]  ;;  %v6296_v62 = vcombine.low %v219_v48, %v223_v49 }
  0x8e   :  { %v231_v59 = vld [vmem:[#allocation2 + $0x3e0] sm:$0xff]  ;;  %v6307_v1 = vcombine.high %v228_v60, %v232_v61 }
  0x8f   :  { %3264 = vmatpush1.bf16.msra.mxu0 %v6240_v4  ;;  %3428 = vmatpush1.bf16.msra.mxu1 %v6242_v5  ;;  %v6305_v0 = vcombine.high %v227_v58, %v231_v59  ;;  %v235_v2 = vld [vmem:[#allocation2 + $0x400] sm:$0xff]  ;;  %v236_v4 = vld [vmem:[#allocation2 + $0x408] sm:$0xff] }
  0x90   :  { %3265 = vmatprep.subr.bf16.mxu0 %v6249_v6  ;;  %3429 = vmatprep.subr.bf16.mxu1 %v6251_v7  ;;  %v239_v3 = vld [vmem:[#allocation2 + $0x420] sm:$0xff]  ;;  %v240_v5 = vld [vmem:[#allocation2 + $0x428] sm:$0xff]  ;;  %v6304_v6 = vcombine.low %v227_v58, %v231_v59  ;;  %v6306_v7 = vcombine.low %v228_v60, %v232_v61 }
  0x91   :  { %v6313_v8 = vcombine.high %v235_v2, %v239_v3  ;;  %v6315_v9 = vcombine.high %v236_v4, %v240_v5  ;;  %v243_v10 = vld [vmem:[#allocation2 + $0x440] sm:$0xff]  ;;  %v6312_v16 = vcombine.low %v235_v2, %v239_v3  ;;  %v6314_v17 = vcombine.low %v236_v4, %v240_v5 }
  0x92   :  { %v247_v11 = vld [vmem:[#allocation2 + $0x460] sm:$0xff] }
  0x93   :  { %3266 = vmatpush1.bf16.msra.mxu0 %v6248_v12  ;;  %3430 = vmatpush1.bf16.msra.mxu1 %v6250_v13  ;;  %v7831_v12 = vcombine.low %v7821_v53, %v7821_v53  ;;  %v244_v13 = vld [vmem:[#allocation2 + $0x448] sm:$0xff]  ;;  %v6321_v18 = vcombine.high %v243_v10, %v247_v11  ;;  %v251_v19 = vld [vmem:[#allocation2 + $0x480] sm:$0xff]  ;;  %v6320_v24 = vcombine.low %v243_v10, %v247_v11 }
  0x94   :  { %3267 = vmatprep.subr.bf16.mxu0 %v6257_v14  ;;  %3431 = vmatprep.subr.bf16.mxu1 %v6259_v15  ;;  %v248_v14 = vld [vmem:[#allocation2 + $0x468] sm:$0xff]  ;;  %v259_v27 = vld [vmem:[#allocation2 + $0x4c0] sm:$0xff] }
  0x95   :  { %v7836_v15 = vld [vmem:[%s7955_s0 + $0x8] sm:$0xff]  ;;  %v6322_v25 = vcombine.low %v244_v13, %v248_v14  ;;  %v267_v35 = vld [vmem:[#allocation2 + $0x500] sm:$0xff] }
  0x96   :  { %v256_v53 = vld [vmem:[#allocation2 + $0x4a8] sm:$0xff]  ;;  %v275_v43 = vld [vmem:[#allocation2 + $0x540] sm:$0xff] }
  0x97   :  { %3268 = vmatpush1.bf16.msra.mxu0 %v6256_v20  ;;  %3432 = vmatpush1.bf16.msra.mxu1 %v6258_v21  ;;  %v255_v20 = vld [vmem:[#allocation2 + $0x4a0] sm:$0xff]  ;;  %v6323_v21 = vcombine.high %v244_v13, %v248_v14 }
  0x98   :  { %3269 = vmatprep.subr.bf16.mxu0 %v6265_v22  ;;  %3433 = vmatprep.subr.bf16.mxu1 %v6267_v23  ;;  %v252_v22 = vld [vmem:[#allocation2 + $0x488] sm:$0xff]  ;;  %v7840_v23 = vcombine.high %v7836_v15, %v7836_v15  ;;  %v6329_v26 = vcombine.high %v251_v19, %v255_v20  ;;  %v6328_v32 = vcombine.low %v251_v19, %v255_v20  ;;  %v283_v51 = vld [vmem:[#allocation2 + $0x580] sm:$0xff] }
  0x99   :  { %v6330_v33 = vcombine.low %v252_v22, %v256_v53  ;;  %v291_v61 = vld [vmem:[#allocation2 + $0x5c0] sm:$0xff]  ;;  %v312_v19 = vld [vmem:[#allocation2 + $0x668] sm:$0xff] }
  0x9a   :  { %v299_v5 = vld [vmem:[#allocation2 + $0x600] sm:$0xff] }
  0x9b   :  { %3270 = vmatpush1.bf16.msra.mxu0 %v6264_v28  ;;  %3434 = vmatpush1.bf16.msra.mxu1 %v6266_v29  ;;  %v263_v28 = vld [vmem:[#allocation2 + $0x4e0] sm:$0xff]  ;;  %v260_v29 = vld [vmem:[#allocation2 + $0x4c8] sm:$0xff] }
  0x9c   :  { %3271 = vmatprep.subr.bf16.mxu0 %v6273_v30  ;;  %3435 = vmatprep.subr.bf16.mxu1 %v6275_v31  ;;  %v6331_v30 = vcombine.high %v252_v22, %v256_v53  ;;  %v264_v31 = vld [vmem:[#allocation2 + $0x4e8] sm:$0xff]  ;;  %v6337_v34 = vcombine.high %v259_v27, %v263_v28  ;;  %v6336_v40 = vcombine.low %v259_v27, %v263_v28  ;;  %v307_v14 = vld [vmem:[#allocation2 + $0x640] sm:$0xff] }
  0x9d   :  { %v6338_v41 = vcombine.low %v260_v29, %v264_v31  ;;  %v315_v53 = vld [vmem:[#allocation2 + $0x680] sm:$0xff]  ;;  %v320_v27 = vld [vmem:[#allocation2 + $0x6a8] sm:$0xff] }
  0x9f   :  { %3272 = vmatpush1.bf16.msra.mxu0 %v6272_v36  ;;  %3436 = vmatpush1.bf16.msra.mxu1 %v6274_v37  ;;  %v271_v36 = vld [vmem:[#allocation2 + $0x520] sm:$0xff]  ;;  %v268_v37 = vld [vmem:[#allocation2 + $0x508] sm:$0xff] }
  0xa0   :  { %3273 = vmatprep.subr.bf16.mxu0 %v6281_v38  ;;  %3437 = vmatprep.subr.bf16.mxu1 %v6283_v39  ;;  %v6339_v38 = vcombine.high %v260_v29, %v264_v31  ;;  %v272_v39 = vld [vmem:[#allocation2 + $0x528] sm:$0xff]  ;;  %v6345_v42 = vcombine.high %v267_v35, %v271_v36  ;;  %v6344_v48 = vcombine.low %v267_v35, %v271_v36  ;;  %v323_v31 = vld [vmem:[#allocation2 + $0x6c0] sm:$0xff] }
  0xa1   :  { %v6346_v49 = vcombine.low %v268_v37, %v272_v39  ;;  %v328_v35 = vld [vmem:[#allocation2 + $0x6e8] sm:$0xff] }
  0xa3   :  { %3274 = vmatpush1.bf16.msra.mxu0 %v6280_v44  ;;  %3438 = vmatpush1.bf16.msra.mxu1 %v6282_v45  ;;  %v279_v44 = vld [vmem:[#allocation2 + $0x560] sm:$0xff]  ;;  %v276_v45 = vld [vmem:[#allocation2 + $0x548] sm:$0xff] }
  0xa4   :  { %3275 = vmatprep.subr.bf16.mxu0 %v6289_v46  ;;  %3439 = vmatprep.subr.bf16.mxu1 %v6291_v47  ;;  %v6347_v46 = vcombine.high %v268_v37, %v272_v39  ;;  %v280_v47 = vld [vmem:[#allocation2 + $0x568] sm:$0xff]  ;;  %v6353_v50 = vcombine.high %v275_v43, %v279_v44  ;;  %v6352_v58 = vcombine.low %v275_v43, %v279_v44  ;;  %v331_v39 = vld [vmem:[#allocation2 + $0x700] sm:$0xff] }
  0xa5   :  { %v6354_v59 = vcombine.low %v276_v45, %v280_v47  ;;  %v336_v43 = vld [vmem:[#allocation2 + $0x728] sm:$0xff] }
  0xa7   :  { %3276 = vmatpush1.bf16.msra.mxu0 %v6288_v52  ;;  %3440 = vmatpush1.bf16.msra.mxu1 %v6290_v54  ;;  %v287_v52 = vld [vmem:[#allocation2 + $0x5a0] sm:$0xff]  ;;  %v284_v54 = vld [vmem:[#allocation2 + $0x588] sm:$0xff] }
  0xa8   :  { %3277 = vmatprep.subr.bf16.mxu0 %v6297_v55  ;;  %3441 = vmatprep.subr.bf16.mxu1 %v6299_v56  ;;  %v6355_v55 = vcombine.high %v276_v45, %v280_v47  ;;  %v288_v56 = vld [vmem:[#allocation2 + $0x5a8] sm:$0xff]  ;;  %v6361_v60 = vcombine.high %v283_v51, %v287_v52  ;;  %v6360_v2 = vcombine.low %v283_v51, %v287_v52  ;;  %v339_v47 = vld [vmem:[#allocation2 + $0x740] sm:$0xff] }
  0xa9   :  { %v6362_v3 = vcombine.low %v284_v54, %v288_v56  ;;  %v344_v51 = vld [vmem:[#allocation2 + $0x768] sm:$0xff] }
  0xab   :  { %3278 = vmatpush1.bf16.msra.mxu0 %v6296_v62  ;;  %3442 = vmatpush1.bf16.msra.mxu1 %v6298_v63  ;;  %v295_v62 = vld [vmem:[#allocation2 + $0x5e0] sm:$0xff]  ;;  %v292_v63 = vld [vmem:[#allocation2 + $0x5c8] sm:$0xff] }
  0xac   :  { %3279 = vmatprep.subr.bf16.mxu0 %v6305_v0  ;;  %3443 = vmatprep.subr.bf16.mxu1 %v6307_v1  ;;  %v6363_v0 = vcombine.high %v284_v54, %v288_v56  ;;  %v296_v1 = vld [vmem:[#allocation2 + $0x5e8] sm:$0xff]  ;;  %v6369_v4 = vcombine.high %v291_v61, %v295_v62  ;;  %v6368_v10 = vcombine.low %v291_v61, %v295_v62  ;;  %v347_v56 = vld [vmem:[#allocation2 + $0x780] sm:$0xff] }
  0xad   :  { %v6370_v11 = vcombine.low %v292_v63, %v296_v1  ;;  %v352_v61 = vld [vmem:[#allocation2 + $0x7a8] sm:$0xff] }
  0xaf   :  { %3280 = vmatpush1.bf16.msra.mxu0 %v6304_v6  ;;  %3444 = vmatpush1.bf16.msra.mxu1 %v6306_v7  ;;  %v303_v6 = vld [vmem:[#allocation2 + $0x620] sm:$0xff]  ;;  %v300_v7 = vld [vmem:[#allocation2 + $0x608] sm:$0xff] }
  0xb0   :  { %3290 = vmatprep.subr.bf16.mxu0 %v6313_v8  ;;  %3454 = vmatprep.subr.bf16.mxu1 %v6315_v9  ;;  %v6371_v8 = vcombine.high %v292_v63, %v296_v1  ;;  %v304_v9 = vld [vmem:[#allocation2 + $0x628] sm:$0xff]  ;;  %v6377_v13 = vcombine.high %v299_v5, %v303_v6  ;;  %v6376_v20 = vcombine.low %v299_v5, %v303_v6  ;;  %v355_v1 = vld [vmem:[#allocation2 + $0x7c0] sm:$0xff] }
  0xb1   :  { %v360_v5 = vld [vmem:[#allocation2 + $0x7e8] sm:$0xff] }
  0xb2   :  { %3282 = vmatmul.mubr.bf16.vlgmr.msra.gmra.mrb[0].mxu0 %v7831_v12  ;;  %3446 = vmatmul.mubr.bf16.vlgmr.msra.gmra.mrb[0].mxu1 %v7831_v12 }
  0xb3   :  { %3291 = vmatpush1.bf16.msra.mxu0 %v6312_v16  ;;  %3455 = vmatpush1.bf16.msra.mxu1 %v6314_v17  ;;  %v311_v16 = vld [vmem:[#allocation2 + $0x660] sm:$0xff]  ;;  %v308_v17 = vld [vmem:[#allocation2 + $0x648] sm:$0xff] }
  0xb4   :  { %3292 = vmatprep.subr.bf16.mxu0 %v6321_v18  ;;  %3456 = vmatprep.subr.bf16.mxu1 %v6323_v21  ;;  %v6379_v18 = vcombine.high %v300_v7, %v304_v9  ;;  %v6378_v21 = vcombine.low %v300_v7, %v304_v9  ;;  %v6385_v22 = vcombine.high %v307_v14, %v311_v16  ;;  %v363_v9 = vld [vmem:[#allocation2 + $0x800] sm:$0xff] }
  0xb5   :  { %3322 = vmatprep.mubr.bf16.mxu0 %v7840_v23  ;;  %3486 = vmatprep.mubr.bf16.mxu1 %v7840_v23  ;;  %v6384_v28 = vcombine.low %v307_v14, %v311_v16  ;;  %v6386_v29 = vcombine.low %v308_v17, %v312_v19  ;;  %v368_v14 = vld [vmem:[#allocation2 + $0x828] sm:$0xff] }
  0xb7   :  { %3293 = vmatpush1.bf16.msra.mxu0 %v6320_v24  ;;  %3457 = vmatpush1.bf16.msra.mxu1 %v6322_v25  ;;  %v319_v24 = vld [vmem:[#allocation2 + $0x6a0] sm:$0xff]  ;;  %v316_v25 = vld [vmem:[#allocation2 + $0x688] sm:$0xff] }
  0xb8   :  { %3294 = vmatprep.subr.bf16.mxu0 %v6329_v26  ;;  %3458 = vmatprep.subr.bf16.mxu1 %v6331_v30  ;;  %v6387_v26 = vcombine.high %v308_v17, %v312_v19  ;;  %v6393_v30 = vcombine.high %v315_v53, %v319_v24  ;;  %v6392_v36 = vcombine.low %v315_v53, %v319_v24  ;;  %v371_v17 = vld [vmem:[#allocation2 + $0x840] sm:$0xff]  ;;  %v7849_v24 = vld [vmem:[%s7955_s0 + $0x10] sm:$0xff] }
  0xb9   :  { %v6394_v37 = vcombine.low %v316_v25, %v320_v27 }
  0xbb   :  { %3295 = vmatpush1.bf16.msra.mxu0 %v6328_v32  ;;  %3459 = vmatpush1.bf16.msra.mxu1 %v6330_v33  ;;  %v327_v32 = vld [vmem:[#allocation2 + $0x6e0] sm:$0xff]  ;;  %v324_v33 = vld [vmem:[#allocation2 + $0x6c8] sm:$0xff] }
  0xbc   :  { %3296 = vmatprep.subr.bf16.mxu0 %v6337_v34  ;;  %3460 = vmatprep.subr.bf16.mxu1 %v6339_v38  ;;  %v6395_v34 = vcombine.high %v316_v25, %v320_v27  ;;  %v6401_v38 = vcombine.high %v323_v31, %v327_v32  ;;  %v6400_v44 = vcombine.low %v323_v31, %v327_v32  ;;  %v380_v31 = vld [vmem:[#allocation2 + $0x888] sm:$0xff] }
  0xbd   :  { %v6402_v45 = vcombine.low %v324_v33, %v328_v35  ;;  %v7853_v25 = vcombine.low %v7836_v15, %v7836_v15 }
  0xbf   :  { %3297 = vmatpush1.bf16.msra.mxu0 %v6336_v40  ;;  %3461 = vmatpush1.bf16.msra.mxu1 %v6338_v41  ;;  %v335_v40 = vld [vmem:[#allocation2 + $0x720] sm:$0xff]  ;;  %v332_v41 = vld [vmem:[#allocation2 + $0x708] sm:$0xff] }
  0xc0   :  { %3298 = vmatprep.subr.bf16.mxu0 %v6345_v42  ;;  %3462 = vmatprep.subr.bf16.mxu1 %v6347_v46  ;;  %v6403_v42 = vcombine.high %v324_v33, %v328_v35  ;;  %v6409_v46 = vcombine.high %v331_v39, %v335_v40  ;;  %v6408_v52 = vcombine.low %v331_v39, %v335_v40  ;;  %v384_v33 = vld [vmem:[#allocation2 + $0x8a8] sm:$0xff] }
  0xc1   :  { %v6410_v54 = vcombine.low %v332_v41, %v336_v43  ;;  %v388_v39 = vld [vmem:[#allocation2 + $0x8c8] sm:$0xff]  ;;  %v6459_v40 = vcombine.high %v380_v31, %v384_v33 }
  0xc3   :  { %3299 = vmatpush1.bf16.msra.mxu0 %v6344_v48  ;;  %3463 = vmatpush1.bf16.msra.mxu1 %v6346_v49  ;;  %v343_v48 = vld [vmem:[#allocation2 + $0x760] sm:$0xff]  ;;  %v340_v49 = vld [vmem:[#allocation2 + $0x748] sm:$0xff] }
  0xc4   :  { %3300 = vmatprep.subr.bf16.mxu0 %v6353_v50  ;;  %3464 = vmatprep.subr.bf16.mxu1 %v6355_v55  ;;  %v6411_v50 = vcombine.high %v332_v41, %v336_v43  ;;  %v6417_v55 = vcombine.high %v339_v47, %v343_v48  ;;  %v6416_v62 = vcombine.low %v339_v47, %v343_v48  ;;  %v392_v41 = vld [vmem:[#allocation2 + $0x8e8] sm:$0xff] }
  0xc5   :  { %v6418_v63 = vcombine.low %v340_v49, %v344_v51  ;;  %v6458_v43 = vcombine.low %v380_v31, %v384_v33  ;;  %v396_v47 = vld [vmem:[#allocation2 + $0x908] sm:$0xff]  ;;  %v6467_v48 = vcombine.high %v388_v39, %v392_v41 }
  0xc6   :  { %v440_v31 = vld [vmem:[#allocation2 + $0xa68] sm:$0xff] }
  0xc7   :  { %3301 = vmatpush1.bf16.msra.mxu0 %v6352_v58  ;;  %3465 = vmatpush1.bf16.msra.mxu1 %v6354_v59  ;;  %v351_v58 = vld [vmem:[#allocation2 + $0x7a0] sm:$0xff]  ;;  %v348_v59 = vld [vmem:[#allocation2 + $0x788] sm:$0xff] }
  0xc8   :  { %3302 = vmatprep.subr.bf16.mxu0 %v6361_v60  ;;  %3466 = vmatprep.subr.bf16.mxu1 %v6363_v0  ;;  %v6419_v60 = vcombine.high %v340_v49, %v344_v51  ;;  %v6425_v0 = vcombine.high %v347_v56, %v351_v58  ;;  %v6424_v6 = vcombine.low %v347_v56, %v351_v58  ;;  %v400_v49 = vld [vmem:[#allocation2 + $0x928] sm:$0xff] }
  0xc9   :  { %v6426_v7 = vcombine.low %v348_v59, %v352_v61  ;;  %v6466_v51 = vcombine.low %v388_v39, %v392_v41  ;;  %v404_v56 = vld [vmem:[#allocation2 + $0x948] sm:$0xff]  ;;  %v6475_v58 = vcombine.high %v396_v47, %v400_v49 }
  0xca   :  { %v448_v39 = vld [vmem:[#allocation2 + $0xaa8] sm:$0xff] }
  0xcb   :  { %3303 = vmatpush1.bf16.msra.mxu0 %v6360_v2  ;;  %3467 = vmatpush1.bf16.msra.mxu1 %v6362_v3  ;;  %v359_v2 = vld [vmem:[#allocation2 + $0x7e0] sm:$0xff]  ;;  %v356_v3 = vld [vmem:[#allocation2 + $0x7c8] sm:$0xff] }
  0xcc   :  { %3304 = vmatprep.subr.bf16.mxu0 %v6369_v4  ;;  %3468 = vmatprep.subr.bf16.mxu1 %v6371_v8  ;;  %v6427_v4 = vcombine.high %v348_v59, %v352_v61  ;;  %v6433_v8 = vcombine.high %v355_v1, %v359_v2  ;;  %v6432_v16 = vcombine.low %v355_v1, %v359_v2  ;;  %v408_v59 = vld [vmem:[#allocation2 + $0x968] sm:$0xff] }
  0xcd   :  { %v6474_v61 = vcombine.low %v396_v47, %v400_v49  ;;  %v412_v1 = vld [vmem:[#allocation2 + $0x988] sm:$0xff]  ;;  %v6483_v2 = vcombine.high %v404_v56, %v408_v59 }
  0xce   :  { %v456_v47 = vld [vmem:[#allocation2 + $0xae8] sm:$0xff] }
  0xcf   :  { %3305 = vmatpush1.bf16.msra.mxu0 %v6368_v10  ;;  %3469 = vmatpush1.bf16.msra.mxu1 %v6370_v11  ;;  %v367_v10 = vld [vmem:[#allocation2 + $0x820] sm:$0xff]  ;;  %v364_v11 = vld [vmem:[#allocation2 + $0x808] sm:$0xff] }
  0xd0   :  { %3306 = vmatprep.subr.bf16.mxu0 %v6377_v13  ;;  %3470 = vmatprep.subr.bf16.mxu1 %v6379_v18  ;;  %v6435_v13 = vcombine.high %v356_v3, %v360_v5  ;;  %v6434_v18 = vcombine.low %v356_v3, %v360_v5  ;;  %v6441_v19 = vcombine.high %v363_v9, %v367_v10  ;;  %v416_v3 = vld [vmem:[#allocation2 + $0x9a8] sm:$0xff] }
  0xd1   :  { %v6443_v53 = vcombine.high %v364_v11, %v368_v14  ;;  %v6442_v27 = vcombine.low %v364_v11, %v368_v14  ;;  %v6482_v5 = vcombine.low %v404_v56, %v408_v59  ;;  %v424_v11 = vld [vmem:[#allocation2 + $0x9e8] sm:$0xff]  ;;  %v6490_v14 = vcombine.low %v412_v1, %v416_v3 }
  0xd2   :  { %v464_v56 = vld [vmem:[#allocation2 + $0xb28] sm:$0xff] }
  0xd3   :  { %3307 = vmatpush1.bf16.msra.mxu0 %v6376_v20  ;;  %3471 = vmatpush1.bf16.msra.mxu1 %v6378_v21  ;;  %v375_v20 = vld [vmem:[#allocation2 + $0x860] sm:$0xff]  ;;  %v372_v21 = vld [vmem:[#allocation2 + $0x848] sm:$0xff] }
  0xd4   :  { %3308 = vmatprep.subr.bf16.mxu0 %v6385_v22  ;;  %3472 = vmatprep.subr.bf16.mxu1 %v6387_v26  ;;  %v376_v22 = vld [vmem:[#allocation2 + $0x868] sm:$0xff]  ;;  %v6440_v26 = vcombine.low %v363_v9, %v367_v10  ;;  %v6448_v15 = vcombine.low %v371_v17, %v375_v20  ;;  %v6491_v10 = vcombine.high %v412_v1, %v416_v3 }
  0xd5   :  { %v6451_v32 = vcombine.high %v372_v21, %v376_v22  ;;  %v6450_v35 = vcombine.low %v372_v21, %v376_v22  ;;  %v420_v9 = vld [vmem:[#allocation2 + $0x9c8] sm:$0xff] }
  0xd6   :  { %v432_v21 = vld [vmem:[#allocation2 + $0xa28] sm:$0xff] }
  0xd7   :  { %3309 = vmatpush1.bf16.msra.mxu0 %v6384_v28  ;;  %3473 = vmatpush1.bf16.msra.mxu1 %v6386_v29  ;;  %v6449_v28 = vcombine.high %v371_v17, %v375_v20  ;;  %v379_v29 = vld [vmem:[#allocation2 + $0x880] sm:$0xff]  ;;  %v6499_v20 = vcombine.high %v420_v9, %v424_v11  ;;  %v472_v1 = vld [vmem:[#allocation2 + $0xb68] sm:$0xff] }
  0xd8   :  { %3310 = vmatprep.subr.bf16.mxu0 %v6393_v30  ;;  %3474 = vmatprep.subr.bf16.mxu1 %v6395_v34  ;;  %v383_v30 = vld [vmem:[#allocation2 + $0x8a0] sm:$0xff]  ;;  %v7857_v34 = vcombine.high %v7849_v24, %v7849_v24 }
  0xd9   :  { %v427_v17 = vld [vmem:[#allocation2 + $0xa00] sm:$0xff] }
  0xdb   :  { %3311 = vmatpush1.bf16.msra.mxu0 %v6392_v36  ;;  %3475 = vmatpush1.bf16.msra.mxu1 %v6394_v37  ;;  %v6457_v36 = vcombine.high %v379_v29, %v383_v30  ;;  %v387_v37 = vld [vmem:[#allocation2 + $0x8c0] sm:$0xff] }
  0xdc   :  { %3312 = vmatprep.subr.bf16.mxu0 %v6401_v38  ;;  %3476 = vmatprep.subr.bf16.mxu1 %v6403_v42  ;;  %v391_v38 = vld [vmem:[#allocation2 + $0x8e0] sm:$0xff]  ;;  %v6456_v42 = vcombine.low %v379_v29, %v383_v30  ;;  %v436_v29 = vld [vmem:[#allocation2 + $0xa48] sm:$0xff] }
  0xdd   :  { %v6514_v41 = vcombine.low %v436_v29, %v440_v31 }
  0xdf   :  { %3313 = vmatpush1.bf16.msra.mxu0 %v6400_v44  ;;  %3477 = vmatpush1.bf16.msra.mxu1 %v6402_v45  ;;  %v6465_v44 = vcombine.high %v387_v37, %v391_v38  ;;  %v395_v45 = vld [vmem:[#allocation2 + $0x900] sm:$0xff] }
  0xe0   :  { %3314 = vmatprep.subr.bf16.mxu0 %v6409_v46  ;;  %3478 = vmatprep.subr.bf16.mxu1 %v6411_v50  ;;  %v399_v46 = vld [vmem:[#allocation2 + $0x920] sm:$0xff]  ;;  %v6464_v50 = vcombine.low %v387_v37, %v391_v38  ;;  %v444_v37 = vld [vmem:[#allocation2 + $0xa88] sm:$0xff]  ;;  %v6515_v38 = vcombine.high %v436_v29, %v440_v31 }
  0xe1   :  { %v6522_v49 = vcombine.low %v444_v37, %v448_v39  ;;  %v496_v29 = vld [vmem:[#allocation2 + $0xc28] sm:$0xff]  ;;  %v499_v31 = vld [vmem:[#allocation2 + $0xc40] sm:$0xff] }
  0xe3   :  { %3315 = vmatpush1.bf16.msra.mxu0 %v6408_v52  ;;  %3479 = vmatpush1.bf16.msra.mxu1 %v6410_v54  ;;  %v6473_v52 = vcombine.high %v395_v45, %v399_v46  ;;  %v403_v54 = vld [vmem:[#allocation2 + $0x940] sm:$0xff] }
  0xe4   :  { %3316 = vmatprep.subr.bf16.mxu0 %v6417_v55  ;;  %3480 = vmatprep.subr.bf16.mxu1 %v6419_v60  ;;  %v407_v55 = vld [vmem:[#allocation2 + $0x960] sm:$0xff]  ;;  %v6472_v60 = vcombine.low %v395_v45, %v399_v46  ;;  %v452_v45 = vld [vmem:[#allocation2 + $0xac8] sm:$0xff]  ;;  %v6523_v46 = vcombine.high %v444_v37, %v448_v39  ;;  %v7870_v39 = vcombine.low %v7849_v24, %v7849_v24 }
  0xe5   :  { %v6530_v59 = vcombine.low %v452_v45, %v456_v47 }
  0xe7   :  { %3317 = vmatpush1.bf16.msra.mxu0 %v6416_v62  ;;  %3481 = vmatpush1.bf16.msra.mxu1 %v6418_v63  ;;  %v6481_v62 = vcombine.high %v403_v54, %v407_v55  ;;  %v411_v63 = vld [vmem:[#allocation2 + $0x980] sm:$0xff] }
  0xe8   :  { %3318 = vmatprep.subr.bf16.mxu0 %v6425_v0  ;;  %3482 = vmatprep.subr.bf16.mxu1 %v6427_v4  ;;  %v415_v0 = vld [vmem:[#allocation2 + $0x9a0] sm:$0xff]  ;;  %v6480_v4 = vcombine.low %v403_v54, %v407_v55  ;;  %v460_v54 = vld [vmem:[#allocation2 + $0xb08] sm:$0xff]  ;;  %v6531_v55 = vcombine.high %v452_v45, %v456_v47 }
  0xe9   :  { %v6538_v3 = vcombine.low %v460_v54, %v464_v56  ;;  %v508_v45 = vld [vmem:[#allocation2 + $0xc88] sm:$0xff] }
  0xea   :  { %v512_v47 = vld [vmem:[#allocation2 + $0xca8] sm:$0xff] }
  0xeb   :  { %3319 = vmatpush1.bf16.msra.mxu0 %v6424_v6  ;;  %3483 = vmatpush1.bf16.msra.mxu1 %v6426_v7  ;;  %v6489_v6 = vcombine.high %v411_v63, %v415_v0  ;;  %v419_v7 = vld [vmem:[#allocation2 + $0x9c0] sm:$0xff] }
  0xec   :  { %3320 = vmatprep.subr.bf16.mxu0 %v6433_v8  ;;  %3484 = vmatprep.subr.bf16.mxu1 %v6435_v13  ;;  %v423_v8 = vld [vmem:[#allocation2 + $0x9e0] sm:$0xff]  ;;  %v6488_v13 = vcombine.low %v411_v63, %v415_v0  ;;  %v468_v63 = vld [vmem:[#allocation2 + $0xb48] sm:$0xff]  ;;  %v6539_v0 = vcombine.high %v460_v54, %v464_v56 }
  0xed   :  { %v6496_v22 = vcombine.low %v419_v7, %v423_v8  ;;  %v516_v54 = vld [vmem:[#allocation2 + $0xcc8] sm:$0xff] }
  0xee   :  { %v520_v56 = vld [vmem:[#allocation2 + $0xce8] sm:$0xff] }
  0xef   :  { %3321 = vmatpush1.bf16.msra.mxu0 %v6432_v16  ;;  %3485 = vmatpush1.bf16.msra.mxu1 %v6434_v18  ;;  %v6497_v16 = vcombine.high %v419_v7, %v423_v8  ;;  %v431_v18 = vld [vmem:[#allocation2 + $0xa20] sm:$0xff]  ;;  %v476_v7 = vld [vmem:[#allocation2 + $0xb88] sm:$0xff]  ;;  %v6547_v8 = vcombine.high %v468_v63, %v472_v1 }
  0xf0   :  { %3331 = vmatprep.subr.bf16.mxu0 %v6441_v19  ;;  %3495 = vmatprep.subr.bf16.mxu1 %v6443_v53  ;;  %v428_v19 = vld [vmem:[#allocation2 + $0xa08] sm:$0xff]  ;;  %v6498_v53 = vcombine.low %v420_v9, %v424_v11  ;;  %v6546_v11 = vcombine.low %v468_v63, %v472_v1 }
  0xf1   :  { %v6507_v30 = vcombine.high %v428_v19, %v432_v21  ;;  %v6506_v33 = vcombine.low %v428_v19, %v432_v21  ;;  %v480_v9 = vld [vmem:[#allocation2 + $0xba8] sm:$0xff] }
  0xf2   :  { %3323 = vmatmul.mubr.bf16.vlgmr.msra.gmra.mrb[0].mxu0 %v7853_v25  ;;  %3487 = vmatmul.mubr.bf16.vlgmr.msra.gmra.mrb[0].mxu1 %v7853_v25  ;;  %v488_v19 = vld [vmem:[#allocation2 + $0xbe8] sm:$0xff]  ;;  %v6554_v21 = vcombine.low %v476_v7, %v480_v9 }
  0xf3   :  { %3332 = vmatpush1.bf16.msra.mxu0 %v6440_v26  ;;  %3496 = vmatpush1.bf16.msra.mxu1 %v6442_v27  ;;  %v6505_v26 = vcombine.high %v427_v17, %v431_v18  ;;  %v435_v27 = vld [vmem:[#allocation2 + $0xa40] sm:$0xff]  ;;  %v524_v63 = vld [vmem:[#allocation2 + $0xd08] sm:$0xff] }
  0xf4   :  { %3333 = vmatprep.subr.bf16.mxu0 %v6449_v28  ;;  %3497 = vmatprep.subr.bf16.mxu1 %v6451_v32  ;;  %v439_v28 = vld [vmem:[#allocation2 + $0xa60] sm:$0xff]  ;;  %v6504_v32 = vcombine.low %v427_v17, %v431_v18  ;;  %v484_v17 = vld [vmem:[#allocation2 + $0xbc8] sm:$0xff]  ;;  %v6555_v18 = vcombine.high %v476_v7, %v480_v9 }
  0xf5   :  { %3363 = vmatprep.mubr.bf16.mxu0 %v7857_v34  ;;  %3527 = vmatprep.mubr.bf16.mxu1 %v7857_v34  ;;  %v528_v1 = vld [vmem:[#allocation2 + $0xd28] sm:$0xff] }
  0xf6   :  { %v532_v7 = vld [vmem:[#allocation2 + $0xd48] sm:$0xff] }
  0xf7   :  { %3334 = vmatpush1.bf16.msra.mxu0 %v6448_v15  ;;  %3498 = vmatpush1.bf16.msra.mxu1 %v6450_v35  ;;  %v6513_v15 = vcombine.high %v435_v27, %v439_v28  ;;  %v443_v35 = vld [vmem:[#allocation2 + $0xa80] sm:$0xff]  ;;  %v536_v9 = vld [vmem:[#allocation2 + $0xd68] sm:$0xff] }
  0xf8   :  { %3335 = vmatprep.subr.bf16.mxu0 %v6457_v36  ;;  %3499 = vmatprep.subr.bf16.mxu1 %v6459_v40  ;;  %v447_v36 = vld [vmem:[#allocation2 + $0xaa0] sm:$0xff]  ;;  %v6512_v40 = vcombine.low %v435_v27, %v439_v28  ;;  %v492_v27 = vld [vmem:[#allocation2 + $0xc08] sm:$0xff]  ;;  %v6563_v28 = vcombine.high %v484_v17, %v488_v19 }
  0xf9   :  { %v6571_v37 = vcombine.high %v492_v27, %v496_v29 }
  0xfb   :  { %3336 = vmatpush1.bf16.msra.mxu0 %v6456_v42  ;;  %3500 = vmatpush1.bf16.msra.mxu1 %v6458_v43  ;;  %v6521_v42 = vcombine.high %v443_v35, %v447_v36  ;;  %v451_v43 = vld [vmem:[#allocation2 + $0xac0] sm:$0xff] }
  0xfc   :  { %3337 = vmatprep.subr.bf16.mxu0 %v6465_v44  ;;  %3501 = vmatprep.subr.bf16.mxu1 %v6467_v48  ;;  %v455_v44 = vld [vmem:[#allocation2 + $0xae0] sm:$0xff]  ;;  %v6520_v48 = vcombine.low %v443_v35, %v447_v36  ;;  %v500_v35 = vld [vmem:[#allocation2 + $0xc48] sm:$0xff] }
  0xfd   :  { %v504_v36 = vld [vmem:[#allocation2 + $0xc68] sm:$0xff] }
  0xff   :  { %3338 = vmatpush1.bf16.msra.mxu0 %v6464_v50  ;;  %3502 = vmatpush1.bf16.msra.mxu1 %v6466_v51  ;;  %v6529_v50 = vcombine.high %v451_v43, %v455_v44  ;;  %v459_v51 = vld [vmem:[#allocation2 + $0xb00] sm:$0xff] }
 0x100   :  { %3339 = vmatprep.subr.bf16.mxu0 %v6473_v52  ;;  %3503 = vmatprep.subr.bf16.mxu1 %v6475_v58  ;;  %v463_v52 = vld [vmem:[#allocation2 + $0xb20] sm:$0xff]  ;;  %v6528_v58 = vcombine.low %v451_v43, %v455_v44 }
 0x101   :  { %v507_v43 = vld [vmem:[#allocation2 + $0xc80] sm:$0xff] }
 0x102   :  { %v511_v44 = vld [vmem:[#allocation2 + $0xca0] sm:$0xff] }
 0x103   :  { %3340 = vmatpush1.bf16.msra.mxu0 %v6472_v60  ;;  %3504 = vmatpush1.bf16.msra.mxu1 %v6474_v61  ;;  %v6537_v60 = vcombine.high %v459_v51, %v463_v52  ;;  %v467_v61 = vld [vmem:[#allocation2 + $0xb40] sm:$0xff] }
 0x104   :  { %3341 = vmatprep.subr.bf16.mxu0 %v6481_v62  ;;  %3505 = vmatprep.subr.bf16.mxu1 %v6483_v2  ;;  %v471_v62 = vld [vmem:[#allocation2 + $0xb60] sm:$0xff]  ;;  %v6536_v2 = vcombine.low %v459_v51, %v463_v52 }
 0x105   :  { %v515_v51 = vld [vmem:[#allocation2 + $0xcc0] sm:$0xff] }
 0x106   :  { %v519_v52 = vld [vmem:[#allocation2 + $0xce0] sm:$0xff] }
 0x107   :  { %3342 = vmatpush1.bf16.msra.mxu0 %v6480_v4  ;;  %3506 = vmatpush1.bf16.msra.mxu1 %v6482_v5  ;;  %v6545_v4 = vcombine.high %v467_v61, %v471_v62  ;;  %v475_v5 = vld [vmem:[#allocation2 + $0xb80] sm:$0xff] }
 0x108   :  { %3343 = vmatprep.subr.bf16.mxu0 %v6489_v6  ;;  %3507 = vmatprep.subr.bf16.mxu1 %v6491_v10  ;;  %v479_v6 = vld [vmem:[#allocation2 + $0xba0] sm:$0xff]  ;;  %v6544_v10 = vcombine.low %v467_v61, %v471_v62 }
 0x109   :  { %v523_v61 = vld [vmem:[#allocation2 + $0xd00] sm:$0xff] }
 0x10a   :  { %v527_v62 = vld [vmem:[#allocation2 + $0xd20] sm:$0xff] }
 0x10b   :  { %3344 = vmatpush1.bf16.msra.mxu0 %v6488_v13  ;;  %3508 = vmatpush1.bf16.msra.mxu1 %v6490_v14  ;;  %v6553_v13 = vcombine.high %v475_v5, %v479_v6  ;;  %v483_v14 = vld [vmem:[#allocation2 + $0xbc0] sm:$0xff] }
 0x10c   :  { %3345 = vmatprep.subr.bf16.mxu0 %v6497_v16  ;;  %3509 = vmatprep.subr.bf16.mxu1 %v6499_v20  ;;  %v487_v16 = vld [vmem:[#allocation2 + $0xbe0] sm:$0xff]  ;;  %v6552_v20 = vcombine.low %v475_v5, %v479_v6 }
 0x10d   :  { %v531_v5 = vld [vmem:[#allocation2 + $0xd40] sm:$0xff] }
 0x10e   :  { %v535_v6 = vld [vmem:[#allocation2 + $0xd60] sm:$0xff] }
 0x10f   :  { %3346 = vmatpush1.bf16.msra.mxu0 %v6496_v22  ;;  %3510 = vmatpush1.bf16.msra.mxu1 %v6498_v53  ;;  %v6561_v22 = vcombine.high %v483_v14, %v487_v16  ;;  %v491_v53 = vld [vmem:[#allocation2 + $0xc00] sm:$0xff] }
 0x110   :  { %3347 = vmatprep.subr.bf16.mxu0 %v6505_v26  ;;  %3511 = vmatprep.subr.bf16.mxu1 %v6507_v30  ;;  %v495_v26 = vld [vmem:[#allocation2 + $0xc20] sm:$0xff]  ;;  %v6560_v30 = vcombine.low %v483_v14, %v487_v16 }
 0x111   :  { %v539_v14 = vld [vmem:[#allocation2 + $0xd80] sm:$0xff] }
 0x112   :  { %v543_v16 = vld [vmem:[#allocation2 + $0xda0] sm:$0xff] }
 0x113   :  { %3348 = vmatpush1.bf16.msra.mxu0 %v6504_v32  ;;  %3512 = vmatpush1.bf16.msra.mxu1 %v6506_v33  ;;  %v6562_v32 = vcombine.low %v484_v17, %v488_v19  ;;  %v6569_v33 = vcombine.high %v491_v53, %v495_v26  ;;  %v540_v17 = vld [vmem:[#allocation2 + $0xd88] sm:$0xff] }
 0x114   :  { %3349 = vmatprep.subr.bf16.mxu0 %v6513_v15  ;;  %3513 = vmatprep.subr.bf16.mxu1 %v6515_v38  ;;  %v503_v15 = vld [vmem:[#allocation2 + $0xc60] sm:$0xff]  ;;  %v7866_v38 = vld [vmem:[%s7955_s0 + $0x18] sm:$0xff]  ;;  %v544_v19 = vld [vmem:[#allocation2 + $0xda8] sm:$0xff] }
 0x115   :  { %v6576_v24 = vcombine.low %v499_v31, %v503_v15 }
 0x117   :  { %3350 = vmatpush1.bf16.msra.mxu0 %v6512_v40  ;;  %3514 = vmatpush1.bf16.msra.mxu1 %v6514_v41  ;;  %v6568_v40 = vcombine.low %v491_v53, %v495_v26  ;;  %v6570_v41 = vcombine.low %v492_v27, %v496_v29  ;;  %v547_v53 = vld [vmem:[#allocation2 + $0xdc0] sm:$0xff]  ;;  %v548_v27 = vld [vmem:[#allocation2 + $0xdc8] sm:$0xff] }
 0x118   :  { %3351 = vmatprep.subr.bf16.mxu0 %v6521_v42  ;;  %3515 = vmatprep.subr.bf16.mxu1 %v6523_v46  ;;  %v6577_v42 = vcombine.high %v499_v31, %v503_v15  ;;  %v6579_v46 = vcombine.high %v500_v35, %v504_v36  ;;  %v551_v26 = vld [vmem:[#allocation2 + $0xde0] sm:$0xff]  ;;  %v552_v29 = vld [vmem:[#allocation2 + $0xde8] sm:$0xff]  ;;  %v6618_v31 = vcombine.low %v540_v17, %v544_v19 }
 0x119   :  { %v559_v15 = vld [vmem:[#allocation2 + $0xe20] sm:$0xff] }
 0x11b   :  { %3352 = vmatpush1.bf16.msra.mxu0 %v6520_v48  ;;  %3516 = vmatpush1.bf16.msra.mxu1 %v6522_v49  ;;  %v7874_v48 = vcombine.high %v7866_v38, %v7866_v38  ;;  %v6578_v49 = vcombine.low %v500_v35, %v504_v36  ;;  %v556_v35 = vld [vmem:[#allocation2 + $0xe08] sm:$0xff]  ;;  %v6627_v36 = vcombine.high %v548_v27, %v552_v29 }
 0x11c   :  { %3353 = vmatprep.subr.bf16.mxu0 %v6529_v50  ;;  %3517 = vmatprep.subr.bf16.mxu1 %v6531_v55  ;;  %v6585_v50 = vcombine.high %v507_v43, %v511_v44  ;;  %v6587_v55 = vcombine.high %v508_v45, %v512_v47 }
 0x11f   :  { %3354 = vmatpush1.bf16.msra.mxu0 %v6528_v58  ;;  %3518 = vmatpush1.bf16.msra.mxu1 %v6530_v59  ;;  %v6584_v58 = vcombine.low %v507_v43, %v511_v44  ;;  %v6586_v59 = vcombine.low %v508_v45, %v512_v47  ;;  %v563_v43 = vld [vmem:[#allocation2 + $0xe40] sm:$0xff]  ;;  %v564_v45 = vld [vmem:[#allocation2 + $0xe48] sm:$0xff] }
 0x120   :  { %3355 = vmatprep.subr.bf16.mxu0 %v6537_v60  ;;  %3519 = vmatprep.subr.bf16.mxu1 %v6539_v0  ;;  %v6593_v60 = vcombine.high %v515_v51, %v519_v52  ;;  %v6595_v0 = vcombine.high %v516_v54, %v520_v56  ;;  %v567_v44 = vld [vmem:[#allocation2 + $0xe60] sm:$0xff]  ;;  %v568_v47 = vld [vmem:[#allocation2 + $0xe68] sm:$0xff] }
 0x123   :  { %3356 = vmatpush1.bf16.msra.mxu0 %v6536_v2  ;;  %3520 = vmatpush1.bf16.msra.mxu1 %v6538_v3  ;;  %v6592_v2 = vcombine.low %v515_v51, %v519_v52  ;;  %v6594_v3 = vcombine.low %v516_v54, %v520_v56  ;;  %v6643_v51 = vcombine.high %v564_v45, %v568_v47  ;;  %v571_v52 = vld [vmem:[#allocation2 + $0xe80] sm:$0xff]  ;;  %v576_v56 = vld [vmem:[#allocation2 + $0xea8] sm:$0xff] }
 0x124   :  { %3357 = vmatprep.subr.bf16.mxu0 %v6545_v4  ;;  %3521 = vmatprep.subr.bf16.mxu1 %v6547_v8  ;;  %v6601_v4 = vcombine.high %v523_v61, %v527_v62  ;;  %v6603_v8 = vcombine.high %v524_v63, %v528_v1  ;;  %v575_v54 = vld [vmem:[#allocation2 + $0xea0] sm:$0xff] }
 0x127   :  { %3358 = vmatpush1.bf16.msra.mxu0 %v6544_v10  ;;  %3522 = vmatpush1.bf16.msra.mxu1 %v6546_v11  ;;  %v6600_v10 = vcombine.low %v523_v61, %v527_v62  ;;  %v6602_v11 = vcombine.low %v524_v63, %v528_v1  ;;  %v579_v62 = vld [vmem:[#allocation2 + $0xec0] sm:$0xff]  ;;  %v584_v1 = vld [vmem:[#allocation2 + $0xee8] sm:$0xff] }
 0x128   :  { %3359 = vmatprep.subr.bf16.mxu0 %v6553_v13  ;;  %3523 = vmatprep.subr.bf16.mxu1 %v6555_v18  ;;  %v6609_v13 = vcombine.high %v531_v5, %v535_v6  ;;  %v6611_v18 = vcombine.high %v532_v7, %v536_v9  ;;  %v583_v63 = vld [vmem:[#allocation2 + $0xee0] sm:$0xff] }
 0x12b   :  { %3360 = vmatpush1.bf16.msra.mxu0 %v6552_v20  ;;  %3524 = vmatpush1.bf16.msra.mxu1 %v6554_v21  ;;  %v6608_v20 = vcombine.low %v531_v5, %v535_v6  ;;  %v6610_v21 = vcombine.low %v532_v7, %v536_v9  ;;  %v587_v6 = vld [vmem:[#allocation2 + $0xf00] sm:$0xff]  ;;  %v592_v9 = vld [vmem:[#allocation2 + $0xf28] sm:$0xff] }
 0x12c   :  { %3361 = vmatprep.subr.bf16.mxu0 %v6561_v22  ;;  %3525 = vmatprep.subr.bf16.mxu1 %v6563_v28  ;;  %v6617_v22 = vcombine.high %v539_v14, %v543_v16  ;;  %v6619_v28 = vcombine.high %v540_v17, %v544_v19  ;;  %v591_v7 = vld [vmem:[#allocation2 + $0xf20] sm:$0xff]  ;;  %v600_v19 = vld [vmem:[#allocation2 + $0xf68] sm:$0xff] }
 0x12d   :  { %v599_v17 = vld [vmem:[#allocation2 + $0xf60] sm:$0xff] }
 0x12f   :  { %3362 = vmatpush1.bf16.msra.mxu0 %v6560_v30  ;;  %3526 = vmatpush1.bf16.msra.mxu1 %v6562_v32  ;;  %v6616_v30 = vcombine.low %v539_v14, %v543_v16  ;;  %v6625_v32 = vcombine.high %v547_v53, %v551_v26  ;;  %v595_v16 = vld [vmem:[#allocation2 + $0xf40] sm:$0xff] }
 0x130   :  { %3372 = vmatprep.subr.bf16.mxu0 %v6569_v33  ;;  %3536 = vmatprep.subr.bf16.mxu1 %v6571_v37  ;;  %v555_v33 = vld [vmem:[#allocation2 + $0xe00] sm:$0xff]  ;;  %v560_v37 = vld [vmem:[#allocation2 + $0xe28] sm:$0xff] }
 0x132   :  { %3364 = vmatmul.mubr.bf16.vlgmr.msra.gmra.mrb[0].mxu0 %v7870_v39  ;;  %3528 = vmatmul.mubr.bf16.vlgmr.msra.gmra.mrb[0].mxu1 %v7870_v39 }
 0x133   :  { %3373 = vmatpush1.bf16.msra.mxu0 %v6568_v40  ;;  %3537 = vmatpush1.bf16.msra.mxu1 %v6570_v41  ;;  %v6624_v40 = vcombine.low %v547_v53, %v551_v26  ;;  %v6626_v41 = vcombine.low %v548_v27, %v552_v29  ;;  %v603_v26 = vld [vmem:[#allocation2 + $0xf80] sm:$0xff]  ;;  %v608_v29 = vld [vmem:[#allocation2 + $0xfa8] sm:$0xff] }
 0x134   :  { %3374 = vmatprep.subr.bf16.mxu0 %v6577_v42  ;;  %3538 = vmatprep.subr.bf16.mxu1 %v6579_v46  ;;  %v6633_v42 = vcombine.high %v555_v33, %v559_v15  ;;  %v6635_v46 = vcombine.high %v556_v35, %v560_v37  ;;  %v607_v27 = vld [vmem:[#allocation2 + $0xfa0] sm:$0xff] }
 0x135   :  { %3404 = vmatprep.mubr.bf16.mxu0 %v7874_v48  ;;  %3568 = vmatprep.mubr.bf16.mxu1 %v7874_v48 }
 0x137   :  { %3375 = vmatpush1.bf16.msra.mxu0 %v6576_v24  ;;  %3539 = vmatpush1.bf16.msra.mxu1 %v6578_v49  ;;  %v6632_v24 = vcombine.low %v555_v33, %v559_v15  ;;  %v6634_v49 = vcombine.low %v556_v35, %v560_v37  ;;  %v611_v15 = vld [vmem:[#allocation2 + $0xfc0] sm:$0xff]  ;;  %v616_v37 = vld [vmem:[#allocation2 + $0xfe8] sm:$0xff] }
 0x138   :  { %3376 = vmatprep.subr.bf16.mxu0 %v6585_v50  ;;  %3540 = vmatprep.subr.bf16.mxu1 %v6587_v55  ;;  %v6641_v50 = vcombine.high %v563_v43, %v567_v44  ;;  %v572_v55 = vld [vmem:[#allocation2 + $0xe88] sm:$0xff]  ;;  %v615_v35 = vld [vmem:[#allocation2 + $0xfe0] sm:$0xff] }
 0x139   :  { %v6651_v61 = vcombine.high %v572_v55, %v576_v56 }
 0x13b   :  { %3377 = vmatpush1.bf16.msra.mxu0 %v6584_v58  ;;  %3541 = vmatpush1.bf16.msra.mxu1 %v6586_v59  ;;  %v6640_v58 = vcombine.low %v563_v43, %v567_v44  ;;  %v6642_v59 = vcombine.low %v564_v45, %v568_v47  ;;  %v109_v44 = vld [vmem:[#allocation2 + $0x10] sm:$0xff]  ;;  %v114_v47 = vld [vmem:[#allocation2 + $0x38] sm:$0xff] }
 0x13c   :  { %3378 = vmatprep.subr.bf16.mxu0 %v6593_v60  ;;  %3542 = vmatprep.subr.bf16.mxu1 %v6595_v0  ;;  %v6649_v60 = vcombine.high %v571_v52, %v575_v54  ;;  %v580_v0 = vld [vmem:[#allocation2 + $0xec8] sm:$0xff]  ;;  %v113_v45 = vld [vmem:[#allocation2 + $0x30] sm:$0xff] }
 0x13d   :  { %v6659_v5 = vcombine.high %v580_v0, %v584_v1 }
 0x13f   :  { %3379 = vmatpush1.bf16.msra.mxu0 %v6592_v2  ;;  %3543 = vmatpush1.bf16.msra.mxu1 %v6594_v3  ;;  %v6648_v2 = vcombine.low %v571_v52, %v575_v54  ;;  %v6650_v3 = vcombine.low %v572_v55, %v576_v56  ;;  %v117_v52 = vld [vmem:[#allocation2 + $0x50] sm:$0xff]  ;;  %v7882_v55 = vcombine.low %v7866_v38, %v7866_v38  ;;  %v118_v56 = vld [vmem:[#allocation2 + $0x58] sm:$0xff] }
 0x140   :  { %3380 = vmatprep.subr.bf16.mxu0 %v6601_v4  ;;  %3544 = vmatprep.subr.bf16.mxu1 %v6603_v8  ;;  %v6657_v4 = vcombine.high %v579_v62, %v583_v63  ;;  %v588_v8 = vld [vmem:[#allocation2 + $0xf08] sm:$0xff]  ;;  %v121_v54 = vld [vmem:[#allocation2 + $0x70] sm:$0xff] }
 0x141   :  { %v6667_v14 = vcombine.high %v588_v8, %v592_v9  ;;  %v6196_v38 = vcombine.low %v117_v52, %v121_v54 }
 0x143   :  { %3381 = vmatpush1.bf16.msra.mxu0 %v6600_v10  ;;  %3545 = vmatpush1.bf16.msra.mxu1 %v6602_v11  ;;  %v6656_v10 = vcombine.low %v579_v62, %v583_v63  ;;  %v6658_v11 = vcombine.low %v580_v0, %v584_v1  ;;  %v125_v63 = vld [vmem:[#allocation2 + $0x90] sm:$0xff]  ;;  %v126_v1 = vld [vmem:[#allocation2 + $0x98] sm:$0xff] }
 0x144   :  { %3382 = vmatprep.subr.bf16.mxu0 %v6609_v13  ;;  %3546 = vmatprep.subr.bf16.mxu1 %v6611_v18  ;;  %v6665_v13 = vcombine.high %v587_v6, %v591_v7  ;;  %v596_v18 = vld [vmem:[#allocation2 + $0xf48] sm:$0xff]  ;;  %v129_v0 = vld [vmem:[#allocation2 + $0xb0] sm:$0xff] }
 0x145   :  { %v6675_v53 = vcombine.high %v596_v18, %v600_v19 }
 0x147   :  { %3383 = vmatpush1.bf16.msra.mxu0 %v6608_v20  ;;  %3547 = vmatpush1.bf16.msra.mxu1 %v6610_v21  ;;  %v6664_v20 = vcombine.low %v587_v6, %v591_v7  ;;  %v6666_v21 = vcombine.low %v588_v8, %v592_v9  ;;  %v133_v6 = vld [vmem:[#allocation2 + $0xd0] sm:$0xff]  ;;  %v134_v8 = vld [vmem:[#allocation2 + $0xd8] sm:$0xff] }
 0x148   :  { %3384 = vmatprep.subr.bf16.mxu0 %v6617_v22  ;;  %3548 = vmatprep.subr.bf16.mxu1 %v6619_v28  ;;  %v6673_v22 = vcombine.high %v595_v16, %v599_v17  ;;  %v604_v28 = vld [vmem:[#allocation2 + $0xf88] sm:$0xff]  ;;  %v137_v7 = vld [vmem:[#allocation2 + $0xf0] sm:$0xff]  ;;  %v138_v9 = vld [vmem:[#allocation2 + $0xf8] sm:$0xff] }
 0x149   :  { %v6683_v33 = vcombine.high %v604_v28, %v608_v29 }
 0x14b   :  { %3385 = vmatpush1.bf16.msra.mxu0 %v6616_v30  ;;  %3549 = vmatpush1.bf16.msra.mxu1 %v6618_v31  ;;  %v6672_v30 = vcombine.low %v595_v16, %v599_v17  ;;  %v6674_v31 = vcombine.low %v596_v18, %v600_v19  ;;  %v141_v16 = vld [vmem:[#allocation2 + $0x110] sm:$0xff]  ;;  %v142_v18 = vld [vmem:[#allocation2 + $0x118] sm:$0xff] }
 0x14c   :  { %3386 = vmatprep.subr.bf16.mxu0 %v6625_v32  ;;  %3550 = vmatprep.subr.bf16.mxu1 %v6627_v36  ;;  %v6681_v32 = vcombine.high %v603_v26, %v607_v27  ;;  %v612_v36 = vld [vmem:[#allocation2 + $0xfc8] sm:$0xff]  ;;  %v145_v17 = vld [vmem:[#allocation2 + $0x130] sm:$0xff]  ;;  %v146_v19 = vld [vmem:[#allocation2 + $0x138] sm:$0xff] }
 0x14d   :  { %v6691_v43 = vcombine.high %v612_v36, %v616_v37 }
 0x14f   :  { %3387 = vmatpush1.bf16.msra.mxu0 %v6624_v40  ;;  %3551 = vmatpush1.bf16.msra.mxu1 %v6626_v41  ;;  %v6680_v40 = vcombine.low %v603_v26, %v607_v27  ;;  %v6682_v41 = vcombine.low %v604_v28, %v608_v29  ;;  %v153_v26 = vld [vmem:[#allocation2 + $0x170] sm:$0xff]  ;;  %v150_v27 = vld [vmem:[#allocation2 + $0x158] sm:$0xff]  ;;  %v6220_v29 = vcombine.low %v141_v16, %v145_v17 }
 0x150   :  { %3388 = vmatprep.subr.bf16.mxu0 %v6633_v42  ;;  %3552 = vmatprep.subr.bf16.mxu1 %v6635_v46  ;;  %v6689_v42 = vcombine.high %v611_v15, %v615_v35  ;;  %v110_v46 = vld [vmem:[#allocation2 + $0x18] sm:$0xff] }
 0x151   :  { %v154_v28 = vld [vmem:[#allocation2 + $0x178] sm:$0xff] }
 0x153   :  { %3389 = vmatpush1.bf16.msra.mxu0 %v6632_v24  ;;  %3553 = vmatpush1.bf16.msra.mxu1 %v6634_v49  ;;  %v6688_v24 = vcombine.low %v611_v15, %v615_v35  ;;  %v6690_v49 = vcombine.low %v612_v36, %v616_v37  ;;  %v161_v15 = vld [vmem:[#allocation2 + $0x1b0] sm:$0xff]  ;;  %v158_v35 = vld [vmem:[#allocation2 + $0x198] sm:$0xff] }
 0x154   :  { %3390 = vmatprep.subr.bf16.mxu0 %v6641_v50  ;;  %3554 = vmatprep.subr.bf16.mxu1 %v6643_v51  ;;  %v6189_v50 = vcombine.high %v109_v44, %v113_v45  ;;  %v6191_v51 = vcombine.high %v110_v46, %v114_v47  ;;  %v162_v36 = vld [vmem:[#allocation2 + $0x1b8] sm:$0xff] }
 0x157   :  { %3391 = vmatpush1.bf16.msra.mxu0 %v6640_v58  ;;  %3555 = vmatpush1.bf16.msra.mxu1 %v6642_v59  ;;  %v122_v58 = vld [vmem:[#allocation2 + $0x78] sm:$0xff]  ;;  %v6188_v59 = vcombine.low %v109_v44, %v113_v45  ;;  %v169_v44 = vld [vmem:[#allocation2 + $0x1f0] sm:$0xff] }
 0x158   :  { %3392 = vmatprep.subr.bf16.mxu0 %v6649_v60  ;;  %3556 = vmatprep.subr.bf16.mxu1 %v6651_v61  ;;  %v6190_v60 = vcombine.low %v110_v46, %v114_v47  ;;  %v6197_v61 = vcombine.high %v117_v52, %v121_v54  ;;  %v6199_v62 = vcombine.high %v118_v56, %v122_v58  ;;  %v166_v45 = vld [vmem:[#allocation2 + $0x1d8] sm:$0xff]  ;;  %v177_v52 = vld [vmem:[#allocation2 + $0x230] sm:$0xff] }
 0x159   :  { %v170_v46 = vld [vmem:[#allocation2 + $0x1f8] sm:$0xff] }
 0x15a   :  { %v174_v54 = vld [vmem:[#allocation2 + $0x218] sm:$0xff] }
 0x15b   :  { %3393 = vmatpush1.bf16.msra.mxu0 %v6648_v2  ;;  %3557 = vmatpush1.bf16.msra.mxu1 %v6650_v3  ;;  %v130_v2 = vld [vmem:[#allocation2 + $0xb8] sm:$0xff]  ;;  %v6198_v3 = vcombine.low %v118_v56, %v122_v58 }
 0x15c   :  { %3394 = vmatprep.subr.bf16.mxu0 %v6657_v4  ;;  %3558 = vmatprep.subr.bf16.mxu1 %v6659_v5  ;;  %v6205_v4 = vcombine.high %v125_v63, %v129_v0  ;;  %v6207_v5 = vcombine.high %v126_v1, %v130_v2  ;;  %v178_v56 = vld [vmem:[#allocation2 + $0x238] sm:$0xff] }
 0x15f   :  { %3395 = vmatpush1.bf16.msra.mxu0 %v6656_v10  ;;  %3559 = vmatpush1.bf16.msra.mxu1 %v6658_v11  ;;  %v6204_v10 = vcombine.low %v125_v63, %v129_v0  ;;  %v6206_v11 = vcombine.low %v126_v1, %v130_v2  ;;  %v185_v63 = vld [vmem:[#allocation2 + $0x270] sm:$0xff]  ;;  %v182_v0 = vld [vmem:[#allocation2 + $0x258] sm:$0xff] }
 0x160   :  { %3396 = vmatprep.subr.bf16.mxu0 %v6665_v13  ;;  %3560 = vmatprep.subr.bf16.mxu1 %v6667_v14  ;;  %v6213_v13 = vcombine.high %v133_v6, %v137_v7  ;;  %v6215_v14 = vcombine.high %v134_v8, %v138_v9  ;;  %v186_v1 = vld [vmem:[#allocation2 + $0x278] sm:$0xff] }
 0x163   :  { %3397 = vmatpush1.bf16.msra.mxu0 %v6664_v20  ;;  %3561 = vmatpush1.bf16.msra.mxu1 %v6666_v21  ;;  %v6212_v20 = vcombine.low %v133_v6, %v137_v7  ;;  %v6214_v21 = vcombine.low %v134_v8, %v138_v9  ;;  %v193_v6 = vld [vmem:[#allocation2 + $0x2b0] sm:$0xff]  ;;  %v190_v7 = vld [vmem:[#allocation2 + $0x298] sm:$0xff] }
 0x164   :  { %3398 = vmatprep.subr.bf16.mxu0 %v6673_v22  ;;  %3562 = vmatprep.subr.bf16.mxu1 %v6675_v53  ;;  %v6221_v22 = vcombine.high %v141_v16, %v145_v17  ;;  %v149_v53 = vld [vmem:[#allocation2 + $0x150] sm:$0xff]  ;;  %v194_v8 = vld [vmem:[#allocation2 + $0x2b8] sm:$0xff] }
 0x165   :  { %v6228_v37 = vcombine.low %v149_v53, %v153_v26  ;;  %v201_v16 = vld [vmem:[#allocation2 + $0x2f0] sm:$0xff]  ;;  %v198_v17 = vld [vmem:[#allocation2 + $0x2d8] sm:$0xff] }
 0x167   :  { %3399 = vmatpush1.bf16.msra.mxu0 %v6672_v30  ;;  %3563 = vmatpush1.bf16.msra.mxu1 %v6674_v31  ;;  %v6222_v30 = vcombine.low %v142_v18, %v146_v19  ;;  %v6229_v31 = vcombine.high %v149_v53, %v153_v26  ;;  %v209_v53 = vld [vmem:[#allocation2 + $0x330] sm:$0xff]  ;;  %v206_v26 = vld [vmem:[#allocation2 + $0x318] sm:$0xff] }
 0x168   :  { %3400 = vmatprep.subr.bf16.mxu0 %v6681_v32  ;;  %3564 = vmatprep.subr.bf16.mxu1 %v6683_v33  ;;  %v6231_v32 = vcombine.high %v150_v27, %v154_v28  ;;  %v157_v33 = vld [vmem:[#allocation2 + $0x190] sm:$0xff] }
 0x169   :  { %v6236_v47 = vcombine.low %v157_v33, %v161_v15 }
 0x16b   :  { %3401 = vmatpush1.bf16.msra.mxu0 %v6680_v40  ;;  %3565 = vmatpush1.bf16.msra.mxu1 %v6682_v41  ;;  %v6230_v40 = vcombine.low %v150_v27, %v154_v28  ;;  %v6237_v41 = vcombine.high %v157_v33, %v161_v15  ;;  %v210_v27 = vld [vmem:[#allocation2 + $0x338] sm:$0xff]  ;;  %v217_v33 = vld [vmem:[#allocation2 + $0x370] sm:$0xff] }
 0x16c   :  { %3402 = vmatprep.subr.bf16.mxu0 %v6689_v42  ;;  %3566 = vmatprep.subr.bf16.mxu1 %v6691_v43  ;;  %v6239_v42 = vcombine.high %v158_v35, %v162_v36  ;;  %v165_v43 = vld [vmem:[#allocation2 + $0x1d0] sm:$0xff]  ;;  %v214_v15 = vld [vmem:[#allocation2 + $0x358] sm:$0xff] }
 0x16d   :  { %v6244_v58 = vcombine.low %v165_v43, %v169_v44 }
 0x16f   :  { %3403 = vmatpush1.bf16.msra.mxu0 %v6688_v24  ;;  %3567 = vmatpush1.bf16.msra.mxu1 %v6690_v49  ;;  %v6238_v24 = vcombine.low %v158_v35, %v162_v36  ;;  %v6245_v49 = vcombine.high %v165_v43, %v169_v44  ;;  %v218_v35 = vld [vmem:[#allocation2 + $0x378] sm:$0xff]  ;;  %v225_v43 = vld [vmem:[#allocation2 + $0x3b0] sm:$0xff] }
 0x170   :  { %3577 = vmatprep.subr.bf16.mxu0 %v6189_v50  ;;  %3741 = vmatprep.subr.bf16.mxu1 %v6191_v51  ;;  %v6247_v50 = vcombine.high %v166_v45, %v170_v46  ;;  %v173_v51 = vld [vmem:[#allocation2 + $0x210] sm:$0xff]  ;;  %v222_v44 = vld [vmem:[#allocation2 + $0x398] sm:$0xff] }
 0x171   :  { %v6252_v2 = vcombine.low %v173_v51, %v177_v52 }
 0x172   :  { %3405 = vmatmul.mubr.bf16.vlgmr.msra.gmra.mrb[0].mxu0 %v7882_v55  ;;  %3569 = vmatmul.mubr.bf16.vlgmr.msra.gmra.mrb[0].mxu1 %v7882_v55 }
 0x173   :  { %3578 = vmatpush1.bf16.msra.mxu0 %v6188_v59  ;;  %3742 = vmatpush1.bf16.msra.mxu1 %v6190_v60  ;;  %v6246_v59 = vcombine.low %v166_v45, %v170_v46  ;;  %v6253_v60 = vcombine.high %v173_v51, %v177_v52  ;;  %v226_v45 = vld [vmem:[#allocation2 + $0x3b8] sm:$0xff]  ;;  %v233_v51 = vld [vmem:[#allocation2 + $0x3f0] sm:$0xff] }
 0x174   :  { %3579 = vmatprep.subr.bf16.mxu0 %v6197_v61  ;;  %3743 = vmatprep.subr.bf16.mxu1 %v6199_v62  ;;  %v6255_v61 = vcombine.high %v174_v54, %v178_v56  ;;  %v181_v62 = vld [vmem:[#allocation2 + $0x250] sm:$0xff]  ;;  %v230_v52 = vld [vmem:[#allocation2 + $0x3d8] sm:$0xff] }
 0x175   :  { %3609 = vmatprep.mubr.bf16.mxu0 %v7825_v57  ;;  %3773 = vmatprep.mubr.bf16.mxu1 %v7825_v57  ;;  %v6223_v57 = vcombine.high %v142_v18, %v146_v19  ;;  %v6260_v9 = vcombine.low %v181_v62, %v185_v63  ;;  %v202_v18 = vld [vmem:[#allocation2 + $0x2f8] sm:$0xff] }
 0x177   :  { %3580 = vmatpush1.bf16.msra.mxu0 %v6196_v38  ;;  %3744 = vmatpush1.bf16.msra.mxu1 %v6198_v3  ;;  %v6254_v38 = vcombine.low %v174_v54, %v178_v56  ;;  %v6261_v3 = vcombine.high %v181_v62, %v185_v63  ;;  %v234_v54 = vld [vmem:[#allocation2 + $0x3f8] sm:$0xff]  ;;  %v241_v62 = vld [vmem:[#allocation2 + $0x430] sm:$0xff] }
 0x178   :  { %3581 = vmatprep.subr.bf16.mxu0 %v6205_v4  ;;  %3745 = vmatprep.subr.bf16.mxu1 %v6207_v5  ;;  %v6263_v4 = vcombine.high %v182_v0, %v186_v1  ;;  %v189_v5 = vld [vmem:[#allocation2 + $0x290] sm:$0xff]  ;;  %v238_v63 = vld [vmem:[#allocation2 + $0x418] sm:$0xff] }
 0x179   :  { %v6268_v19 = vcombine.low %v189_v5, %v193_v6 }
 0x17b   :  { %3582 = vmatpush1.bf16.msra.mxu0 %v6204_v10  ;;  %3746 = vmatpush1.bf16.msra.mxu1 %v6206_v11  ;;  %v6262_v10 = vcombine.low %v182_v0, %v186_v1  ;;  %v6269_v11 = vcombine.high %v189_v5, %v193_v6  ;;  %v242_v0 = vld [vmem:[#allocation2 + $0x438] sm:$0xff]  ;;  %v249_v5 = vld [vmem:[#allocation2 + $0x470] sm:$0xff] }
 0x17c   :  { %3583 = vmatprep.subr.bf16.mxu0 %v6213_v13  ;;  %3747 = vmatprep.subr.bf16.mxu1 %v6215_v14  ;;  %v6271_v13 = vcombine.high %v190_v7, %v194_v8  ;;  %v197_v14 = vld [vmem:[#allocation2 + $0x2d0] sm:$0xff]  ;;  %v246_v6 = vld [vmem:[#allocation2 + $0x458] sm:$0xff] }
 0x17d   :  { %v6276_v28 = vcombine.low %v197_v14, %v201_v16 }
 0x17f   :  { %3584 = vmatpush1.bf16.msra.mxu0 %v6212_v20  ;;  %3748 = vmatpush1.bf16.msra.mxu1 %v6214_v21  ;;  %v6270_v20 = vcombine.low %v190_v7, %v194_v8  ;;  %v6277_v21 = vcombine.high %v197_v14, %v201_v16  ;;  %v250_v7 = vld [vmem:[#allocation2 + $0x478] sm:$0xff]  ;;  %v257_v14 = vld [vmem:[#allocation2 + $0x4b0] sm:$0xff] }
 0x180   :  { %3585 = vmatprep.subr.bf16.mxu0 %v6221_v22  ;;  %3749 = vmatprep.subr.bf16.mxu1 %v6223_v57  ;;  %v6279_v22 = vcombine.high %v198_v17, %v202_v18  ;;  %v205_v57 = vld [vmem:[#allocation2 + $0x310] sm:$0xff]  ;;  %v254_v16 = vld [vmem:[#allocation2 + $0x498] sm:$0xff] }
 0x181   :  { %v6284_v36 = vcombine.low %v205_v57, %v209_v53 }
 0x183   :  { %3586 = vmatpush1.bf16.msra.mxu0 %v6220_v29  ;;  %3750 = vmatpush1.bf16.msra.mxu1 %v6222_v30  ;;  %v6278_v29 = vcombine.low %v198_v17, %v202_v18  ;;  %v6285_v30 = vcombine.high %v205_v57, %v209_v53  ;;  %v258_v17 = vld [vmem:[#allocation2 + $0x4b8] sm:$0xff]  ;;  %v265_v57 = vld [vmem:[#allocation2 + $0x4f0] sm:$0xff] }
 0x184   :  { %3587 = vmatprep.subr.bf16.mxu0 %v6229_v31  ;;  %3751 = vmatprep.subr.bf16.mxu1 %v6231_v32  ;;  %v6287_v31 = vcombine.high %v206_v26, %v210_v27  ;;  %v213_v32 = vld [vmem:[#allocation2 + $0x350] sm:$0xff]  ;;  %v262_v53 = vld [vmem:[#allocation2 + $0x4d8] sm:$0xff] }
 0x185   :  { %v6292_v46 = vcombine.low %v213_v32, %v217_v33 }
 0x187   :  { %3588 = vmatpush1.bf16.msra.mxu0 %v6228_v37  ;;  %3752 = vmatpush1.bf16.msra.mxu1 %v6230_v40  ;;  %v6286_v37 = vcombine.low %v206_v26, %v210_v27  ;;  %v6293_v40 = vcombine.high %v213_v32, %v217_v33  ;;  %v266_v26 = vld [vmem:[#allocation2 + $0x4f8] sm:$0xff] }
 0x188   :  { %3589 = vmatprep.subr.bf16.mxu0 %v6237_v41  ;;  %3753 = vmatprep.subr.bf16.mxu1 %v6239_v42  ;;  %v6295_v41 = vcombine.high %v214_v15, %v218_v35  ;;  %v221_v42 = vld [vmem:[#allocation2 + $0x390] sm:$0xff]  ;;  %v270_v32 = vld [vmem:[#allocation2 + $0x518] sm:$0xff] }
 0x189   :  { %v6300_v56 = vcombine.low %v221_v42, %v225_v43  ;;  %v274_v33 = vld [vmem:[#allocation2 + $0x538] sm:$0xff] }
 0x18b   :  { %3590 = vmatpush1.bf16.msra.mxu0 %v6236_v47  ;;  %3754 = vmatpush1.bf16.msra.mxu1 %v6238_v24  ;;  %v6294_v47 = vcombine.low %v214_v15, %v218_v35  ;;  %v6301_v24 = vcombine.high %v221_v42, %v225_v43  ;;  %v6342_v35 = vcombine.low %v262_v53, %v266_v26  ;;  %v282_v42 = vld [vmem:[#allocation2 + $0x578] sm:$0xff] }
 0x18c   :  { %3591 = vmatprep.subr.bf16.mxu0 %v6245_v49  ;;  %3755 = vmatprep.subr.bf16.mxu1 %v6247_v50  ;;  %v6303_v49 = vcombine.high %v222_v44, %v226_v45  ;;  %v229_v50 = vld [vmem:[#allocation2 + $0x3d0] sm:$0xff] }
 0x18d   :  { %v6308_v1 = vcombine.low %v229_v50, %v233_v51 }
 0x18f   :  { %3592 = vmatpush1.bf16.msra.mxu0 %v6244_v58  ;;  %3756 = vmatpush1.bf16.msra.mxu1 %v6246_v59  ;;  %v6302_v58 = vcombine.low %v222_v44, %v226_v45  ;;  %v6309_v59 = vcombine.high %v229_v50, %v233_v51  ;;  %v6350_v44 = vcombine.low %v270_v32, %v274_v33  ;;  %v290_v50 = vld [vmem:[#allocation2 + $0x5b8] sm:$0xff] }
 0x190   :  { %3593 = vmatprep.subr.bf16.mxu0 %v6253_v60  ;;  %3757 = vmatprep.subr.bf16.mxu1 %v6255_v61  ;;  %v6311_v60 = vcombine.high %v230_v52, %v234_v54  ;;  %v237_v61 = vld [vmem:[#allocation2 + $0x410] sm:$0xff] }
 0x191   :  { %v6316_v8 = vcombine.low %v237_v61, %v241_v62 }
 0x193   :  { %3594 = vmatpush1.bf16.msra.mxu0 %v6252_v2  ;;  %3758 = vmatpush1.bf16.msra.mxu1 %v6254_v38  ;;  %v6310_v2 = vcombine.low %v230_v52, %v234_v54  ;;  %v6317_v38 = vcombine.high %v237_v61, %v241_v62  ;;  %v298_v61 = vld [vmem:[#allocation2 + $0x5f8] sm:$0xff] }
 0x194   :  { %3595 = vmatprep.subr.bf16.mxu0 %v6261_v3  ;;  %3759 = vmatprep.subr.bf16.mxu1 %v6263_v4  ;;  %v6319_v3 = vcombine.high %v238_v63, %v242_v0  ;;  %v245_v4 = vld [vmem:[#allocation2 + $0x450] sm:$0xff] }
 0x195   :  { %v6324_v18 = vcombine.low %v245_v4, %v249_v5 }
 0x197   :  { %3596 = vmatpush1.bf16.msra.mxu0 %v6260_v9  ;;  %3760 = vmatpush1.bf16.msra.mxu1 %v6262_v10  ;;  %v6318_v9 = vcombine.low %v238_v63, %v242_v0  ;;  %v6325_v10 = vcombine.high %v245_v4, %v249_v5  ;;  %v306_v4 = vld [vmem:[#allocation2 + $0x638] sm:$0xff] }
 0x198   :  { %3597 = vmatprep.subr.bf16.mxu0 %v6269_v11  ;;  %3761 = vmatprep.subr.bf16.mxu1 %v6271_v13  ;;  %v6327_v11 = vcombine.high %v246_v6, %v250_v7  ;;  %v253_v13 = vld [vmem:[#allocation2 + $0x490] sm:$0xff] }
 0x199   :  { %v6332_v27 = vcombine.low %v253_v13, %v257_v14 }
 0x19b   :  { %3598 = vmatpush1.bf16.msra.mxu0 %v6268_v19  ;;  %3762 = vmatpush1.bf16.msra.mxu1 %v6270_v20  ;;  %v6326_v19 = vcombine.low %v246_v6, %v250_v7  ;;  %v6333_v20 = vcombine.high %v253_v13, %v257_v14  ;;  %v314_v13 = vld [vmem:[#allocation2 + $0x678] sm:$0xff] }
 0x19c   :  { %3599 = vmatprep.subr.bf16.mxu0 %v6277_v21  ;;  %3763 = vmatprep.subr.bf16.mxu1 %v6279_v22  ;;  %v6335_v21 = vcombine.high %v254_v16, %v258_v17  ;;  %v261_v22 = vld [vmem:[#allocation2 + $0x4d0] sm:$0xff] }
 0x19d   :  { %v6340_v15 = vcombine.low %v261_v22, %v265_v57 }
 0x19f   :  { %3600 = vmatpush1.bf16.msra.mxu0 %v6276_v28  ;;  %3764 = vmatpush1.bf16.msra.mxu1 %v6278_v29  ;;  %v6341_v28 = vcombine.high %v261_v22, %v265_v57  ;;  %v6343_v29 = vcombine.high %v262_v53, %v266_v26  ;;  %v322_v22 = vld [vmem:[#allocation2 + $0x6b8] sm:$0xff] }
 0x1a0   :  { %3601 = vmatprep.subr.bf16.mxu0 %v6285_v30  ;;  %3765 = vmatprep.subr.bf16.mxu1 %v6287_v31  ;;  %v269_v30 = vld [vmem:[#allocation2 + $0x510] sm:$0xff] }
 0x1a1   :  { %v273_v31 = vld [vmem:[#allocation2 + $0x530] sm:$0xff] }
 0x1a2   :  { %v6348_v43 = vcombine.low %v269_v30, %v273_v31 }
 0x1a3   :  { %3602 = vmatpush1.bf16.msra.mxu0 %v6284_v36  ;;  %3766 = vmatpush1.bf16.msra.mxu1 %v6286_v37  ;;  %v6349_v36 = vcombine.high %v269_v30, %v273_v31  ;;  %v277_v37 = vld [vmem:[#allocation2 + $0x550] sm:$0xff]  ;;  %v330_v30 = vld [vmem:[#allocation2 + $0x6f8] sm:$0xff] }
 0x1a4   :  { %3603 = vmatprep.subr.bf16.mxu0 %v6293_v40  ;;  %3767 = vmatprep.subr.bf16.mxu1 %v6295_v41  ;;  %v281_v40 = vld [vmem:[#allocation2 + $0x570] sm:$0xff]  ;;  %v278_v41 = vld [vmem:[#allocation2 + $0x558] sm:$0xff] }
 0x1a5   :  { %v6357_v45 = vcombine.high %v277_v37, %v281_v40  ;;  %v6356_v51 = vcombine.low %v277_v37, %v281_v40  ;;  %v6358_v52 = vcombine.low %v278_v41, %v282_v42  ;;  %v338_v37 = vld [vmem:[#allocation2 + $0x738] sm:$0xff] }
 0x1a7   :  { %3604 = vmatpush1.bf16.msra.mxu0 %v6292_v46  ;;  %3768 = vmatpush1.bf16.msra.mxu1 %v6294_v47  ;;  %v6359_v46 = vcombine.high %v278_v41, %v282_v42  ;;  %v285_v47 = vld [vmem:[#allocation2 + $0x590] sm:$0xff] }
 0x1a8   :  { %3605 = vmatprep.subr.bf16.mxu0 %v6301_v24  ;;  %3769 = vmatprep.subr.bf16.mxu1 %v6303_v49  ;;  %v289_v24 = vld [vmem:[#allocation2 + $0x5b0] sm:$0xff]  ;;  %v286_v49 = vld [vmem:[#allocation2 + $0x598] sm:$0xff] }
 0x1a9   :  { %v6365_v54 = vcombine.high %v285_v47, %v289_v24  ;;  %v6364_v62 = vcombine.low %v285_v47, %v289_v24  ;;  %v6366_v63 = vcombine.low %v286_v49, %v290_v50  ;;  %v346_v47 = vld [vmem:[#allocation2 + $0x778] sm:$0xff] }
 0x1ab   :  { %3606 = vmatpush1.bf16.msra.mxu0 %v6300_v56  ;;  %3770 = vmatpush1.bf16.msra.mxu1 %v6302_v58  ;;  %v6367_v56 = vcombine.high %v286_v49, %v290_v50  ;;  %v293_v58 = vld [vmem:[#allocation2 + $0x5d0] sm:$0xff] }
 0x1ac   :  { %3607 = vmatprep.subr.bf16.mxu0 %v6309_v59  ;;  %3771 = vmatprep.subr.bf16.mxu1 %v6311_v60  ;;  %v297_v59 = vld [vmem:[#allocation2 + $0x5f0] sm:$0xff]  ;;  %v294_v60 = vld [vmem:[#allocation2 + $0x5d8] sm:$0xff] }
 0x1ad   :  { %v6373_v0 = vcombine.high %v293_v58, %v297_v59  ;;  %v6372_v5 = vcombine.low %v293_v58, %v297_v59  ;;  %v6374_v6 = vcombine.low %v294_v60, %v298_v61  ;;  %v354_v58 = vld [vmem:[#allocation2 + $0x7b8] sm:$0xff] }
 0x1af   :  { %3608 = vmatpush1.bf16.msra.mxu0 %v6308_v1  ;;  %3772 = vmatpush1.bf16.msra.mxu1 %v6310_v2  ;;  %v6375_v1 = vcombine.high %v294_v60, %v298_v61  ;;  %v301_v2 = vld [vmem:[#allocation2 + $0x610] sm:$0xff] }
 0x1b0   :  { %3618 = vmatprep.subr.bf16.mxu0 %v6317_v38  ;;  %3782 = vmatprep.subr.bf16.mxu1 %v6319_v3  ;;  %v305_v38 = vld [vmem:[#allocation2 + $0x630] sm:$0xff]  ;;  %v302_v3 = vld [vmem:[#allocation2 + $0x618] sm:$0xff] }
 0x1b1   :  { %v6381_v7 = vcombine.high %v301_v2, %v305_v38  ;;  %v6380_v14 = vcombine.low %v301_v2, %v305_v38  ;;  %v362_v2 = vld [vmem:[#allocation2 + $0x7f8] sm:$0xff] }
 0x1b2   :  { %3610 = vmatmul.mubr.bf16.vlgmr.msra.gmra.mrb[4].mxu0 %v7831_v12  ;;  %3774 = vmatmul.mubr.bf16.vlgmr.msra.gmra.mrb[4].mxu1 %v7831_v12  ;;  %v6334_v12 = vcombine.low %v254_v16, %v258_v17  ;;  %v6382_v16 = vcombine.low %v302_v3, %v306_v4 }
 0x1b3   :  { %3619 = vmatpush1.bf16.msra.mxu0 %v6316_v8  ;;  %3783 = vmatpush1.bf16.msra.mxu1 %v6318_v9  ;;  %v6383_v8 = vcombine.high %v302_v3, %v306_v4  ;;  %v309_v9 = vld [vmem:[#allocation2 + $0x650] sm:$0xff] }
 0x1b4   :  { %3620 = vmatprep.subr.bf16.mxu0 %v6325_v10  ;;  %3784 = vmatprep.subr.bf16.mxu1 %v6327_v11  ;;  %v313_v10 = vld [vmem:[#allocation2 + $0x670] sm:$0xff]  ;;  %v310_v11 = vld [vmem:[#allocation2 + $0x658] sm:$0xff] }
 0x1b5   :  { %3650 = vmatprep.mubr.bf16.mxu0 %v7840_v23  ;;  %3814 = vmatprep.mubr.bf16.mxu1 %v7840_v23  ;;  %v6351_v23 = vcombine.high %v270_v32, %v274_v33  ;;  %v6389_v17 = vcombine.high %v309_v9, %v313_v10  ;;  %v6388_v57 = vcombine.low %v309_v9, %v313_v10  ;;  %v370_v9 = vld [vmem:[#allocation2 + $0x838] sm:$0xff] }
 0x1b6   :  { %v6390_v53 = vcombine.low %v310_v11, %v314_v13 }
 0x1b7   :  { %3621 = vmatpush1.bf16.msra.mxu0 %v6324_v18  ;;  %3785 = vmatpush1.bf16.msra.mxu1 %v6326_v19  ;;  %v6391_v18 = vcombine.high %v310_v11, %v314_v13  ;;  %v317_v19 = vld [vmem:[#allocation2 + $0x690] sm:$0xff] }
 0x1b8   :  { %3622 = vmatprep.subr.bf16.mxu0 %v6333_v20  ;;  %3786 = vmatprep.subr.bf16.mxu1 %v6335_v21  ;;  %v321_v20 = vld [vmem:[#allocation2 + $0x6b0] sm:$0xff]  ;;  %v318_v21 = vld [vmem:[#allocation2 + $0x698] sm:$0xff] }
 0x1b9   :  { %v6397_v26 = vcombine.high %v317_v19, %v321_v20  ;;  %v6396_v31 = vcombine.low %v317_v19, %v321_v20  ;;  %v6398_v32 = vcombine.low %v318_v21, %v322_v22  ;;  %v378_v19 = vld [vmem:[#allocation2 + $0x878] sm:$0xff] }
 0x1bb   :  { %3623 = vmatpush1.bf16.msra.mxu0 %v6332_v27  ;;  %3787 = vmatpush1.bf16.msra.mxu1 %v6334_v12  ;;  %v6399_v27 = vcombine.high %v318_v21, %v322_v22  ;;  %v325_v12 = vld [vmem:[#allocation2 + $0x6d0] sm:$0xff] }
 0x1bc   :  { %3624 = vmatprep.subr.bf16.mxu0 %v6341_v28  ;;  %3788 = vmatprep.subr.bf16.mxu1 %v6343_v29  ;;  %v329_v28 = vld [vmem:[#allocation2 + $0x6f0] sm:$0xff]  ;;  %v326_v29 = vld [vmem:[#allocation2 + $0x6d8] sm:$0xff] }
 0x1bd   :  { %v6405_v33 = vcombine.high %v325_v12, %v329_v28  ;;  %v6404_v40 = vcombine.low %v325_v12, %v329_v28  ;;  %v6406_v41 = vcombine.low %v326_v29, %v330_v30  ;;  %v386_v12 = vld [vmem:[#allocation2 + $0x8b8] sm:$0xff] }
 0x1bf   :  { %3625 = vmatpush1.bf16.msra.mxu0 %v6340_v15  ;;  %3789 = vmatpush1.bf16.msra.mxu1 %v6342_v35  ;;  %v6407_v15 = vcombine.high %v326_v29, %v330_v30  ;;  %v333_v35 = vld [vmem:[#allocation2 + $0x710] sm:$0xff] }
 0x1c0   :  { %3626 = vmatprep.subr.bf16.mxu0 %v6349_v36  ;;  %3790 = vmatprep.subr.bf16.mxu1 %v6351_v23  ;;  %v337_v36 = vld [vmem:[#allocation2 + $0x730] sm:$0xff]  ;;  %v334_v23 = vld [vmem:[#allocation2 + $0x718] sm:$0xff] }
 0x1c1   :  { %v6413_v42 = vcombine.high %v333_v35, %v337_v36  ;;  %v6412_v24 = vcombine.low %v333_v35, %v337_v36  ;;  %v6414_v49 = vcombine.low %v334_v23, %v338_v37  ;;  %v394_v35 = vld [vmem:[#allocation2 + $0x8f8] sm:$0xff] }
 0x1c3   :  { %3627 = vmatpush1.bf16.msra.mxu0 %v6348_v43  ;;  %3791 = vmatpush1.bf16.msra.mxu1 %v6350_v44  ;;  %v6415_v43 = vcombine.high %v334_v23, %v338_v37  ;;  %v341_v44 = vld [vmem:[#allocation2 + $0x750] sm:$0xff] }
 0x1c4   :  { %3628 = vmatprep.subr.bf16.mxu0 %v6357_v45  ;;  %3792 = vmatprep.subr.bf16.mxu1 %v6359_v46  ;;  %v345_v45 = vld [vmem:[#allocation2 + $0x770] sm:$0xff]  ;;  %v342_v46 = vld [vmem:[#allocation2 + $0x758] sm:$0xff] }
 0x1c5   :  { %v6421_v50 = vcombine.high %v341_v44, %v345_v45  ;;  %v6420_v59 = vcombine.low %v341_v44, %v345_v45  ;;  %v6422_v60 = vcombine.low %v342_v46, %v346_v47 }
 0x1c7   :  { %3629 = vmatpush1.bf16.msra.mxu0 %v6356_v51  ;;  %3793 = vmatpush1.bf16.msra.mxu1 %v6358_v52  ;;  %v6423_v51 = vcombine.high %v342_v46, %v346_v47  ;;  %v349_v52 = vld [vmem:[#allocation2 + $0x790] sm:$0xff] }
 0x1c8   :  { %3630 = vmatprep.subr.bf16.mxu0 %v6365_v54  ;;  %3794 = vmatprep.subr.bf16.mxu1 %v6367_v56  ;;  %v353_v54 = vld [vmem:[#allocation2 + $0x7b0] sm:$0xff]  ;;  %v350_v56 = vld [vmem:[#allocation2 + $0x798] sm:$0xff] }
 0x1c9   :  { %v6429_v61 = vcombine.high %v349_v52, %v353_v54  ;;  %v6428_v38 = vcombine.low %v349_v52, %v353_v54  ;;  %v6430_v3 = vcombine.low %v350_v56, %v354_v58  ;;  %v405_v47 = vld [vmem:[#allocation2 + $0x950] sm:$0xff] }
 0x1cb   :  { %3631 = vmatpush1.bf16.msra.mxu0 %v6364_v62  ;;  %3795 = vmatpush1.bf16.msra.mxu1 %v6366_v63  ;;  %v6431_v62 = vcombine.high %v350_v56, %v354_v58  ;;  %v357_v63 = vld [vmem:[#allocation2 + $0x7d0] sm:$0xff] }
 0x1cc   :  { %3632 = vmatprep.subr.bf16.mxu0 %v6373_v0  ;;  %3796 = vmatprep.subr.bf16.mxu1 %v6375_v1  ;;  %v361_v0 = vld [vmem:[#allocation2 + $0x7f0] sm:$0xff]  ;;  %v358_v1 = vld [vmem:[#allocation2 + $0x7d8] sm:$0xff] }
 0x1cd   :  { %v6437_v4 = vcombine.high %v357_v63, %v361_v0  ;;  %v6436_v10 = vcombine.low %v357_v63, %v361_v0  ;;  %v6438_v11 = vcombine.low %v358_v1, %v362_v2  ;;  %v413_v58 = vld [vmem:[#allocation2 + $0x990] sm:$0xff] }
 0x1cf   :  { %3633 = vmatpush1.bf16.msra.mxu0 %v6372_v5  ;;  %3797 = vmatpush1.bf16.msra.mxu1 %v6374_v6  ;;  %v6439_v5 = vcombine.high %v358_v1, %v362_v2  ;;  %v365_v6 = vld [vmem:[#allocation2 + $0x810] sm:$0xff] }
 0x1d0   :  { %3634 = vmatprep.subr.bf16.mxu0 %v6381_v7  ;;  %3798 = vmatprep.subr.bf16.mxu1 %v6383_v8  ;;  %v369_v7 = vld [vmem:[#allocation2 + $0x830] sm:$0xff]  ;;  %v366_v8 = vld [vmem:[#allocation2 + $0x818] sm:$0xff] }
 0x1d1   :  { %v6445_v13 = vcombine.high %v365_v6, %v369_v7  ;;  %v6444_v20 = vcombine.low %v365_v6, %v369_v7  ;;  %v6446_v21 = vcombine.low %v366_v8, %v370_v9  ;;  %v421_v2 = vld [vmem:[#allocation2 + $0x9d0] sm:$0xff] }
 0x1d3   :  { %3635 = vmatpush1.bf16.msra.mxu0 %v6380_v14  ;;  %3799 = vmatpush1.bf16.msra.mxu1 %v6382_v16  ;;  %v6447_v14 = vcombine.high %v366_v8, %v370_v9  ;;  %v373_v16 = vld [vmem:[#allocation2 + $0x850] sm:$0xff] }
 0x1d4   :  { %3636 = vmatprep.subr.bf16.mxu0 %v6389_v17  ;;  %3800 = vmatprep.subr.bf16.mxu1 %v6391_v18  ;;  %v377_v17 = vld [vmem:[#allocation2 + $0x870] sm:$0xff]  ;;  %v374_v18 = vld [vmem:[#allocation2 + $0x858] sm:$0xff] }
 0x1d5   :  { %v6453_v22 = vcombine.high %v373_v16, %v377_v17  ;;  %v6452_v28 = vcombine.low %v373_v16, %v377_v17  ;;  %v6454_v29 = vcombine.low %v374_v18, %v378_v19  ;;  %v429_v9 = vld [vmem:[#allocation2 + $0xa10] sm:$0xff] }
 0x1d7   :  { %3637 = vmatpush1.bf16.msra.mxu0 %v6388_v57  ;;  %3801 = vmatpush1.bf16.msra.mxu1 %v6390_v53  ;;  %v6455_v57 = vcombine.high %v374_v18, %v378_v19  ;;  %v381_v53 = vld [vmem:[#allocation2 + $0x890] sm:$0xff] }
 0x1d8   :  { %3638 = vmatprep.subr.bf16.mxu0 %v6397_v26  ;;  %3802 = vmatprep.subr.bf16.mxu1 %v6399_v27  ;;  %v385_v26 = vld [vmem:[#allocation2 + $0x8b0] sm:$0xff]  ;;  %v382_v27 = vld [vmem:[#allocation2 + $0x898] sm:$0xff] }
 0x1d9   :  { %v6461_v30 = vcombine.high %v381_v53, %v385_v26  ;;  %v6460_v36 = vcombine.low %v381_v53, %v385_v26  ;;  %v437_v19 = vld [vmem:[#allocation2 + $0xa50] sm:$0xff] }
 0x1db   :  { %3639 = vmatpush1.bf16.msra.mxu0 %v6396_v31  ;;  %3803 = vmatpush1.bf16.msra.mxu1 %v6398_v32  ;;  %v6463_v31 = vcombine.high %v382_v27, %v386_v12  ;;  %v389_v32 = vld [vmem:[#allocation2 + $0x8d0] sm:$0xff] }
 0x1dc   :  { %3640 = vmatprep.subr.bf16.mxu0 %v6405_v33  ;;  %3804 = vmatprep.subr.bf16.mxu1 %v6407_v15  ;;  %v393_v33 = vld [vmem:[#allocation2 + $0x8f0] sm:$0xff]  ;;  %v390_v15 = vld [vmem:[#allocation2 + $0x8d8] sm:$0xff] }
 0x1dd   :  { %v6469_v23 = vcombine.high %v389_v32, %v393_v33  ;;  %v6471_v37 = vcombine.high %v390_v15, %v394_v35  ;;  %v6468_v44 = vcombine.low %v389_v32, %v393_v33  ;;  %v6470_v45 = vcombine.low %v390_v15, %v394_v35  ;;  %v453_v35 = vld [vmem:[#allocation2 + $0xad0] sm:$0xff] }
 0x1df   :  { %3641 = vmatpush1.bf16.msra.mxu0 %v6404_v40  ;;  %3805 = vmatpush1.bf16.msra.mxu1 %v6406_v41  ;;  %v397_v40 = vld [vmem:[#allocation2 + $0x910] sm:$0xff] }
 0x1e0   :  { %3642 = vmatprep.subr.bf16.mxu0 %v6413_v42  ;;  %3806 = vmatprep.subr.bf16.mxu1 %v6415_v43  ;;  %v401_v41 = vld [vmem:[#allocation2 + $0x930] sm:$0xff]  ;;  %v398_v42 = vld [vmem:[#allocation2 + $0x918] sm:$0xff] }
 0x1e1   :  { %v402_v43 = vld [vmem:[#allocation2 + $0x938] sm:$0xff]  ;;  %v6477_v46 = vcombine.high %v397_v40, %v401_v41 }
 0x1e2   :  { %v6478_v52 = vcombine.low %v398_v42, %v402_v43 }
 0x1e3   :  { %3643 = vmatpush1.bf16.msra.mxu0 %v6412_v24  ;;  %3807 = vmatpush1.bf16.msra.mxu1 %v6414_v49  ;;  %v409_v24 = vld [vmem:[#allocation2 + $0x970] sm:$0xff]  ;;  %v406_v49 = vld [vmem:[#allocation2 + $0x958] sm:$0xff] }
 0x1e4   :  { %3644 = vmatprep.subr.bf16.mxu0 %v6421_v50  ;;  %3808 = vmatprep.subr.bf16.mxu1 %v6423_v51  ;;  %v410_v50 = vld [vmem:[#allocation2 + $0x978] sm:$0xff]  ;;  %v6476_v51 = vcombine.low %v397_v40, %v401_v41  ;;  %v6485_v54 = vcombine.high %v405_v47, %v409_v24 }
 0x1e5   :  { %v6487_v56 = vcombine.high %v406_v49, %v410_v50  ;;  %v6486_v63 = vcombine.low %v406_v49, %v410_v50  ;;  %v469_v50 = vld [vmem:[#allocation2 + $0xb50] sm:$0xff] }
 0x1e7   :  { %3645 = vmatpush1.bf16.msra.mxu0 %v6420_v59  ;;  %3809 = vmatpush1.bf16.msra.mxu1 %v6422_v60  ;;  %v417_v59 = vld [vmem:[#allocation2 + $0x9b0] sm:$0xff]  ;;  %v414_v60 = vld [vmem:[#allocation2 + $0x998] sm:$0xff] }
 0x1e8   :  { %3646 = vmatprep.subr.bf16.mxu0 %v6429_v61  ;;  %3810 = vmatprep.subr.bf16.mxu1 %v6431_v62  ;;  %v418_v61 = vld [vmem:[#allocation2 + $0x9b8] sm:$0xff]  ;;  %v6484_v62 = vcombine.low %v405_v47, %v409_v24  ;;  %v6493_v0 = vcombine.high %v413_v58, %v417_v59 }
 0x1e9   :  { %v6495_v1 = vcombine.high %v414_v60, %v418_v61  ;;  %v6494_v6 = vcombine.low %v414_v60, %v418_v61  ;;  %v477_v61 = vld [vmem:[#allocation2 + $0xb90] sm:$0xff] }
 0x1eb   :  { %3647 = vmatpush1.bf16.msra.mxu0 %v6428_v38  ;;  %3811 = vmatpush1.bf16.msra.mxu1 %v6430_v3  ;;  %v425_v38 = vld [vmem:[#allocation2 + $0x9f0] sm:$0xff]  ;;  %v422_v3 = vld [vmem:[#allocation2 + $0x9d8] sm:$0xff] }
 0x1ec   :  { %3648 = vmatprep.subr.bf16.mxu0 %v6437_v4  ;;  %3812 = vmatprep.subr.bf16.mxu1 %v6439_v5  ;;  %v426_v4 = vld [vmem:[#allocation2 + $0x9f8] sm:$0xff]  ;;  %v6492_v5 = vcombine.low %v413_v58, %v417_v59  ;;  %v6501_v7 = vcombine.high %v421_v2, %v425_v38 }
 0x1ed   :  { %v6503_v8 = vcombine.high %v422_v3, %v426_v4  ;;  %v6502_v16 = vcombine.low %v422_v3, %v426_v4  ;;  %v485_v4 = vld [vmem:[#allocation2 + $0xbd0] sm:$0xff] }
 0x1ef   :  { %3649 = vmatpush1.bf16.msra.mxu0 %v6436_v10  ;;  %3813 = vmatpush1.bf16.msra.mxu1 %v6438_v11  ;;  %v433_v10 = vld [vmem:[#allocation2 + $0xa30] sm:$0xff]  ;;  %v430_v11 = vld [vmem:[#allocation2 + $0xa18] sm:$0xff] }
 0x1f0   :  { %3659 = vmatprep.subr.bf16.mxu0 %v6445_v13  ;;  %3823 = vmatprep.subr.bf16.mxu1 %v6447_v14  ;;  %v434_v13 = vld [vmem:[#allocation2 + $0xa38] sm:$0xff]  ;;  %v6500_v14 = vcombine.low %v421_v2, %v425_v38  ;;  %v6509_v17 = vcombine.high %v429_v9, %v433_v10 }
 0x1f1   :  { %v6511_v18 = vcombine.high %v430_v11, %v434_v13  ;;  %v6510_v53 = vcombine.low %v430_v11, %v434_v13  ;;  %v493_v13 = vld [vmem:[#allocation2 + $0xc10] sm:$0xff] }
 0x1f2   :  { %3651 = vmatmul.mubr.bf16.vlgmr.msra.gmra.mrb[4].mxu0 %v7853_v25  ;;  %3815 = vmatmul.mubr.bf16.vlgmr.msra.gmra.mrb[4].mxu1 %v7853_v25  ;;  %v6462_v25 = vcombine.low %v382_v27, %v386_v12  ;;  %v445_v12 = vld [vmem:[#allocation2 + $0xa90] sm:$0xff] }
 0x1f3   :  { %3660 = vmatpush1.bf16.msra.mxu0 %v6444_v20  ;;  %3824 = vmatpush1.bf16.msra.mxu1 %v6446_v21  ;;  %v441_v20 = vld [vmem:[#allocation2 + $0xa70] sm:$0xff]  ;;  %v438_v21 = vld [vmem:[#allocation2 + $0xa58] sm:$0xff] }
 0x1f4   :  { %3661 = vmatprep.subr.bf16.mxu0 %v6453_v22  ;;  %3825 = vmatprep.subr.bf16.mxu1 %v6455_v57  ;;  %v442_v22 = vld [vmem:[#allocation2 + $0xa78] sm:$0xff]  ;;  %v6508_v57 = vcombine.low %v429_v9, %v433_v10  ;;  %v6517_v26 = vcombine.high %v437_v19, %v441_v20 }
 0x1f5   :  { %3691 = vmatprep.mubr.bf16.mxu0 %v7857_v34  ;;  %3855 = vmatprep.mubr.bf16.mxu1 %v7857_v34  ;;  %v6479_v34 = vcombine.high %v398_v42, %v402_v43  ;;  %v6519_v27 = vcombine.high %v438_v21, %v442_v22  ;;  %v6518_v32 = vcombine.low %v438_v21, %v442_v22  ;;  %v461_v43 = vld [vmem:[#allocation2 + $0xb10] sm:$0xff] }
 0x1f6   :  { %v501_v22 = vld [vmem:[#allocation2 + $0xc50] sm:$0xff] }
 0x1f7   :  { %3662 = vmatpush1.bf16.msra.mxu0 %v6452_v28  ;;  %3826 = vmatpush1.bf16.msra.mxu1 %v6454_v29  ;;  %v449_v28 = vld [vmem:[#allocation2 + $0xab0] sm:$0xff]  ;;  %v446_v29 = vld [vmem:[#allocation2 + $0xa98] sm:$0xff] }
 0x1f8   :  { %3663 = vmatprep.subr.bf16.mxu0 %v6461_v30  ;;  %3827 = vmatprep.subr.bf16.mxu1 %v6463_v31  ;;  %v450_v30 = vld [vmem:[#allocation2 + $0xab8] sm:$0xff]  ;;  %v6516_v31 = vcombine.low %v437_v19, %v441_v20  ;;  %v6525_v33 = vcombine.high %v445_v12, %v449_v28 }
 0x1f9   :  { %v6527_v15 = vcombine.high %v446_v29, %v450_v30  ;;  %v6526_v40 = vcombine.low %v446_v29, %v450_v30  ;;  %v509_v30 = vld [vmem:[#allocation2 + $0xc90] sm:$0xff] }
 0x1fb   :  { %3664 = vmatpush1.bf16.msra.mxu0 %v6460_v36  ;;  %3828 = vmatpush1.bf16.msra.mxu1 %v6462_v25  ;;  %v457_v36 = vld [vmem:[#allocation2 + $0xaf0] sm:$0xff]  ;;  %v454_v25 = vld [vmem:[#allocation2 + $0xad8] sm:$0xff] }
 0x1fc   :  { %3665 = vmatprep.subr.bf16.mxu0 %v6469_v23  ;;  %3829 = vmatprep.subr.bf16.mxu1 %v6471_v37  ;;  %v458_v23 = vld [vmem:[#allocation2 + $0xaf8] sm:$0xff]  ;;  %v6524_v37 = vcombine.low %v445_v12, %v449_v28  ;;  %v6533_v41 = vcombine.high %v453_v35, %v457_v36 }
 0x1fd   :  { %v6535_v42 = vcombine.high %v454_v25, %v458_v23  ;;  %v6534_v47 = vcombine.low %v454_v25, %v458_v23  ;;  %v517_v23 = vld [vmem:[#allocation2 + $0xcd0] sm:$0xff] }
 0x1ff   :  { %3666 = vmatpush1.bf16.msra.mxu0 %v6468_v44  ;;  %3830 = vmatpush1.bf16.msra.mxu1 %v6470_v45  ;;  %v465_v44 = vld [vmem:[#allocation2 + $0xb30] sm:$0xff]  ;;  %v462_v45 = vld [vmem:[#allocation2 + $0xb18] sm:$0xff] }
 0x200   :  { %3667 = vmatprep.subr.bf16.mxu0 %v6477_v46  ;;  %3831 = vmatprep.subr.bf16.mxu1 %v6479_v34  ;;  %v466_v46 = vld [vmem:[#allocation2 + $0xb38] sm:$0xff]  ;;  %v6532_v34 = vcombine.low %v453_v35, %v457_v36  ;;  %v6541_v24 = vcombine.high %v461_v43, %v465_v44 }
 0x201   :  { %v6543_v49 = vcombine.high %v462_v45, %v466_v46  ;;  %v6542_v58 = vcombine.low %v462_v45, %v466_v46  ;;  %v525_v45 = vld [vmem:[#allocation2 + $0xd10] sm:$0xff] }
 0x202   :  { %v529_v46 = vld [vmem:[#allocation2 + $0xd30] sm:$0xff] }
 0x203   :  { %3668 = vmatpush1.bf16.msra.mxu0 %v6476_v51  ;;  %3832 = vmatpush1.bf16.msra.mxu1 %v6478_v52  ;;  %v473_v51 = vld [vmem:[#allocation2 + $0xb70] sm:$0xff]  ;;  %v470_v52 = vld [vmem:[#allocation2 + $0xb58] sm:$0xff] }
 0x204   :  { %3669 = vmatprep.subr.bf16.mxu0 %v6485_v54  ;;  %3833 = vmatprep.subr.bf16.mxu1 %v6487_v56  ;;  %v474_v54 = vld [vmem:[#allocation2 + $0xb78] sm:$0xff]  ;;  %v6540_v56 = vcombine.low %v461_v43, %v465_v44  ;;  %v6549_v59 = vcombine.high %v469_v50, %v473_v51 }
 0x205   :  { %v6551_v60 = vcombine.high %v470_v52, %v474_v54  ;;  %v6550_v2 = vcombine.low %v470_v52, %v474_v54  ;;  %v537_v52 = vld [vmem:[#allocation2 + $0xd70] sm:$0xff]  ;;  %v534_v54 = vld [vmem:[#allocation2 + $0xd58] sm:$0xff] }
 0x207   :  { %3670 = vmatpush1.bf16.msra.mxu0 %v6484_v62  ;;  %3834 = vmatpush1.bf16.msra.mxu1 %v6486_v63  ;;  %v481_v62 = vld [vmem:[#allocation2 + $0xbb0] sm:$0xff]  ;;  %v478_v63 = vld [vmem:[#allocation2 + $0xb98] sm:$0xff] }
 0x208   :  { %3671 = vmatprep.subr.bf16.mxu0 %v6493_v0  ;;  %3835 = vmatprep.subr.bf16.mxu1 %v6495_v1  ;;  %v482_v0 = vld [vmem:[#allocation2 + $0xbb8] sm:$0xff]  ;;  %v6548_v1 = vcombine.low %v469_v50, %v473_v51  ;;  %v6557_v38 = vcombine.high %v477_v61, %v481_v62  ;;  %v6605_v50 = vcombine.high %v525_v45, %v529_v46  ;;  %v533_v51 = vld [vmem:[#allocation2 + $0xd50] sm:$0xff] }
 0x209   :  { %v6559_v3 = vcombine.high %v478_v63, %v482_v0  ;;  %v6558_v9 = vcombine.low %v478_v63, %v482_v0  ;;  %v545_v63 = vld [vmem:[#allocation2 + $0xdb0] sm:$0xff]  ;;  %v542_v0 = vld [vmem:[#allocation2 + $0xd98] sm:$0xff] }
 0x20b   :  { %3672 = vmatpush1.bf16.msra.mxu0 %v6492_v5  ;;  %3836 = vmatpush1.bf16.msra.mxu1 %v6494_v6  ;;  %v489_v5 = vld [vmem:[#allocation2 + $0xbf0] sm:$0xff]  ;;  %v486_v6 = vld [vmem:[#allocation2 + $0xbd8] sm:$0xff] }
 0x20c   :  { %3673 = vmatprep.subr.bf16.mxu0 %v6501_v7  ;;  %3837 = vmatprep.subr.bf16.mxu1 %v6503_v8  ;;  %v490_v7 = vld [vmem:[#allocation2 + $0xbf8] sm:$0xff]  ;;  %v6556_v8 = vcombine.low %v477_v61, %v481_v62  ;;  %v6565_v10 = vcombine.high %v485_v4, %v489_v5  ;;  %v541_v62 = vld [vmem:[#allocation2 + $0xd90] sm:$0xff] }
 0x20d   :  { %v6567_v11 = vcombine.high %v486_v6, %v490_v7  ;;  %v6566_v19 = vcombine.low %v486_v6, %v490_v7  ;;  %v549_v6 = vld [vmem:[#allocation2 + $0xdd0] sm:$0xff] }
 0x20e   :  { %v553_v7 = vld [vmem:[#allocation2 + $0xdf0] sm:$0xff] }
 0x20f   :  { %3674 = vmatpush1.bf16.msra.mxu0 %v6500_v14  ;;  %3838 = vmatpush1.bf16.msra.mxu1 %v6502_v16  ;;  %v497_v14 = vld [vmem:[#allocation2 + $0xc30] sm:$0xff]  ;;  %v494_v16 = vld [vmem:[#allocation2 + $0xc18] sm:$0xff] }
 0x210   :  { %3675 = vmatprep.subr.bf16.mxu0 %v6509_v17  ;;  %3839 = vmatprep.subr.bf16.mxu1 %v6511_v18  ;;  %v498_v17 = vld [vmem:[#allocation2 + $0xc38] sm:$0xff]  ;;  %v6564_v18 = vcombine.low %v485_v4, %v489_v5  ;;  %v6573_v20 = vcombine.high %v493_v13, %v497_v14 }
 0x211   :  { %v6575_v21 = vcombine.high %v494_v16, %v498_v17  ;;  %v6574_v12 = vcombine.low %v494_v16, %v498_v17  ;;  %v6620_v16 = vcombine.low %v541_v62, %v545_v63 }
 0x213   :  { %3676 = vmatpush1.bf16.msra.mxu0 %v6508_v57  ;;  %3840 = vmatpush1.bf16.msra.mxu1 %v6510_v53  ;;  %v505_v57 = vld [vmem:[#allocation2 + $0xc70] sm:$0xff]  ;;  %v502_v53 = vld [vmem:[#allocation2 + $0xc58] sm:$0xff] }
 0x214   :  { %3677 = vmatprep.subr.bf16.mxu0 %v6517_v26  ;;  %3841 = vmatprep.subr.bf16.mxu1 %v6519_v27  ;;  %v506_v26 = vld [vmem:[#allocation2 + $0xc78] sm:$0xff]  ;;  %v6572_v27 = vcombine.low %v493_v13, %v497_v14  ;;  %v6581_v28 = vcombine.high %v501_v22, %v505_v57 }
 0x215   :  { %v6583_v29 = vcombine.high %v502_v53, %v506_v26  ;;  %v6582_v35 = vcombine.low %v502_v53, %v506_v26  ;;  %v561_v53 = vld [vmem:[#allocation2 + $0xe30] sm:$0xff]  ;;  %v558_v26 = vld [vmem:[#allocation2 + $0xe18] sm:$0xff] }
 0x217   :  { %3678 = vmatpush1.bf16.msra.mxu0 %v6516_v31  ;;  %3842 = vmatpush1.bf16.msra.mxu1 %v6518_v32  ;;  %v513_v31 = vld [vmem:[#allocation2 + $0xcb0] sm:$0xff]  ;;  %v510_v32 = vld [vmem:[#allocation2 + $0xc98] sm:$0xff] }
 0x218   :  { %3679 = vmatprep.subr.bf16.mxu0 %v6525_v33  ;;  %3843 = vmatprep.subr.bf16.mxu1 %v6527_v15  ;;  %v514_v33 = vld [vmem:[#allocation2 + $0xcb8] sm:$0xff]  ;;  %v6580_v15 = vcombine.low %v501_v22, %v505_v57  ;;  %v6589_v36 = vcombine.high %v509_v30, %v513_v31  ;;  %v557_v57 = vld [vmem:[#allocation2 + $0xe10] sm:$0xff] }
 0x219   :  { %v6591_v25 = vcombine.high %v510_v32, %v514_v33 }
 0x21b   :  { %3680 = vmatpush1.bf16.msra.mxu0 %v6524_v37  ;;  %3844 = vmatpush1.bf16.msra.mxu1 %v6526_v40  ;;  %v521_v37 = vld [vmem:[#allocation2 + $0xcf0] sm:$0xff]  ;;  %v518_v40 = vld [vmem:[#allocation2 + $0xcd8] sm:$0xff] }
 0x21c   :  { %3681 = vmatprep.subr.bf16.mxu0 %v6533_v41  ;;  %3845 = vmatprep.subr.bf16.mxu1 %v6535_v42  ;;  %v522_v41 = vld [vmem:[#allocation2 + $0xcf8] sm:$0xff]  ;;  %v6588_v42 = vcombine.low %v509_v30, %v513_v31  ;;  %v6597_v43 = vcombine.high %v517_v23, %v521_v37  ;;  %v565_v31 = vld [vmem:[#allocation2 + $0xe50] sm:$0xff] }
 0x21d   :  { %v6599_v44 = vcombine.high %v518_v40, %v522_v41 }
 0x21f   :  { %3682 = vmatpush1.bf16.msra.mxu0 %v6532_v34  ;;  %3846 = vmatpush1.bf16.msra.mxu1 %v6534_v47  ;;  %v526_v34 = vld [vmem:[#allocation2 + $0xd18] sm:$0xff] }
 0x220   :  { %3683 = vmatprep.subr.bf16.mxu0 %v6541_v24  ;;  %3847 = vmatprep.subr.bf16.mxu1 %v6543_v49  ;;  %v530_v47 = vld [vmem:[#allocation2 + $0xd38] sm:$0xff]  ;;  %v6596_v24 = vcombine.low %v517_v23, %v521_v37  ;;  %v6598_v49 = vcombine.low %v518_v40, %v522_v41  ;;  %v573_v37 = vld [vmem:[#allocation2 + $0xe90] sm:$0xff] }
 0x221   :  { %v577_v40 = vld [vmem:[#allocation2 + $0xeb0] sm:$0xff]  ;;  %v574_v41 = vld [vmem:[#allocation2 + $0xe98] sm:$0xff] }
 0x223   :  { %3684 = vmatpush1.bf16.msra.mxu0 %v6540_v56  ;;  %3848 = vmatpush1.bf16.msra.mxu1 %v6542_v58  ;;  %v538_v56 = vld [vmem:[#allocation2 + $0xd78] sm:$0xff]  ;;  %v6604_v58 = vcombine.low %v525_v45, %v529_v46  ;;  %v581_v46 = vld [vmem:[#allocation2 + $0xed0] sm:$0xff] }
 0x224   :  { %3685 = vmatprep.subr.bf16.mxu0 %v6549_v59  ;;  %3849 = vmatprep.subr.bf16.mxu1 %v6551_v60  ;;  %v6606_v59 = vcombine.low %v526_v34, %v530_v47  ;;  %v6613_v60 = vcombine.high %v533_v51, %v537_v52  ;;  %v6615_v61 = vcombine.high %v534_v54, %v538_v56 }
 0x227   :  { %3686 = vmatpush1.bf16.msra.mxu0 %v6548_v1  ;;  %3850 = vmatpush1.bf16.msra.mxu1 %v6550_v2  ;;  %v546_v1 = vld [vmem:[#allocation2 + $0xdb8] sm:$0xff]  ;;  %v6612_v2 = vcombine.low %v533_v51, %v537_v52  ;;  %v589_v52 = vld [vmem:[#allocation2 + $0xf10] sm:$0xff] }
 0x228   :  { %3687 = vmatprep.subr.bf16.mxu0 %v6557_v38  ;;  %3851 = vmatprep.subr.bf16.mxu1 %v6559_v3  ;;  %v6614_v38 = vcombine.low %v534_v54, %v538_v56  ;;  %v6621_v3 = vcombine.high %v541_v62, %v545_v63  ;;  %v6623_v5 = vcombine.high %v542_v0, %v546_v1  ;;  %v593_v54 = vld [vmem:[#allocation2 + $0xf30] sm:$0xff]  ;;  %v621_v56 = vlaneseq }
 0x229   :  { %v6669_v62 = vcombine.high %v589_v52, %v593_v54 }
 0x22b   :  { %3688 = vmatpush1.bf16.msra.mxu0 %v6556_v8  ;;  %3852 = vmatpush1.bf16.msra.mxu1 %v6558_v9 }
 0x22c   :  { %3689 = vmatprep.subr.bf16.mxu0 %v6565_v10  ;;  %3853 = vmatprep.subr.bf16.mxu1 %v6567_v11  ;;  %v550_v10 = vld [vmem:[#allocation2 + $0xdd8] sm:$0xff] }
 0x22d   :  { %v554_v11 = vld [vmem:[#allocation2 + $0xdf8] sm:$0xff] }
 0x22e   :  { %v6631_v22 = vcombine.high %v550_v10, %v554_v11 }
 0x22f   :  { %3690 = vmatpush1.bf16.msra.mxu0 %v6564_v18  ;;  %3854 = vmatpush1.bf16.msra.mxu1 %v6566_v19  ;;  %v6622_v19 = vcombine.low %v542_v0, %v546_v1  ;;  %v597_v0 = vld [vmem:[#allocation2 + $0xf50] sm:$0xff] }
 0x230   :  { %3700 = vmatprep.subr.bf16.mxu0 %v6573_v20  ;;  %3864 = vmatprep.subr.bf16.mxu1 %v6575_v21  ;;  %v6629_v20 = vcombine.high %v549_v6, %v553_v7  ;;  %v601_v1 = vld [vmem:[#allocation2 + $0xf70] sm:$0xff] }
 0x232   :  { %3692 = vmatmul.mubr.bf16.vlgmr.msra.gmra.mrb[4].mxu0 %v7870_v39  ;;  %3856 = vmatmul.mubr.bf16.vlgmr.msra.gmra.mrb[4].mxu1 %v7870_v39  ;;  %v6590_v39 = vcombine.low %v510_v32, %v514_v33  ;;  %v569_v32 = vld [vmem:[#allocation2 + $0xe70] sm:$0xff]  ;;  %v566_v33 = vld [vmem:[#allocation2 + $0xe58] sm:$0xff] }
 0x233   :  { %3701 = vmatpush1.bf16.msra.mxu0 %v6572_v27  ;;  %3865 = vmatpush1.bf16.msra.mxu1 %v6574_v12  ;;  %v562_v27 = vld [vmem:[#allocation2 + $0xe38] sm:$0xff]  ;;  %v6628_v12 = vcombine.low %v549_v6, %v553_v7  ;;  %v6677_v7 = vcombine.high %v597_v0, %v601_v1 }
 0x234   :  { %3702 = vmatprep.subr.bf16.mxu0 %v6581_v28  ;;  %3866 = vmatprep.subr.bf16.mxu1 %v6583_v29  ;;  %v6630_v28 = vcombine.low %v550_v10, %v554_v11  ;;  %v6637_v29 = vcombine.high %v557_v57, %v561_v53  ;;  %v6639_v30 = vcombine.high %v558_v26, %v562_v27  ;;  %v605_v11 = vld [vmem:[#allocation2 + $0xf90] sm:$0xff] }
 0x235   :  { %3732 = vmatprep.mubr.bf16.mxu0 %v7874_v48  ;;  %3896 = vmatprep.mubr.bf16.mxu1 %v7874_v48  ;;  %v6607_v48 = vcombine.high %v526_v34, %v530_v47  ;;  %v585_v34 = vld [vmem:[#allocation2 + $0xef0] sm:$0xff]  ;;  %v582_v47 = vld [vmem:[#allocation2 + $0xed8] sm:$0xff] }
 0x237   :  { %3703 = vmatpush1.bf16.msra.mxu0 %v6580_v15  ;;  %3867 = vmatpush1.bf16.msra.mxu1 %v6582_v35  ;;  %v570_v15 = vld [vmem:[#allocation2 + $0xe78] sm:$0xff]  ;;  %v6636_v35 = vcombine.low %v557_v57, %v561_v53  ;;  %v613_v53 = vld [vmem:[#allocation2 + $0xfd0] sm:$0xff] }
 0x238   :  { %3704 = vmatprep.subr.bf16.mxu0 %v6589_v36  ;;  %3868 = vmatprep.subr.bf16.mxu1 %v6591_v25  ;;  %v6638_v36 = vcombine.low %v558_v26, %v562_v27  ;;  %v6645_v25 = vcombine.high %v565_v31, %v569_v32  ;;  %v6647_v23 = vcombine.high %v566_v33, %v570_v15  ;;  %v617_v26 = vld [vmem:[#allocation2 + $0xff0] sm:$0xff] }
 0x23b   :  { %3705 = vmatpush1.bf16.msra.mxu0 %v6588_v42  ;;  %3869 = vmatpush1.bf16.msra.mxu1 %v6590_v39  ;;  %v578_v42 = vld [vmem:[#allocation2 + $0xeb8] sm:$0xff]  ;;  %v6644_v39 = vcombine.low %v565_v31, %v569_v32  ;;  %v6693_v31 = vcombine.high %v613_v53, %v617_v26 }
 0x23c   :  { %3706 = vmatprep.subr.bf16.mxu0 %v6597_v43  ;;  %3870 = vmatprep.subr.bf16.mxu1 %v6599_v44  ;;  %v6646_v43 = vcombine.low %v566_v33, %v570_v15  ;;  %v6653_v44 = vcombine.high %v573_v37, %v577_v40  ;;  %v6655_v45 = vcombine.high %v574_v41, %v578_v42 }
 0x23d   :  { %v6692_v15 = vcombine.low %v613_v53, %v617_v26  ;;  %v7201_v53 = vld [vmem:[#allocation6 + $0x164] ss:$16 sps:$4 sm:$0xff]   ;;  %v7204_v26 = vld [vmem:[#allocation6 + $0x16c] ss:$16 sps:$4 sm:$0xff]  }
 0x23f   :  { %3707 = vmatpush1.bf16.msra.mxu0 %v6596_v24  ;;  %3871 = vmatpush1.bf16.msra.mxu1 %v6598_v49  ;;  %v586_v24 = vld [vmem:[#allocation2 + $0xef8] sm:$0xff]  ;;  %v6652_v49 = vcombine.low %v573_v37, %v577_v40  ;;  %v7136_v40 = vld [vmem:[#allocation6 + $0x8] ss:$16 sps:$4 sm:$0xff]  }
 0x240   :  { %3708 = vmatprep.subr.bf16.mxu0 %v6605_v50  ;;  %3872 = vmatprep.subr.bf16.mxu1 %v6607_v48  ;;  %v6654_v50 = vcombine.low %v574_v41, %v578_v42  ;;  %v6661_v48 = vcombine.high %v581_v46, %v585_v34  ;;  %v6663_v51 = vcombine.high %v582_v47, %v586_v24  ;;  %v7133_v37 = vld [vmem:[#allocation6] ss:$16 sps:$4 sm:$0xff]   ;;  %v7141_v41 = vld [vmem:[#allocation6 + $0x24] ss:$16 sps:$4 sm:$0xff]  }
 0x243   :  { %3709 = vmatpush1.bf16.msra.mxu0 %v6604_v58  ;;  %3873 = vmatpush1.bf16.msra.mxu1 %v6606_v59  ;;  %v590_v58 = vld [vmem:[#allocation2 + $0xf18] sm:$0xff] }
 0x244   :  { %3710 = vmatprep.subr.bf16.mxu0 %v6613_v60  ;;  %3874 = vmatprep.subr.bf16.mxu1 %v6615_v61  ;;  %v594_v59 = vld [vmem:[#allocation2 + $0xf38] sm:$0xff]  ;;  %v6660_v60 = vcombine.low %v581_v46, %v585_v34  ;;  %v6662_v61 = vcombine.low %v582_v47, %v586_v24  ;;  %v7148_v34 = vld [vmem:[#allocation6 + $0x48] ss:$16 sps:$4 sm:$0xff]   ;;  %v7156_v24 = vld [vmem:[#allocation6 + $0x6c] ss:$16 sps:$4 sm:$0xff]  }
 0x245   :  { %v7900_v4 = vpop.f32.mrb[0].mxu0  ;;  %v7902_v8 = vpop.f32.mrb[0].mxu1  ;;  %v6671_v63 = vcombine.high %v590_v58, %v594_v59  ;;  %v6670_v6 = vcombine.low %v590_v58, %v594_v59  ;;  %v7145_v46 = vld [vmem:[#allocation6 + $0x40] ss:$16 sps:$4 sm:$0xff]   ;;  %v7153_v47 = vld [vmem:[#allocation6 + $0x64] ss:$16 sps:$4 sm:$0xff]  }
 0x246   :  { %v7904_v9 = vpop.f32.mrb[1].mxu0  ;;  %v7906_v13 = vpop.f32.mrb[1].mxu1  ;;  %v7163_v58 = vld [vmem:[#allocation6 + $0xa0] ss:$16 sps:$4 sm:$0xff]   ;;  %v7166_v59 = vld [vmem:[#allocation6 + $0xa8] ss:$16 sps:$4 sm:$0xff]  }
 0x247   :  { %v3410_v14 = vpop.f32.mrb[2].mxu0  ;;  %3711 = vmatpush1.bf16.msra.mxu0 %v6612_v2  ;;  %v3574_v17 = vpop.f32.mrb[2].mxu1  ;;  %3875 = vmatpush1.bf16.msra.mxu1 %v6614_v38  ;;  %v7908_v2 = vshrl.u32 %v621_v56, 7  ;;  %v598_v38 = vld [vmem:[#allocation2 + $0xf58] sm:$0xff]  ;;  %v7168_v56 = vld [vmem:[#allocation6 + $0xac] ss:$16 sps:$4 sm:$0xff]  }
 0x248   :  { %v3411_v18 = vpop.f32.mrb[3].mxu0  ;;  %3712 = vmatprep.subr.bf16.mxu0 %v6621_v3  ;;  %v3575_v21 = vpop.f32.mrb[3].mxu1  ;;  %3876 = vmatprep.subr.bf16.mxu1 %v6623_v5  ;;  %v602_v3 = vld [vmem:[#allocation2 + $0xf78] sm:$0xff]  ;;  %v6668_v5 = vcombine.low %v589_v52, %v593_v54  ;;  %v609_v14 = vld [vmem:[#allocation2 + $0xfb0] sm:$0xff] }
 0x249   :  { %v6679_v10 = vcombine.high %v598_v38, %v602_v3  ;;  %v606_v17 = vld [vmem:[#allocation2 + $0xf98] sm:$0xff]  ;;  %v6678_v21 = vcombine.low %v598_v38, %v602_v3  ;;  %v7160_v52 = vld [vmem:[#allocation6 + $0x88] ss:$16 sps:$4 sm:$0xff]  }
 0x24a   :  { %v610_v18 = vld [vmem:[#allocation2 + $0xfb8] sm:$0xff]  ;;  %v7178_v3 = vld [vmem:[#allocation6 + $0xe8] ss:$16 sps:$4 sm:$0xff]  }
 0x24b   :  { %3713 = vmatpush1.bf16.msra.mxu0 %v6620_v16  ;;  %3877 = vmatpush1.bf16.msra.mxu1 %v6622_v19  ;;  %v627_v16 = vsub.s32 1, %v7908_v2  ;;  %v7911_v19 = vld [vmem:[#allocation4] sm:$0xff]  ;;  %v6687_v57 = vcombine.high %v606_v17, %v610_v18  ;;  %v7165_v54 = vld [vmem:[#allocation6 + $0xa4] ss:$16 sps:$4 sm:$0xff]   ;;  %v7175_v38 = vld [vmem:[#allocation6 + $0xe0] ss:$16 sps:$4 sm:$0xff]  }
 0x24c   :  { %3714 = vmatprep.subr.bf16.mxu0 %v6629_v20  ;;  %3878 = vmatprep.subr.bf16.mxu1 %v6631_v22  ;;  %v6676_v20 = vcombine.low %v597_v0, %v601_v1  ;;  %v6685_v22 = vcombine.high %v605_v11, %v609_v14  ;;  %v7177_v0 = vld [vmem:[#allocation6 + $0xe4] ss:$16 sps:$4 sm:$0xff]   ;;  %v7180_v1 = vld [vmem:[#allocation6 + $0xec] ss:$16 sps:$4 sm:$0xff]  }
 0x24d   :  { %v628_v27 = vrot.slane %v7911_v19, %v627_v16 }
 0x24f   :  { %3715 = vmatpush1.bf16.msra.mxu0 %v6628_v12  ;;  %3879 = vmatpush1.bf16.msra.mxu1 %v6630_v28  ;;  %v614_v12 = vld [vmem:[#allocation2 + $0xfd8] sm:$0xff]  ;;  %v7030_v33 = vadd.f32 %v7904_v9, %v628_v27  ;;  %v7144_v9 = vld [vmem:[#allocation6 + $0x2c] ss:$16 sps:$4 sm:$0xff]  }
 0x250   :  { %3716 = vmatprep.subr.bf16.mxu0 %v6637_v29  ;;  %3880 = vmatprep.subr.bf16.mxu1 %v6639_v30  ;;  %v618_v28 = vld [vmem:[#allocation2 + $0xff8] sm:$0xff]  ;;  %v6684_v29 = vcombine.low %v605_v11, %v609_v14  ;;  %v6686_v30 = vcombine.low %v606_v17, %v610_v18  ;;  %v7192_v14 = vld [vmem:[#allocation6 + $0x12c] ss:$16 sps:$4 sm:$0xff]   ;;  %v7190_v18 = vld [vmem:[#allocation6 + $0x128] ss:$16 sps:$4 sm:$0xff]  }
 0x251   :  { %v6695_v32 = vcombine.high %v614_v12, %v618_v28  ;;  %v7189_v11 = vld [vmem:[#allocation6 + $0x124] ss:$16 sps:$4 sm:$0xff]   ;;  %v7187_v17 = vld [vmem:[#allocation6 + $0x120] ss:$16 sps:$4 sm:$0xff]  }
 0x252   :  { %v7199_v27 = vld [vmem:[#allocation6 + $0x160] ss:$16 sps:$4 sm:$0xff]  }
 0x253   :  { %3717 = vmatpush1.bf16.msra.mxu0 %v6636_v35  ;;  %3881 = vmatpush1.bf16.msra.mxu1 %v6638_v36  ;;  %v6694_v35 = vcombine.low %v614_v12, %v618_v28  ;;  %v7135_v36 = vld [vmem:[#allocation6 + $0x4] ss:$16 sps:$4 sm:$0xff]   ;;  %v7202_v12 = vld [vmem:[#allocation6 + $0x168] ss:$16 sps:$4 sm:$0xff]  }
 0x254   :  { %3718 = vmatprep.subr.bf16.mxu0 %v6645_v25  ;;  %3882 = vmatprep.subr.bf16.mxu1 %v6647_v23  ;;  %v7138_v25 = vld [vmem:[#allocation6 + $0xc] ss:$16 sps:$4 sm:$0xff]   ;;  %v3906_v23 = vmax.f32 %v7030_v33, 0.0  ;;  %v7207_v28 = vld [vmem:[#allocation6 + $0x184] ss:$16 sps:$4 sm:$0xff]  }
 0x255   :  { %v7213_v33 = vld [vmem:[#allocation6 + $0x1a4] ss:$16 sps:$4 sm:$0xff]  }
 0x256   :  { %v3914_v42 = vpack.c.bf16 %v3906_v23, %v3906_v23  ;;  %v7214_v23 = vld [vmem:[#allocation6 + $0x1a8] ss:$16 sps:$4 sm:$0xff]  }
 0x257   :  { %3719 = vmatpush1.bf16.msra.mxu0 %v6644_v39  ;;  %3883 = vmatpush1.bf16.msra.mxu1 %v6646_v43  ;;  %v7139_v39 = vld [vmem:[#allocation6 + $0x20] ss:$16 sps:$4 sm:$0xff]   ;;  %v7142_v43 = vld [vmem:[#allocation6 + $0x28] ss:$16 sps:$4 sm:$0xff]  }
 0x258   :  { %3720 = vmatprep.subr.bf16.mxu0 %v6653_v44  ;;  %3884 = vmatprep.subr.bf16.mxu1 %v6655_v45  ;;  %v7147_v44 = vld [vmem:[#allocation6 + $0x44] ss:$16 sps:$4 sm:$0xff]   ;;  %v7150_v45 = vld [vmem:[#allocation6 + $0x4c] ss:$16 sps:$4 sm:$0xff]  }
 0x25b   :  { %3721 = vmatpush1.bf16.msra.mxu0 %v6652_v49  ;;  %3885 = vmatpush1.bf16.msra.mxu1 %v6654_v50  ;;  %v7154_v49 = vld [vmem:[#allocation6 + $0x68] ss:$16 sps:$4 sm:$0xff]   ;;  %v7159_v50 = vld [vmem:[#allocation6 + $0x84] ss:$16 sps:$4 sm:$0xff]  }
 0x25c   :  { %3722 = vmatprep.subr.bf16.mxu0 %v6661_v48  ;;  %3886 = vmatprep.subr.bf16.mxu1 %v6663_v51  ;;  %v7162_v48 = vld [vmem:[#allocation6 + $0x8c] ss:$16 sps:$4 sm:$0xff]   ;;  %v7157_v51 = vld [vmem:[#allocation6 + $0x80] ss:$16 sps:$4 sm:$0xff]  }
 0x25f   :  { %3723 = vmatpush1.bf16.msra.mxu0 %v6660_v60  ;;  %3887 = vmatpush1.bf16.msra.mxu1 %v6662_v61  ;;  %v7171_v60 = vld [vmem:[#allocation6 + $0xc4] ss:$16 sps:$4 sm:$0xff]   ;;  %v7174_v61 = vld [vmem:[#allocation6 + $0xcc] ss:$16 sps:$4 sm:$0xff]  }
 0x260   :  { %3724 = vmatprep.subr.bf16.mxu0 %v6669_v62  ;;  %3888 = vmatprep.subr.bf16.mxu1 %v6671_v63  ;;  %v7169_v62 = vld [vmem:[#allocation6 + $0xc0] ss:$16 sps:$4 sm:$0xff]   ;;  %v7172_v63 = vld [vmem:[#allocation6 + $0xc8] ss:$16 sps:$4 sm:$0xff]  }
 0x263   :  { %3725 = vmatpush1.bf16.msra.mxu0 %v6668_v5  ;;  %3889 = vmatpush1.bf16.msra.mxu1 %v6670_v6  ;;  %v7183_v5 = vld [vmem:[#allocation6 + $0x104] ss:$16 sps:$4 sm:$0xff]   ;;  %v7186_v6 = vld [vmem:[#allocation6 + $0x10c] ss:$16 sps:$4 sm:$0xff]  }
 0x264   :  { %3726 = vmatprep.subr.bf16.mxu0 %v6677_v7  ;;  %3890 = vmatprep.subr.bf16.mxu1 %v6679_v10  ;;  %v7181_v7 = vld [vmem:[#allocation6 + $0x100] ss:$16 sps:$4 sm:$0xff]   ;;  %v7184_v10 = vld [vmem:[#allocation6 + $0x108] ss:$16 sps:$4 sm:$0xff]  }
 0x267   :  { %3727 = vmatpush1.bf16.msra.mxu0 %v6676_v20  ;;  %3891 = vmatpush1.bf16.msra.mxu1 %v6678_v21  ;;  %v7195_v20 = vld [vmem:[#allocation6 + $0x144] ss:$16 sps:$4 sm:$0xff]   ;;  %v7198_v21 = vld [vmem:[#allocation6 + $0x14c] ss:$16 sps:$4 sm:$0xff]  }
 0x268   :  { %3728 = vmatprep.subr.bf16.mxu0 %v6685_v22  ;;  %3892 = vmatprep.subr.bf16.mxu1 %v6687_v57  ;;  %v7193_v22 = vld [vmem:[#allocation6 + $0x140] ss:$16 sps:$4 sm:$0xff]   ;;  %v7196_v57 = vld [vmem:[#allocation6 + $0x148] ss:$16 sps:$4 sm:$0xff]  }
 0x26b   :  { %3729 = vmatpush1.bf16.msra.mxu0 %v6684_v29  ;;  %3893 = vmatpush1.bf16.msra.mxu1 %v6686_v30  ;;  %v7210_v29 = vld [vmem:[#allocation6 + $0x18c] ss:$16 sps:$4 sm:$0xff]   ;;  %v7205_v30 = vld [vmem:[#allocation6 + $0x180] ss:$16 sps:$4 sm:$0xff]  }
 0x26c   :  { %3730 = vmatprep.subr.bf16.mxu0 %v6693_v31  ;;  %3894 = vmatprep.subr.bf16.mxu1 %v6695_v32  ;;  %v623_v31 = vsub.s32 0, %v7908_v2  ;;  %v7208_v32 = vld [vmem:[#allocation6 + $0x188] ss:$16 sps:$4 sm:$0xff]  }
 0x26f   :  { %3731 = vmatpush1.bf16.msra.mxu0 %v6692_v15  ;;  %3895 = vmatpush1.bf16.msra.mxu1 %v6694_v35  ;;  %v7216_v15 = vld [vmem:[#allocation6 + $0x1ac] ss:$16 sps:$4 sm:$0xff]   ;;  %v635_v35 = vsub.s32 3, %v7908_v2 }
 0x270   :  { %5479 = vmatprep.subr.bf16.mxu0 %v7135_v36  ;;  %5643 = vmatprep.subr.bf16.mxu1 %v7138_v25  ;;  %v7211_v36 = vld [vmem:[#allocation6 + $0x1a0] ss:$16 sps:$4 sm:$0xff]   ;;  %v624_v25 = vrot.slane %v7911_v19, %v623_v31 }
 0x272   :  { %3733 = vmatmul.mubr.bf16.vlgmr.msra.gmra.mrb[4].mxu0 %v7882_v55  ;;  %3897 = vmatmul.mubr.bf16.vlgmr.msra.gmra.mrb[4].mxu1 %v7882_v55  ;;  %v7151_v55 = vld [vmem:[#allocation6 + $0x60] ss:$16 sps:$4 sm:$0xff]  }
 0x273   :  { %5480 = vmatpush1.bf16.msra.mxu0 %v7133_v37  ;;  %5511 = vmatprep.mubr.bf16.mxu0 %v3914_v42  ;;  %v7219_v37 = vld [vmem:[#allocation6 + $0x1c4] ss:$16 sps:$4 sm:$0xff]  }
 0x274   :  { %5644 = vmatpush1.bf16.msra.mxu1 %v7136_v40  ;;  %5675 = vmatprep.mubr.bf16.mxu1 %v3914_v42  ;;  %v7222_v40 = vld [vmem:[#allocation6 + $0x1cc] ss:$16 sps:$4 sm:$0xff]   ;;  %v7217_v42 = vld [vmem:[#allocation6 + $0x1c0] ss:$16 sps:$4 sm:$0xff]  }
 0x275   :  { %5481 = vmatprep.subr.bf16.mxu0 %v7141_v41  ;;  %5645 = vmatprep.subr.bf16.mxu1 %v7144_v9  ;;  %v636_v41 = vrot.slane %v7911_v19, %v635_v35  ;;  %v7029_v9 = vadd.f32 %v7900_v4, %v624_v25  ;;  %v7229_v4 = vld [vmem:[#allocation6 + $0x200] ss:$16 sps:$4 sm:$0xff]   ;;  %v7294_v25 = vld [vmem:[#allocation6 + $0x34c] ss:$16 sps:$4 sm:$0xff]  }
 0x277   :  { %5482 = vmatpush1.bf16.msra.mxu0 %v7139_v39  ;;  %v7220_v39 = vld [vmem:[#allocation6 + $0x1c8] ss:$16 sps:$4 sm:$0xff]  }
 0x278   :  { %5646 = vmatpush1.bf16.msra.mxu1 %v7142_v43  ;;  %5483 = vmatprep.subr.bf16.mxu0 %v7147_v44  ;;  %v7225_v43 = vld [vmem:[#allocation6 + $0x1e4] ss:$16 sps:$4 sm:$0xff]   ;;  %v7228_v44 = vld [vmem:[#allocation6 + $0x1ec] ss:$16 sps:$4 sm:$0xff]  }
 0x279   :  { %5647 = vmatprep.subr.bf16.mxu1 %v7150_v45  ;;  %v7032_v45 = vadd.f32 %v7906_v13, %v636_v41  ;;  %v7240_v13 = vld [vmem:[#allocation6 + $0x22c] ss:$16 sps:$4 sm:$0xff]  }
 0x27a   :  { %v7300_v41 = vld [vmem:[#allocation6 + $0x36c] ss:$16 sps:$4 sm:$0xff]  }
 0x27b   :  { %5484 = vmatpush1.bf16.msra.mxu0 %v7145_v46  ;;  %v7223_v46 = vld [vmem:[#allocation6 + $0x1e0] ss:$16 sps:$4 sm:$0xff]  }
 0x27c   :  { %5648 = vmatpush1.bf16.msra.mxu1 %v7148_v34  ;;  %5485 = vmatprep.subr.bf16.mxu0 %v7153_v47  ;;  %v3905_v34 = vmax.f32 %v7029_v9, 0.0  ;;  %v7226_v47 = vld [vmem:[#allocation6 + $0x1e8] ss:$16 sps:$4 sm:$0xff]  }
 0x27d   :  { %5649 = vmatprep.subr.bf16.mxu1 %v7156_v24  ;;  %v7231_v24 = vld [vmem:[#allocation6 + $0x204] ss:$16 sps:$4 sm:$0xff]   ;;  %v7298_v9 = vld [vmem:[#allocation6 + $0x368] ss:$16 sps:$4 sm:$0xff]  }
 0x27f   :  { %5486 = vmatpush1.bf16.msra.mxu0 %v7151_v55  ;;  %v7234_v55 = vld [vmem:[#allocation6 + $0x20c] ss:$16 sps:$4 sm:$0xff]  }
 0x280   :  { %5650 = vmatpush1.bf16.msra.mxu1 %v7154_v49  ;;  %5487 = vmatprep.subr.bf16.mxu0 %v7159_v50  ;;  %v3908_v49 = vmax.f32 %v7032_v45, 0.0  ;;  %v3913_v50 = vpack.c.bf16 %v3905_v34, %v3905_v34  ;;  %v631_v45 = vsub.s32 2, %v7908_v2  ;;  %v7309_v34 = vld [vmem:[#allocation6 + $0x3a4] ss:$16 sps:$4 sm:$0xff]  }
 0x281   :  { %5651 = vmatprep.subr.bf16.mxu1 %v7162_v48  ;;  %v7232_v48 = vld [vmem:[#allocation6 + $0x208] ss:$16 sps:$4 sm:$0xff]  }
 0x283   :  { %5488 = vmatpush1.bf16.msra.mxu0 %v7157_v51  ;;  %v7237_v51 = vld [vmem:[#allocation6 + $0x224] ss:$16 sps:$4 sm:$0xff]  }
 0x284   :  { %5652 = vmatpush1.bf16.msra.mxu1 %v7160_v52  ;;  %5489 = vmatprep.subr.bf16.mxu0 %v7165_v54  ;;  %v3916_v52 = vpack.c.bf16 %v3908_v49, %v3908_v49  ;;  %v7235_v54 = vld [vmem:[#allocation6 + $0x220] ss:$16 sps:$4 sm:$0xff]   ;;  %v7310_v49 = vld [vmem:[#allocation6 + $0x3a8] ss:$16 sps:$4 sm:$0xff]  }
 0x285   :  { %5653 = vmatprep.subr.bf16.mxu1 %v7168_v56  ;;  %v7238_v56 = vld [vmem:[#allocation6 + $0x228] ss:$16 sps:$4 sm:$0xff]  }
 0x287   :  { %5490 = vmatpush1.bf16.msra.mxu0 %v7163_v58  ;;  %v7243_v58 = vld [vmem:[#allocation6 + $0x244] ss:$16 sps:$4 sm:$0xff]  }
 0x288   :  { %5654 = vmatpush1.bf16.msra.mxu1 %v7166_v59  ;;  %5491 = vmatprep.subr.bf16.mxu0 %v7171_v60  ;;  %v7246_v59 = vld [vmem:[#allocation6 + $0x24c] ss:$16 sps:$4 sm:$0xff]   ;;  %v7241_v60 = vld [vmem:[#allocation6 + $0x240] ss:$16 sps:$4 sm:$0xff]  }
 0x289   :  { %5655 = vmatprep.subr.bf16.mxu1 %v7174_v61  ;;  %v7244_v61 = vld [vmem:[#allocation6 + $0x248] ss:$16 sps:$4 sm:$0xff]  }
 0x28b   :  { %5492 = vmatpush1.bf16.msra.mxu0 %v7169_v62  ;;  %v7249_v62 = vld [vmem:[#allocation6 + $0x264] ss:$16 sps:$4 sm:$0xff]  }
 0x28c   :  { %5656 = vmatpush1.bf16.msra.mxu1 %v7172_v63  ;;  %5493 = vmatprep.subr.bf16.mxu0 %v7177_v0  ;;  %v7252_v63 = vld [vmem:[#allocation6 + $0x26c] ss:$16 sps:$4 sm:$0xff]   ;;  %v7247_v0 = vld [vmem:[#allocation6 + $0x260] ss:$16 sps:$4 sm:$0xff]  }
 0x28d   :  { %5657 = vmatprep.subr.bf16.mxu1 %v7180_v1  ;;  %v7250_v1 = vld [vmem:[#allocation6 + $0x268] ss:$16 sps:$4 sm:$0xff]  }
 0x28f   :  { %5494 = vmatpush1.bf16.msra.mxu0 %v7175_v38  ;;  %v7255_v38 = vld [vmem:[#allocation6 + $0x284] ss:$16 sps:$4 sm:$0xff]  }
 0x290   :  { %5658 = vmatpush1.bf16.msra.mxu1 %v7178_v3  ;;  %5495 = vmatprep.subr.bf16.mxu0 %v7183_v5  ;;  %v7258_v3 = vld [vmem:[#allocation6 + $0x28c] ss:$16 sps:$4 sm:$0xff]   ;;  %v7253_v5 = vld [vmem:[#allocation6 + $0x280] ss:$16 sps:$4 sm:$0xff]  }
 0x291   :  { %5659 = vmatprep.subr.bf16.mxu1 %v7186_v6  ;;  %v7256_v6 = vld [vmem:[#allocation6 + $0x288] ss:$16 sps:$4 sm:$0xff]  }
 0x293   :  { %5496 = vmatpush1.bf16.msra.mxu0 %v7181_v7  ;;  %v7261_v7 = vld [vmem:[#allocation6 + $0x2a4] ss:$16 sps:$4 sm:$0xff]  }
 0x294   :  { %5660 = vmatpush1.bf16.msra.mxu1 %v7184_v10  ;;  %5497 = vmatprep.subr.bf16.mxu0 %v7189_v11  ;;  %v7264_v10 = vld [vmem:[#allocation6 + $0x2ac] ss:$16 sps:$4 sm:$0xff]   ;;  %v7259_v11 = vld [vmem:[#allocation6 + $0x2a0] ss:$16 sps:$4 sm:$0xff]  }
 0x295   :  { %5661 = vmatprep.subr.bf16.mxu1 %v7192_v14  ;;  %v7262_v14 = vld [vmem:[#allocation6 + $0x2a8] ss:$16 sps:$4 sm:$0xff]  }
 0x297   :  { %5498 = vmatpush1.bf16.msra.mxu0 %v7187_v17  ;;  %v7267_v17 = vld [vmem:[#allocation6 + $0x2c4] ss:$16 sps:$4 sm:$0xff]  }
 0x298   :  { %5662 = vmatpush1.bf16.msra.mxu1 %v7190_v18  ;;  %5499 = vmatprep.subr.bf16.mxu0 %v7195_v20  ;;  %v7270_v18 = vld [vmem:[#allocation6 + $0x2cc] ss:$16 sps:$4 sm:$0xff]   ;;  %v7265_v20 = vld [vmem:[#allocation6 + $0x2c0] ss:$16 sps:$4 sm:$0xff]  }
 0x299   :  { %5663 = vmatprep.subr.bf16.mxu1 %v7198_v21  ;;  %v7268_v21 = vld [vmem:[#allocation6 + $0x2c8] ss:$16 sps:$4 sm:$0xff]  }
 0x29b   :  { %5500 = vmatpush1.bf16.msra.mxu0 %v7193_v22  ;;  %v7273_v22 = vld [vmem:[#allocation6 + $0x2e4] ss:$16 sps:$4 sm:$0xff]  }
 0x29c   :  { %5664 = vmatpush1.bf16.msra.mxu1 %v7196_v57  ;;  %5501 = vmatprep.subr.bf16.mxu0 %v7201_v53  ;;  %v7276_v57 = vld [vmem:[#allocation6 + $0x2ec] ss:$16 sps:$4 sm:$0xff]   ;;  %v7271_v53 = vld [vmem:[#allocation6 + $0x2e0] ss:$16 sps:$4 sm:$0xff]  }
 0x29d   :  { %5665 = vmatprep.subr.bf16.mxu1 %v7204_v26  ;;  %v7274_v26 = vld [vmem:[#allocation6 + $0x2e8] ss:$16 sps:$4 sm:$0xff]  }
 0x29f   :  { %5502 = vmatpush1.bf16.msra.mxu0 %v7199_v27  ;;  %v7279_v27 = vld [vmem:[#allocation6 + $0x304] ss:$16 sps:$4 sm:$0xff]  }
 0x2a0   :  { %5666 = vmatpush1.bf16.msra.mxu1 %v7202_v12  ;;  %5503 = vmatprep.subr.bf16.mxu0 %v7207_v28  ;;  %v7282_v12 = vld [vmem:[#allocation6 + $0x30c] ss:$16 sps:$4 sm:$0xff]   ;;  %v7277_v28 = vld [vmem:[#allocation6 + $0x300] ss:$16 sps:$4 sm:$0xff]  }
 0x2a1   :  { %5667 = vmatprep.subr.bf16.mxu1 %v7210_v29  ;;  %v7280_v29 = vld [vmem:[#allocation6 + $0x308] ss:$16 sps:$4 sm:$0xff]  }
 0x2a3   :  { %5504 = vmatpush1.bf16.msra.mxu0 %v7205_v30  ;;  %v7285_v30 = vld [vmem:[#allocation6 + $0x324] ss:$16 sps:$4 sm:$0xff]  }
 0x2a4   :  { %5668 = vmatpush1.bf16.msra.mxu1 %v7208_v32  ;;  %5505 = vmatprep.subr.bf16.mxu0 %v7213_v33  ;;  %v7288_v32 = vld [vmem:[#allocation6 + $0x32c] ss:$16 sps:$4 sm:$0xff]   ;;  %v7283_v33 = vld [vmem:[#allocation6 + $0x320] ss:$16 sps:$4 sm:$0xff]  }
 0x2a5   :  { %5669 = vmatprep.subr.bf16.mxu1 %v7216_v15  ;;  %v7286_v15 = vld [vmem:[#allocation6 + $0x328] ss:$16 sps:$4 sm:$0xff]  }
 0x2a7   :  { %5506 = vmatpush1.bf16.msra.mxu0 %v7211_v36  ;;  %v7291_v36 = vld [vmem:[#allocation6 + $0x344] ss:$16 sps:$4 sm:$0xff]  }
 0x2a8   :  { %5670 = vmatpush1.bf16.msra.mxu1 %v7214_v23  ;;  %5507 = vmatprep.subr.bf16.mxu0 %v7219_v37  ;;  %v7289_v23 = vld [vmem:[#allocation6 + $0x340] ss:$16 sps:$4 sm:$0xff]   ;;  %v7292_v37 = vld [vmem:[#allocation6 + $0x348] ss:$16 sps:$4 sm:$0xff]  }
 0x2a9   :  { %5671 = vmatprep.subr.bf16.mxu1 %v7222_v40  ;;  %v7297_v40 = vld [vmem:[#allocation6 + $0x364] ss:$16 sps:$4 sm:$0xff]  }
 0x2ab   :  { %5508 = vmatpush1.bf16.msra.mxu0 %v7217_v42  ;;  %v7295_v42 = vld [vmem:[#allocation6 + $0x360] ss:$16 sps:$4 sm:$0xff]  }
 0x2ac   :  { %5672 = vmatpush1.bf16.msra.mxu1 %v7220_v39  ;;  %5509 = vmatprep.subr.bf16.mxu0 %v7225_v43  ;;  %v7303_v39 = vld [vmem:[#allocation6 + $0x384] ss:$16 sps:$4 sm:$0xff]   ;;  %v7306_v43 = vld [vmem:[#allocation6 + $0x38c] ss:$16 sps:$4 sm:$0xff]  }
 0x2ad   :  { %5673 = vmatprep.subr.bf16.mxu1 %v7228_v44  ;;  %v7301_v44 = vld [vmem:[#allocation6 + $0x380] ss:$16 sps:$4 sm:$0xff]  }
 0x2af   :  { %5510 = vmatpush1.bf16.msra.mxu0 %v7223_v46  ;;  %v7304_v46 = vld [vmem:[#allocation6 + $0x388] ss:$16 sps:$4 sm:$0xff]  }
 0x2b0   :  { %5674 = vmatpush1.bf16.msra.mxu1 %v7226_v47  ;;  %5520 = vmatprep.subr.bf16.mxu0 %v7231_v24  ;;  %v7312_v47 = vld [vmem:[#allocation6 + $0x3ac] ss:$16 sps:$4 sm:$0xff]   ;;  %v7307_v24 = vld [vmem:[#allocation6 + $0x3a0] ss:$16 sps:$4 sm:$0xff]  }
 0x2b1   :  { %5684 = vmatprep.subr.bf16.mxu1 %v7234_v55  ;;  %v632_v55 = vrot.slane %v7911_v19, %v631_v45 }
 0x2b2   :  { %5512 = vmatmul.mubr.bf16.vlgmr.msra.gmra.mrb[8].mxu0 %v3913_v50 }
 0x2b3   :  { %5676 = vmatmul.mubr.bf16.vlgmr.msra.gmra.mrb[8].mxu1 %v3913_v50  ;;  %5521 = vmatpush1.bf16.msra.mxu0 %v7229_v4  ;;  %v7315_v4 = vld [vmem:[#allocation6 + $0x3c4] ss:$16 sps:$4 sm:$0xff]   ;;  %v7318_v50 = vld [vmem:[#allocation6 + $0x3cc] ss:$16 sps:$4 sm:$0xff]  }
 0x2b4   :  { %5552 = vmatprep.mubr.bf16.mxu0 %v3916_v52  ;;  %5685 = vmatpush1.bf16.msra.mxu1 %v7232_v48  ;;  %v7313_v48 = vld [vmem:[#allocation6 + $0x3c0] ss:$16 sps:$4 sm:$0xff]  }
 0x2b5   :  { %5716 = vmatprep.mubr.bf16.mxu1 %v3916_v52  ;;  %5522 = vmatprep.subr.bf16.mxu0 %v7237_v51  ;;  %v7031_v51 = vadd.f32 %v7902_v8, %v632_v55  ;;  %v7316_v52 = vld [vmem:[#allocation6 + $0x3c8] ss:$16 sps:$4 sm:$0xff]   ;;  %v7396_v55 = vld [vmem:[#allocation6 + $0x56c] ss:$16 sps:$4 sm:$0xff]  }
 0x2b6   :  { %5686 = vmatprep.subr.bf16.mxu1 %v7240_v13  ;;  %v7321_v13 = vld [vmem:[#allocation6 + $0x3e4] ss:$16 sps:$4 sm:$0xff]   ;;  %v7328_v8 = vld [vmem:[#allocation6 + $0x408] ss:$16 sps:$4 sm:$0xff]  }
 0x2b7   :  { %5523 = vmatpush1.bf16.msra.mxu0 %v7235_v54  ;;  %v7324_v54 = vld [vmem:[#allocation6 + $0x3ec] ss:$16 sps:$4 sm:$0xff]  }
 0x2b8   :  { %5687 = vmatpush1.bf16.msra.mxu1 %v7238_v56  ;;  %5524 = vmatprep.subr.bf16.mxu0 %v7243_v58  ;;  %v7319_v56 = vld [vmem:[#allocation6 + $0x3e0] ss:$16 sps:$4 sm:$0xff]   ;;  %v3907_v58 = vmax.f32 %v7031_v51, 0.0 }
 0x2b9   :  { %5688 = vmatprep.subr.bf16.mxu1 %v7246_v59  ;;  %v7322_v59 = vld [vmem:[#allocation6 + $0x3e8] ss:$16 sps:$4 sm:$0xff]   ;;  %v7397_v51 = vld [vmem:[#allocation6 + $0x580] ss:$16 sps:$4 sm:$0xff]  }
 0x2bb   :  { %5525 = vmatpush1.bf16.msra.mxu0 %v7241_v60  ;;  %v7327_v60 = vld [vmem:[#allocation6 + $0x404] ss:$16 sps:$4 sm:$0xff]  }
 0x2bc   :  { %5689 = vmatpush1.bf16.msra.mxu1 %v7244_v61  ;;  %5526 = vmatprep.subr.bf16.mxu0 %v7249_v62  ;;  %v7330_v61 = vld [vmem:[#allocation6 + $0x40c] ss:$16 sps:$4 sm:$0xff]   ;;  %v7325_v62 = vld [vmem:[#allocation6 + $0x400] ss:$16 sps:$4 sm:$0xff]  }
 0x2bd   :  { %5690 = vmatprep.subr.bf16.mxu1 %v7252_v63  ;;  %v3915_v63 = vpack.c.bf16 %v3907_v58, %v3907_v58  ;;  %v7406_v58 = vld [vmem:[#allocation6 + $0x5a8] ss:$16 sps:$4 sm:$0xff]  }
 0x2bf   :  { %5527 = vmatpush1.bf16.msra.mxu0 %v7247_v0  ;;  %v7333_v0 = vld [vmem:[#allocation6 + $0x424] ss:$16 sps:$4 sm:$0xff]  }
 0x2c0   :  { %5691 = vmatpush1.bf16.msra.mxu1 %v7250_v1  ;;  %5528 = vmatprep.subr.bf16.mxu0 %v7255_v38  ;;  %v7336_v1 = vld [vmem:[#allocation6 + $0x42c] ss:$16 sps:$4 sm:$0xff]   ;;  %v7331_v38 = vld [vmem:[#allocation6 + $0x420] ss:$16 sps:$4 sm:$0xff]  }
 0x2c1   :  { %5692 = vmatprep.subr.bf16.mxu1 %v7258_v3  ;;  %v7334_v3 = vld [vmem:[#allocation6 + $0x428] ss:$16 sps:$4 sm:$0xff]  }
 0x2c3   :  { %5529 = vmatpush1.bf16.msra.mxu0 %v7253_v5  ;;  %v7339_v5 = vld [vmem:[#allocation6 + $0x444] ss:$16 sps:$4 sm:$0xff]  }
 0x2c4   :  { %5693 = vmatpush1.bf16.msra.mxu1 %v7256_v6  ;;  %5530 = vmatprep.subr.bf16.mxu0 %v7261_v7  ;;  %v7342_v6 = vld [vmem:[#allocation6 + $0x44c] ss:$16 sps:$4 sm:$0xff]   ;;  %v7337_v7 = vld [vmem:[#allocation6 + $0x440] ss:$16 sps:$4 sm:$0xff]  }
 0x2c5   :  { %5694 = vmatprep.subr.bf16.mxu1 %v7264_v10  ;;  %v7340_v10 = vld [vmem:[#allocation6 + $0x448] ss:$16 sps:$4 sm:$0xff]  }
 0x2c7   :  { %5531 = vmatpush1.bf16.msra.mxu0 %v7259_v11  ;;  %v7345_v11 = vld [vmem:[#allocation6 + $0x464] ss:$16 sps:$4 sm:$0xff]  }
 0x2c8   :  { %5695 = vmatpush1.bf16.msra.mxu1 %v7262_v14  ;;  %5532 = vmatprep.subr.bf16.mxu0 %v7267_v17  ;;  %v7348_v14 = vld [vmem:[#allocation6 + $0x46c] ss:$16 sps:$4 sm:$0xff]   ;;  %v7343_v17 = vld [vmem:[#allocation6 + $0x460] ss:$16 sps:$4 sm:$0xff]  }
 0x2c9   :  { %5696 = vmatprep.subr.bf16.mxu1 %v7270_v18  ;;  %v7346_v18 = vld [vmem:[#allocation6 + $0x468] ss:$16 sps:$4 sm:$0xff]  }
 0x2cb   :  { %5533 = vmatpush1.bf16.msra.mxu0 %v7265_v20  ;;  %v7351_v20 = vld [vmem:[#allocation6 + $0x484] ss:$16 sps:$4 sm:$0xff]  }
 0x2cc   :  { %5697 = vmatpush1.bf16.msra.mxu1 %v7268_v21  ;;  %5534 = vmatprep.subr.bf16.mxu0 %v7273_v22  ;;  %v7354_v21 = vld [vmem:[#allocation6 + $0x48c] ss:$16 sps:$4 sm:$0xff]   ;;  %v7349_v22 = vld [vmem:[#allocation6 + $0x480] ss:$16 sps:$4 sm:$0xff]  }
 0x2cd   :  { %5698 = vmatprep.subr.bf16.mxu1 %v7276_v57  ;;  %v7352_v57 = vld [vmem:[#allocation6 + $0x488] ss:$16 sps:$4 sm:$0xff]  }
 0x2cf   :  { %5535 = vmatpush1.bf16.msra.mxu0 %v7271_v53  ;;  %v7357_v53 = vld [vmem:[#allocation6 + $0x4a4] ss:$16 sps:$4 sm:$0xff]  }
 0x2d0   :  { %5699 = vmatpush1.bf16.msra.mxu1 %v7274_v26  ;;  %5536 = vmatprep.subr.bf16.mxu0 %v7279_v27  ;;  %v7360_v26 = vld [vmem:[#allocation6 + $0x4ac] ss:$16 sps:$4 sm:$0xff]   ;;  %v7355_v27 = vld [vmem:[#allocation6 + $0x4a0] ss:$16 sps:$4 sm:$0xff]  }
 0x2d1   :  { %5700 = vmatprep.subr.bf16.mxu1 %v7282_v12  ;;  %v7358_v12 = vld [vmem:[#allocation6 + $0x4a8] ss:$16 sps:$4 sm:$0xff]  }
 0x2d3   :  { %5537 = vmatpush1.bf16.msra.mxu0 %v7277_v28  ;;  %v7363_v28 = vld [vmem:[#allocation6 + $0x4c4] ss:$16 sps:$4 sm:$0xff]  }
 0x2d4   :  { %5701 = vmatpush1.bf16.msra.mxu1 %v7280_v29  ;;  %5538 = vmatprep.subr.bf16.mxu0 %v7285_v30  ;;  %v7366_v29 = vld [vmem:[#allocation6 + $0x4cc] ss:$16 sps:$4 sm:$0xff]   ;;  %v7361_v30 = vld [vmem:[#allocation6 + $0x4c0] ss:$16 sps:$4 sm:$0xff]  }
 0x2d5   :  { %5702 = vmatprep.subr.bf16.mxu1 %v7288_v32  ;;  %v7364_v32 = vld [vmem:[#allocation6 + $0x4c8] ss:$16 sps:$4 sm:$0xff]  }
 0x2d7   :  { %5539 = vmatpush1.bf16.msra.mxu0 %v7283_v33  ;;  %v7369_v33 = vld [vmem:[#allocation6 + $0x4e4] ss:$16 sps:$4 sm:$0xff]  }
 0x2d8   :  { %5703 = vmatpush1.bf16.msra.mxu1 %v7286_v15  ;;  %5540 = vmatprep.subr.bf16.mxu0 %v7291_v36  ;;  %v7372_v15 = vld [vmem:[#allocation6 + $0x4ec] ss:$16 sps:$4 sm:$0xff]   ;;  %v7367_v36 = vld [vmem:[#allocation6 + $0x4e0] ss:$16 sps:$4 sm:$0xff]  }
 0x2d9   :  { %5704 = vmatprep.subr.bf16.mxu1 %v7294_v25  ;;  %v7370_v25 = vld [vmem:[#allocation6 + $0x4e8] ss:$16 sps:$4 sm:$0xff]  }
 0x2db   :  { %5541 = vmatpush1.bf16.msra.mxu0 %v7289_v23  ;;  %v7375_v23 = vld [vmem:[#allocation6 + $0x504] ss:$16 sps:$4 sm:$0xff]  }
 0x2dc   :  { %5705 = vmatpush1.bf16.msra.mxu1 %v7292_v37  ;;  %5542 = vmatprep.subr.bf16.mxu0 %v7297_v40  ;;  %v7378_v37 = vld [vmem:[#allocation6 + $0x50c] ss:$16 sps:$4 sm:$0xff]   ;;  %v7373_v40 = vld [vmem:[#allocation6 + $0x500] ss:$16 sps:$4 sm:$0xff]  }
 0x2dd   :  { %5706 = vmatprep.subr.bf16.mxu1 %v7300_v41  ;;  %v7376_v41 = vld [vmem:[#allocation6 + $0x508] ss:$16 sps:$4 sm:$0xff]  }
 0x2df   :  { %5543 = vmatpush1.bf16.msra.mxu0 %v7295_v42  ;;  %v7381_v42 = vld [vmem:[#allocation6 + $0x524] ss:$16 sps:$4 sm:$0xff]  }
 0x2e0   :  { %5707 = vmatpush1.bf16.msra.mxu1 %v7298_v9  ;;  %5544 = vmatprep.subr.bf16.mxu0 %v7303_v39  ;;  %v7384_v9 = vld [vmem:[#allocation6 + $0x52c] ss:$16 sps:$4 sm:$0xff]   ;;  %v7379_v39 = vld [vmem:[#allocation6 + $0x520] ss:$16 sps:$4 sm:$0xff]  }
 0x2e1   :  { %5708 = vmatprep.subr.bf16.mxu1 %v7306_v43  ;;  %v7382_v43 = vld [vmem:[#allocation6 + $0x528] ss:$16 sps:$4 sm:$0xff]  }
 0x2e3   :  { %5545 = vmatpush1.bf16.msra.mxu0 %v7301_v44  ;;  %v7387_v44 = vld [vmem:[#allocation6 + $0x544] ss:$16 sps:$4 sm:$0xff]  }
 0x2e4   :  { %5709 = vmatpush1.bf16.msra.mxu1 %v7304_v46  ;;  %5546 = vmatprep.subr.bf16.mxu0 %v7309_v34  ;;  %v7390_v46 = vld [vmem:[#allocation6 + $0x54c] ss:$16 sps:$4 sm:$0xff]   ;;  %v7385_v34 = vld [vmem:[#allocation6 + $0x540] ss:$16 sps:$4 sm:$0xff]  }
 0x2e5   :  { %5710 = vmatprep.subr.bf16.mxu1 %v7312_v47  ;;  %v7388_v47 = vld [vmem:[#allocation6 + $0x548] ss:$16 sps:$4 sm:$0xff]  }
 0x2e7   :  { %5547 = vmatpush1.bf16.msra.mxu0 %v7307_v24  ;;  %v7393_v24 = vld [vmem:[#allocation6 + $0x564] ss:$16 sps:$4 sm:$0xff]  }
 0x2e8   :  { %5711 = vmatpush1.bf16.msra.mxu1 %v7310_v49  ;;  %5548 = vmatprep.subr.bf16.mxu0 %v7315_v4  ;;  %v7391_v49 = vld [vmem:[#allocation6 + $0x560] ss:$16 sps:$4 sm:$0xff]   ;;  %v7394_v4 = vld [vmem:[#allocation6 + $0x568] ss:$16 sps:$4 sm:$0xff]  }
 0x2e9   :  { %5712 = vmatprep.subr.bf16.mxu1 %v7318_v50  ;;  %v7399_v50 = vld [vmem:[#allocation6 + $0x584] ss:$16 sps:$4 sm:$0xff]  }
 0x2eb   :  { %5549 = vmatpush1.bf16.msra.mxu0 %v7313_v48  ;;  %v7402_v48 = vld [vmem:[#allocation6 + $0x58c] ss:$16 sps:$4 sm:$0xff]  }
 0x2ec   :  { %5713 = vmatpush1.bf16.msra.mxu1 %v7316_v52  ;;  %5550 = vmatprep.subr.bf16.mxu0 %v7321_v13  ;;  %v7400_v52 = vld [vmem:[#allocation6 + $0x588] ss:$16 sps:$4 sm:$0xff]   ;;  %v7405_v13 = vld [vmem:[#allocation6 + $0x5a4] ss:$16 sps:$4 sm:$0xff]  }
 0x2ed   :  { %5714 = vmatprep.subr.bf16.mxu1 %v7324_v54  ;;  %v7408_v54 = vld [vmem:[#allocation6 + $0x5ac] ss:$16 sps:$4 sm:$0xff]  }
 0x2ef   :  { %5551 = vmatpush1.bf16.msra.mxu0 %v7319_v56  ;;  %v7403_v56 = vld [vmem:[#allocation6 + $0x5a0] ss:$16 sps:$4 sm:$0xff]  }
 0x2f0   :  { %5715 = vmatpush1.bf16.msra.mxu1 %v7322_v59  ;;  %5561 = vmatprep.subr.bf16.mxu0 %v7327_v60  ;;  %v7411_v59 = vld [vmem:[#allocation6 + $0x5c4] ss:$16 sps:$4 sm:$0xff]   ;;  %v7414_v60 = vld [vmem:[#allocation6 + $0x5cc] ss:$16 sps:$4 sm:$0xff]  }
 0x2f1   :  { %5725 = vmatprep.subr.bf16.mxu1 %v7330_v61  ;;  %v7409_v61 = vld [vmem:[#allocation6 + $0x5c0] ss:$16 sps:$4 sm:$0xff]  }
 0x2f2   :  { %5553 = vmatmul.mubr.bf16.vlgmr.msra.gmra.mrb[8].mxu0 %v3915_v63 }
 0x2f3   :  { %5717 = vmatmul.mubr.bf16.vlgmr.msra.gmra.mrb[8].mxu1 %v3915_v63  ;;  %5562 = vmatpush1.bf16.msra.mxu0 %v7325_v62  ;;  %v7412_v62 = vld [vmem:[#allocation6 + $0x5c8] ss:$16 sps:$4 sm:$0xff]   ;;  %v7417_v63 = vld [vmem:[#allocation6 + $0x5e4] ss:$16 sps:$4 sm:$0xff]  }
 0x2f4   :  { %5726 = vmatpush1.bf16.msra.mxu1 %v7328_v8  ;;  %5563 = vmatprep.subr.bf16.mxu0 %v7333_v0  ;;  %v7420_v8 = vld [vmem:[#allocation6 + $0x5ec] ss:$16 sps:$4 sm:$0xff]   ;;  %v7415_v0 = vld [vmem:[#allocation6 + $0x5e0] ss:$16 sps:$4 sm:$0xff]  }
 0x2f5   :  { %5727 = vmatprep.subr.bf16.mxu1 %v7336_v1  ;;  %v7418_v1 = vld [vmem:[#allocation6 + $0x5e8] ss:$16 sps:$4 sm:$0xff]  }
 0x2f7   :  { %5564 = vmatpush1.bf16.msra.mxu0 %v7331_v38  ;;  %v7423_v38 = vld [vmem:[#allocation6 + $0x604] ss:$16 sps:$4 sm:$0xff]  }
 0x2f8   :  { %5728 = vmatpush1.bf16.msra.mxu1 %v7334_v3  ;;  %5565 = vmatprep.subr.bf16.mxu0 %v7339_v5  ;;  %v7426_v3 = vld [vmem:[#allocation6 + $0x60c] ss:$16 sps:$4 sm:$0xff]   ;;  %v639_v5 = vsub.s32 4, %v7908_v2 }
 0x2f9   :  { %5729 = vmatprep.subr.bf16.mxu1 %v7342_v6  ;;  %v643_v6 = vsub.s32 5, %v7908_v2 }
 0x2fb   :  { %5566 = vmatpush1.bf16.msra.mxu0 %v7337_v7  ;;  %v651_v7 = vsub.s32 7, %v7908_v2 }
 0x2fc   :  { %5730 = vmatpush1.bf16.msra.mxu1 %v7340_v10  ;;  %5567 = vmatprep.subr.bf16.mxu0 %v7345_v11  ;;  %v640_v10 = vrot.slane %v7911_v19, %v639_v5  ;;  %v644_v11 = vrot.slane %v7911_v19, %v643_v6  ;;  %v7475_v5 = vld [vmem:[#allocation6 + $0x720] ss:$16 sps:$4 sm:$0xff]   ;;  %v7478_v6 = vld [vmem:[#allocation6 + $0x728] ss:$16 sps:$4 sm:$0xff]  }
 0x2fd   :  { %5731 = vmatprep.subr.bf16.mxu1 %v7348_v14  ;;  %v652_v14 = vrot.slane %v7911_v19, %v651_v7  ;;  %v7429_v19 = vld [vmem:[#allocation6 + $0x624] ss:$16 sps:$4 sm:$0xff]  }
 0x2fe   :  { %v7483_v7 = vld [vmem:[#allocation6 + $0x744] ss:$16 sps:$4 sm:$0xff]  }
 0x2ff   :  { %5568 = vmatpush1.bf16.msra.mxu0 %v7343_v17 }
 0x300   :  { %5732 = vmatpush1.bf16.msra.mxu1 %v7346_v18  ;;  %5569 = vmatprep.subr.bf16.mxu0 %v7351_v20 }
 0x301   :  { %5733 = vmatprep.subr.bf16.mxu1 %v7354_v21 }
 0x303   :  { %5570 = vmatpush1.bf16.msra.mxu0 %v7349_v22 }
 0x304   :  { %5734 = vmatpush1.bf16.msra.mxu1 %v7352_v57  ;;  %5571 = vmatprep.subr.bf16.mxu0 %v7357_v53 }
 0x305   :  { %5735 = vmatprep.subr.bf16.mxu1 %v7360_v26 }
 0x307   :  { %5572 = vmatpush1.bf16.msra.mxu0 %v7355_v27 }
 0x308   :  { %5736 = vmatpush1.bf16.msra.mxu1 %v7358_v12  ;;  %5573 = vmatprep.subr.bf16.mxu0 %v7363_v28 }
 0x309   :  { %5737 = vmatprep.subr.bf16.mxu1 %v7366_v29 }
 0x30b   :  { %5574 = vmatpush1.bf16.msra.mxu0 %v7361_v30 }
 0x30c   :  { %5738 = vmatpush1.bf16.msra.mxu1 %v7364_v32  ;;  %5575 = vmatprep.subr.bf16.mxu0 %v7369_v33 }
 0x30d   :  { %5739 = vmatprep.subr.bf16.mxu1 %v7372_v15  ;;  %v7421_v15 = vld [vmem:[#allocation6 + $0x600] ss:$16 sps:$4 sm:$0xff]  }
 0x30f   :  { %5576 = vmatpush1.bf16.msra.mxu0 %v7367_v36  ;;  %v7424_v36 = vld [vmem:[#allocation6 + $0x608] ss:$16 sps:$4 sm:$0xff]  }
 0x310   :  { %5740 = vmatpush1.bf16.msra.mxu1 %v7370_v25  ;;  %5577 = vmatprep.subr.bf16.mxu0 %v7375_v23  ;;  %v7432_v23 = vld [vmem:[#allocation6 + $0x62c] ss:$16 sps:$4 sm:$0xff]  }
 0x311   :  { %5741 = vmatprep.subr.bf16.mxu1 %v7378_v37 }
 0x313   :  { %5578 = vmatpush1.bf16.msra.mxu0 %v7373_v40  ;;  %v7427_v40 = vld [vmem:[#allocation6 + $0x620] ss:$16 sps:$4 sm:$0xff]  }
 0x314   :  { %5742 = vmatpush1.bf16.msra.mxu1 %v7376_v41  ;;  %5579 = vmatprep.subr.bf16.mxu0 %v7381_v42  ;;  %v7430_v41 = vld [vmem:[#allocation6 + $0x628] ss:$16 sps:$4 sm:$0xff]   ;;  %v7435_v42 = vld [vmem:[#allocation6 + $0x644] ss:$16 sps:$4 sm:$0xff]  }
 0x315   :  { %5743 = vmatprep.subr.bf16.mxu1 %v7384_v9  ;;  %v7438_v9 = vld [vmem:[#allocation6 + $0x64c] ss:$16 sps:$4 sm:$0xff]  }
 0x317   :  { %5580 = vmatpush1.bf16.msra.mxu0 %v7379_v39  ;;  %v7433_v39 = vld [vmem:[#allocation6 + $0x640] ss:$16 sps:$4 sm:$0xff]  }
 0x318   :  { %5744 = vmatpush1.bf16.msra.mxu1 %v7382_v43  ;;  %5581 = vmatprep.subr.bf16.mxu0 %v7387_v44  ;;  %v7436_v43 = vld [vmem:[#allocation6 + $0x648] ss:$16 sps:$4 sm:$0xff]   ;;  %v7441_v44 = vld [vmem:[#allocation6 + $0x664] ss:$16 sps:$4 sm:$0xff]  }
 0x319   :  { %5745 = vmatprep.subr.bf16.mxu1 %v7390_v46  ;;  %v7444_v46 = vld [vmem:[#allocation6 + $0x66c] ss:$16 sps:$4 sm:$0xff]  }
 0x31b   :  { %5582 = vmatpush1.bf16.msra.mxu0 %v7385_v34  ;;  %v7439_v34 = vld [vmem:[#allocation6 + $0x660] ss:$16 sps:$4 sm:$0xff]  }
 0x31c   :  { %5746 = vmatpush1.bf16.msra.mxu1 %v7388_v47  ;;  %5583 = vmatprep.subr.bf16.mxu0 %v7393_v24  ;;  %v7442_v47 = vld [vmem:[#allocation6 + $0x668] ss:$16 sps:$4 sm:$0xff]   ;;  %v7447_v24 = vld [vmem:[#allocation6 + $0x684] ss:$16 sps:$4 sm:$0xff]  }
 0x31d   :  { %5747 = vmatprep.subr.bf16.mxu1 %v7396_v55  ;;  %v7450_v55 = vld [vmem:[#allocation6 + $0x68c] ss:$16 sps:$4 sm:$0xff]  }
 0x31f   :  { %5584 = vmatpush1.bf16.msra.mxu0 %v7391_v49  ;;  %v7445_v49 = vld [vmem:[#allocation6 + $0x680] ss:$16 sps:$4 sm:$0xff]  }
 0x320   :  { %5748 = vmatpush1.bf16.msra.mxu1 %v7394_v4  ;;  %5585 = vmatprep.subr.bf16.mxu0 %v7399_v50  ;;  %v7448_v4 = vld [vmem:[#allocation6 + $0x688] ss:$16 sps:$4 sm:$0xff]   ;;  %v7453_v50 = vld [vmem:[#allocation6 + $0x6a4] ss:$16 sps:$4 sm:$0xff]  }
 0x321   :  { %5749 = vmatprep.subr.bf16.mxu1 %v7402_v48  ;;  %v7456_v48 = vld [vmem:[#allocation6 + $0x6ac] ss:$16 sps:$4 sm:$0xff]  }
 0x323   :  { %5586 = vmatpush1.bf16.msra.mxu0 %v7397_v51  ;;  %v7451_v51 = vld [vmem:[#allocation6 + $0x6a0] ss:$16 sps:$4 sm:$0xff]  }
 0x324   :  { %5750 = vmatpush1.bf16.msra.mxu1 %v7400_v52  ;;  %5587 = vmatprep.subr.bf16.mxu0 %v7405_v13  ;;  %v7454_v52 = vld [vmem:[#allocation6 + $0x6a8] ss:$16 sps:$4 sm:$0xff]   ;;  %v7459_v13 = vld [vmem:[#allocation6 + $0x6c4] ss:$16 sps:$4 sm:$0xff]  }
 0x325   :  { %5751 = vmatprep.subr.bf16.mxu1 %v7408_v54  ;;  %v7462_v54 = vld [vmem:[#allocation6 + $0x6cc] ss:$16 sps:$4 sm:$0xff]  }
 0x327   :  { %5588 = vmatpush1.bf16.msra.mxu0 %v7403_v56  ;;  %v7457_v56 = vld [vmem:[#allocation6 + $0x6c0] ss:$16 sps:$4 sm:$0xff]  }
 0x328   :  { %5752 = vmatpush1.bf16.msra.mxu1 %v7406_v58  ;;  %5589 = vmatprep.subr.bf16.mxu0 %v7411_v59  ;;  %v7460_v58 = vld [vmem:[#allocation6 + $0x6c8] ss:$16 sps:$4 sm:$0xff]   ;;  %v7465_v59 = vld [vmem:[#allocation6 + $0x6e4] ss:$16 sps:$4 sm:$0xff]  }
 0x329   :  { %5753 = vmatprep.subr.bf16.mxu1 %v7414_v60  ;;  %v7468_v60 = vld [vmem:[#allocation6 + $0x6ec] ss:$16 sps:$4 sm:$0xff]  }
 0x32b   :  { %5590 = vmatpush1.bf16.msra.mxu0 %v7409_v61  ;;  %v7463_v61 = vld [vmem:[#allocation6 + $0x6e0] ss:$16 sps:$4 sm:$0xff]  }
 0x32c   :  { %5754 = vmatpush1.bf16.msra.mxu1 %v7412_v62  ;;  %5591 = vmatprep.subr.bf16.mxu0 %v7417_v63  ;;  %v7466_v62 = vld [vmem:[#allocation6 + $0x6e8] ss:$16 sps:$4 sm:$0xff]   ;;  %v7471_v63 = vld [vmem:[#allocation6 + $0x704] ss:$16 sps:$4 sm:$0xff]  }
 0x32d   :  { %5755 = vmatprep.subr.bf16.mxu1 %v7420_v8  ;;  %v7474_v8 = vld [vmem:[#allocation6 + $0x70c] ss:$16 sps:$4 sm:$0xff]  }
 0x32f   :  { %5592 = vmatpush1.bf16.msra.mxu0 %v7415_v0  ;;  %v7469_v0 = vld [vmem:[#allocation6 + $0x700] ss:$16 sps:$4 sm:$0xff]  }
 0x330   :  { %5756 = vmatpush1.bf16.msra.mxu1 %v7418_v1  ;;  %5602 = vmatprep.subr.bf16.mxu0 %v7423_v38  ;;  %v7472_v1 = vld [vmem:[#allocation6 + $0x708] ss:$16 sps:$4 sm:$0xff]   ;;  %v7477_v38 = vld [vmem:[#allocation6 + $0x724] ss:$16 sps:$4 sm:$0xff]  }
 0x331   :  { %5766 = vmatprep.subr.bf16.mxu1 %v7426_v3  ;;  %v7480_v3 = vld [vmem:[#allocation6 + $0x72c] ss:$16 sps:$4 sm:$0xff]  }
 0x345   :  { %v3734_v17 = vpop.f32.mrb[4].mxu0  ;;  %v7940_v20 = vpop.f32.mrb[4].mxu1 }
 0x346   :  { %v7033_v18 = vadd.f32 %v3734_v17, %v640_v10  ;;  %v3736_v21 = vpop.f32.mrb[5].mxu0  ;;  %v3900_v57 = vpop.f32.mrb[5].mxu1  ;;  %v7486_v10 = vld [vmem:[#allocation6 + $0x74c] ss:$16 sps:$4 sm:$0xff]   ;;  %v7489_v17 = vld [vmem:[#allocation6 + $0x764] ss:$16 sps:$4 sm:$0xff]  }
 0x347   :  { %v7034_v22 = vadd.f32 %v3736_v21, %v644_v11  ;;  %v3738_v53 = vpop.f32.mrb[6].mxu0  ;;  %v7036_v27 = vadd.f32 %v3900_v57, %v652_v14  ;;  %v3902_v12 = vpop.f32.mrb[6].mxu1  ;;  %v7481_v11 = vld [vmem:[#allocation6 + $0x740] ss:$16 sps:$4 sm:$0xff]   ;;  %v7484_v14 = vld [vmem:[#allocation6 + $0x748] ss:$16 sps:$4 sm:$0xff]  }
 0x348   :  { %v3909_v26 = vmax.f32 %v7033_v18, 0.0  ;;  %v3739_v28 = vpop.f32.mrb[7].mxu0  ;;  %v3903_v30 = vpop.f32.mrb[7].mxu1  ;;  %v7492_v18 = vld [vmem:[#allocation6 + $0x76c] ss:$16 sps:$4 sm:$0xff]   ;;  %v647_v12 = vsub.s32 6, %v7908_v2 }
 0x349   :  { %v3910_v29 = vmax.f32 %v7034_v22, 0.0  ;;  %v3912_v32 = vmax.f32 %v7036_v27, 0.0  ;;  %v7487_v21 = vld [vmem:[#allocation6 + $0x760] ss:$16 sps:$4 sm:$0xff]   ;;  %v7490_v22 = vld [vmem:[#allocation6 + $0x768] ss:$16 sps:$4 sm:$0xff]  }
 0x34a   :  { %v3917_v25 = vpack.c.bf16 %v3909_v26, %v3909_v26  ;;  %v7495_v57 = vld [vmem:[#allocation6 + $0x784] ss:$16 sps:$4 sm:$0xff]   ;;  %v7498_v53 = vld [vmem:[#allocation6 + $0x78c] ss:$16 sps:$4 sm:$0xff]   ;;  %v7493_v26 = vld [vmem:[#allocation6 + $0x780] ss:$16 sps:$4 sm:$0xff]  }
 0x34b   :  { %v3918_v33 = vpack.c.bf16 %v3910_v29, %v3910_v29  ;;  %v3920_v37 = vpack.c.bf16 %v3912_v32, %v3912_v32  ;;  %v7496_v27 = vld [vmem:[#allocation6 + $0x788] ss:$16 sps:$4 sm:$0xff]   ;;  %v7501_v28 = vld [vmem:[#allocation6 + $0x7a4] ss:$16 sps:$4 sm:$0xff]   ;;  %v7504_v29 = vld [vmem:[#allocation6 + $0x7ac] ss:$16 sps:$4 sm:$0xff]  }
 0x34c   :  { %v7499_v30 = vld [vmem:[#allocation6 + $0x7a0] ss:$16 sps:$4 sm:$0xff]   ;;  %v7502_v32 = vld [vmem:[#allocation6 + $0x7a8] ss:$16 sps:$4 sm:$0xff]  }
 0x34d   :  { %5593 = vmatprep.mubr.bf16.mxu0 %v3918_v33  ;;  %5757 = vmatprep.mubr.bf16.mxu1 %v3918_v33  ;;  %v7553_v33 = vld [vmem:[#allocation4] sm:$0xff] }
 0x34e   :  { %5594 = vmatmul.mubr.bf16.vlgmr.msra.gmra.mrb[8].mxu0 %v3917_v25  ;;  %5758 = vmatmul.mubr.bf16.vlgmr.msra.gmra.mrb[8].mxu1 %v3917_v25  ;;  %v7510_v25 = vld [vmem:[#allocation6 + $0x7cc] ss:$16 sps:$4 sm:$0xff]  }
 0x34f   :  { %5603 = vmatpush1.bf16.msra.mxu0 %v7421_v15  ;;  %5767 = vmatpush1.bf16.msra.mxu1 %v7424_v36  ;;  %v648_v15 = vrot.slane %v7553_v33, %v647_v12  ;;  %v7507_v36 = vld [vmem:[#allocation6 + $0x7c4] ss:$16 sps:$4 sm:$0xff]  }
 0x350   :  { %5634 = vmatprep.mubr.bf16.mxu0 %v3920_v37  ;;  %5798 = vmatprep.mubr.bf16.mxu1 %v3920_v37 }
 0x351   :  { %5604 = vmatprep.subr.bf16.mxu0 %v7429_v19  ;;  %5768 = vmatprep.subr.bf16.mxu1 %v7432_v23  ;;  %v7505_v19 = vld [vmem:[#allocation6 + $0x7c0] ss:$16 sps:$4 sm:$0xff]   ;;  %v7508_v23 = vld [vmem:[#allocation6 + $0x7c8] ss:$16 sps:$4 sm:$0xff]   ;;  %v7035_v37 = vadd.f32 %v7940_v20, %v648_v15 }
 0x352   :  { %v7521_v20 = vld [vmem:[#allocation9 + $0x48] sm:$0xff]  }
 0x353   :  { %5605 = vmatpush1.bf16.msra.mxu0 %v7427_v40  ;;  %5769 = vmatpush1.bf16.msra.mxu1 %v7430_v41  ;;  %v7513_v40 = vld [vmem:[#allocation6 + $0x7e4] ss:$16 sps:$4 sm:$0xff]   ;;  %v7516_v41 = vld [vmem:[#allocation6 + $0x7ec] ss:$16 sps:$4 sm:$0xff]  }
 0x354   :  { %5606 = vmatprep.subr.bf16.mxu0 %v7435_v42  ;;  %5770 = vmatprep.subr.bf16.mxu1 %v7438_v9  ;;  %v7511_v42 = vld [vmem:[#allocation6 + $0x7e0] ss:$16 sps:$4 sm:$0xff]   ;;  %v7514_v9 = vld [vmem:[#allocation6 + $0x7e8] ss:$16 sps:$4 sm:$0xff]  }
 0x357   :  { %5607 = vmatpush1.bf16.msra.mxu0 %v7433_v39  ;;  %5771 = vmatpush1.bf16.msra.mxu1 %v7436_v43  ;;  %v3911_v39 = vmax.f32 %v7035_v37, 0.0  ;;  %v7517_v43 = vld [vmem:[#allocation9 + $0x40] sm:$0xff]  }
 0x358   :  { %5608 = vmatprep.subr.bf16.mxu0 %v7441_v44  ;;  %5772 = vmatprep.subr.bf16.mxu1 %v7444_v46  ;;  %v7518_v44 = vld [vmem:[#allocation9 + $0xc0] sm:$0xff]  }
 0x359   :  { %v7519_v46 = vld [vmem:[#allocation9] sm:$0xff]  }
 0x35b   :  { %5609 = vmatpush1.bf16.msra.mxu0 %v7439_v34  ;;  %5773 = vmatpush1.bf16.msra.mxu1 %v7442_v47  ;;  %v7520_v34 = vld [vmem:[#allocation9 + $0x80] sm:$0xff]   ;;  %v3919_v47 = vpack.c.bf16 %v3911_v39, %v3911_v39 }
 0x35c   :  { %5610 = vmatprep.subr.bf16.mxu0 %v7447_v24  ;;  %5774 = vmatprep.subr.bf16.mxu1 %v7450_v55  ;;  %v7522_v24 = vld [vmem:[#allocation9 + $0xc8] sm:$0xff]  }
 0x35d   :  { %v7523_v55 = vld [vmem:[#allocation9 + $0x8] sm:$0xff]  }
 0x35f   :  { %5611 = vmatpush1.bf16.msra.mxu0 %v7445_v49  ;;  %5775 = vmatpush1.bf16.msra.mxu1 %v7448_v4  ;;  %v7524_v49 = vld [vmem:[#allocation9 + $0x88] sm:$0xff]   ;;  %v7525_v4 = vld [vmem:[#allocation9 + $0x50] sm:$0xff]  }
 0x360   :  { %5612 = vmatprep.subr.bf16.mxu0 %v7453_v50  ;;  %5776 = vmatprep.subr.bf16.mxu1 %v7456_v48  ;;  %v7526_v50 = vld [vmem:[#allocation9 + $0xd0] sm:$0xff]  }
 0x361   :  { %v7527_v48 = vld [vmem:[#allocation9 + $0x10] sm:$0xff]  }
 0x363   :  { %5613 = vmatpush1.bf16.msra.mxu0 %v7451_v51  ;;  %5777 = vmatpush1.bf16.msra.mxu1 %v7454_v52  ;;  %v7528_v51 = vld [vmem:[#allocation9 + $0x90] sm:$0xff]   ;;  %v7529_v52 = vld [vmem:[#allocation9 + $0x58] sm:$0xff]  }
 0x364   :  { %5614 = vmatprep.subr.bf16.mxu0 %v7459_v13  ;;  %5778 = vmatprep.subr.bf16.mxu1 %v7462_v54  ;;  %v7530_v13 = vld [vmem:[#allocation9 + $0xd8] sm:$0xff]  }
 0x365   :  { %v7531_v54 = vld [vmem:[#allocation9 + $0x18] sm:$0xff]  }
 0x367   :  { %5615 = vmatpush1.bf16.msra.mxu0 %v7457_v56  ;;  %5779 = vmatpush1.bf16.msra.mxu1 %v7460_v58  ;;  %v7532_v56 = vld [vmem:[#allocation9 + $0x98] sm:$0xff]   ;;  %v7533_v58 = vld [vmem:[#allocation9 + $0x60] sm:$0xff]  }
 0x368   :  { %5616 = vmatprep.subr.bf16.mxu0 %v7465_v59  ;;  %5780 = vmatprep.subr.bf16.mxu1 %v7468_v60  ;;  %v7534_v59 = vld [vmem:[#allocation9 + $0xe0] sm:$0xff]  }
 0x369   :  { %v7535_v60 = vld [vmem:[#allocation9 + $0x20] sm:$0xff]  }
 0x36b   :  { %5617 = vmatpush1.bf16.msra.mxu0 %v7463_v61  ;;  %5781 = vmatpush1.bf16.msra.mxu1 %v7466_v62  ;;  %v7536_v61 = vld [vmem:[#allocation9 + $0xa0] sm:$0xff]   ;;  %v7537_v62 = vld [vmem:[#allocation9 + $0x68] sm:$0xff]  }
 0x36c   :  { %5618 = vmatprep.subr.bf16.mxu0 %v7471_v63  ;;  %5782 = vmatprep.subr.bf16.mxu1 %v7474_v8  ;;  %v7538_v63 = vld [vmem:[#allocation9 + $0xe8] sm:$0xff]  }
 0x36d   :  { %v7539_v8 = vld [vmem:[#allocation9 + $0x28] sm:$0xff]  }
 0x36f   :  { %5619 = vmatpush1.bf16.msra.mxu0 %v7469_v0  ;;  %5783 = vmatpush1.bf16.msra.mxu1 %v7472_v1  ;;  %v7540_v0 = vld [vmem:[#allocation9 + $0xa8] sm:$0xff]   ;;  %v7541_v1 = vld [vmem:[#allocation9 + $0x70] sm:$0xff]  }
 0x370   :  { %5620 = vmatprep.subr.bf16.mxu0 %v7477_v38  ;;  %5784 = vmatprep.subr.bf16.mxu1 %v7480_v3  ;;  %v7542_v38 = vld [vmem:[#allocation9 + $0xf0] sm:$0xff]  }
 0x371   :  { %v7543_v3 = vld [vmem:[#allocation9 + $0x30] sm:$0xff]  }
 0x373   :  { %5621 = vmatpush1.bf16.msra.mxu0 %v7475_v5  ;;  %5785 = vmatpush1.bf16.msra.mxu1 %v7478_v6  ;;  %v7544_v5 = vld [vmem:[#allocation9 + $0xb0] sm:$0xff]   ;;  %v7545_v6 = vld [vmem:[#allocation9 + $0x78] sm:$0xff]  }
 0x374   :  { %5622 = vmatprep.subr.bf16.mxu0 %v7483_v7  ;;  %5786 = vmatprep.subr.bf16.mxu1 %v7486_v10  ;;  %v7546_v7 = vld [vmem:[#allocation9 + $0xf8] sm:$0xff]  }
 0x375   :  { %v7547_v10 = vld [vmem:[#allocation9 + $0x38] sm:$0xff]  }
 0x377   :  { %5623 = vmatpush1.bf16.msra.mxu0 %v7481_v11  ;;  %5787 = vmatpush1.bf16.msra.mxu1 %v7484_v14  ;;  %v7548_v11 = vld [vmem:[#allocation9 + $0xb8] sm:$0xff]  }
 0x378   :  { %5624 = vmatprep.subr.bf16.mxu0 %v7489_v17  ;;  %5788 = vmatprep.subr.bf16.mxu1 %v7492_v18  ;;  %v4177_v14 = vld [vmem:[#allocation7] sm:$0xf] }
 0x379   :  { %v4182_v17 = vrot.slane %v4177_v14, %v623_v31  ;;  %v4190_v18 = vrot.slane %v4177_v14, %v631_v45 }
 0x37b   :  { %5625 = vmatpush1.bf16.msra.mxu0 %v7487_v21  ;;  %5789 = vmatpush1.bf16.msra.mxu1 %v7490_v22  ;;  %v4186_v21 = vrot.slane %v4177_v14, %v627_v16  ;;  %v4194_v22 = vrot.slane %v4177_v14, %v635_v35 }
 0x37c   :  { %5626 = vmatprep.subr.bf16.mxu0 %v7495_v57  ;;  %5790 = vmatprep.subr.bf16.mxu1 %v7498_v53 }
 0x37f   :  { %5627 = vmatpush1.bf16.msra.mxu0 %v7493_v26  ;;  %5791 = vmatpush1.bf16.msra.mxu1 %v7496_v27 }
 0x380   :  { %5628 = vmatprep.subr.bf16.mxu0 %v7501_v28  ;;  %5792 = vmatprep.subr.bf16.mxu1 %v7504_v29 }
 0x383   :  { %5629 = vmatpush1.bf16.msra.mxu0 %v7499_v30  ;;  %5793 = vmatpush1.bf16.msra.mxu1 %v7502_v32 }
 0x384   :  { %5630 = vmatprep.subr.bf16.mxu0 %v7507_v36  ;;  %5794 = vmatprep.subr.bf16.mxu1 %v7510_v25 }
 0x387   :  { %5631 = vmatpush1.bf16.msra.mxu0 %v7505_v19  ;;  %5795 = vmatpush1.bf16.msra.mxu1 %v7508_v23 }
 0x388   :  { %5632 = vmatprep.subr.bf16.mxu0 %v7513_v40  ;;  %5796 = vmatprep.subr.bf16.mxu1 %v7516_v41  ;;  %v6952_v41 = vld [vmem:[#allocation10] ss:$0 sm:$0xff] }
 0x38b   :  { %5633 = vmatpush1.bf16.msra.mxu0 %v7511_v42  ;;  %5797 = vmatpush1.bf16.msra.mxu1 %v7514_v9 }
 0x38c   :  { %6985 = vmatprep.subr.bf16.mxu0 %v7517_v43  ;;  %7007 = vmatprep.subr.bf16.mxu1 %v7518_v44 }
 0x38e   :  { %5635 = vmatmul.mubr.bf16.vlgmr.msra.gmra.mrb[8].mxu0 %v3919_v47  ;;  %5799 = vmatmul.mubr.bf16.vlgmr.msra.gmra.mrb[8].mxu1 %v3919_v47 }
 0x38f   :  { %6986 = vmatpush3.bf16.msra.mxu0 %v7519_v46  ;;  %7008 = vmatpush3.bf16.msra.mxu1 %v7520_v34 }
 0x390   :  { %6987 = vmatprep.subr.bf16.mxu0 %v7521_v20  ;;  %7009 = vmatprep.subr.bf16.mxu1 %v7522_v24 }
 0x393   :  { %6988 = vmatpush3.bf16.msra.mxu0 %v7523_v55  ;;  %7010 = vmatpush3.bf16.msra.mxu1 %v7524_v49 }
 0x394   :  { %6989 = vmatprep.subr.bf16.mxu0 %v7525_v4  ;;  %7011 = vmatprep.subr.bf16.mxu1 %v7526_v50 }
 0x397   :  { %6990 = vmatpush3.bf16.msra.mxu0 %v7527_v48  ;;  %7012 = vmatpush3.bf16.msra.mxu1 %v7528_v51 }
 0x398   :  { %6991 = vmatprep.subr.bf16.mxu0 %v7529_v52  ;;  %7013 = vmatprep.subr.bf16.mxu1 %v7530_v13 }
 0x39b   :  { %6992 = vmatpush3.bf16.msra.mxu0 %v7531_v54  ;;  %7014 = vmatpush3.bf16.msra.mxu1 %v7532_v56 }
 0x39c   :  { %6993 = vmatprep.subr.bf16.mxu0 %v7533_v58  ;;  %7015 = vmatprep.subr.bf16.mxu1 %v7534_v59 }
 0x39f   :  { %6994 = vmatpush3.bf16.msra.mxu0 %v7535_v60  ;;  %7016 = vmatpush3.bf16.msra.mxu1 %v7536_v61 }
 0x3a0   :  { %6995 = vmatprep.subr.bf16.mxu0 %v7537_v62  ;;  %7017 = vmatprep.subr.bf16.mxu1 %v7538_v63 }
 0x3a3   :  { %6996 = vmatpush3.bf16.msra.mxu0 %v7539_v8  ;;  %7018 = vmatpush3.bf16.msra.mxu1 %v7540_v0 }
 0x3a4   :  { %6997 = vmatprep.subr.bf16.mxu0 %v7541_v1  ;;  %7019 = vmatprep.subr.bf16.mxu1 %v7542_v38 }
 0x3a7   :  { %6998 = vmatpush3.bf16.msra.mxu0 %v7543_v3  ;;  %7020 = vmatpush3.bf16.msra.mxu1 %v7544_v5 }
 0x3a8   :  { %6999 = vmatprep.subr.bf16.mxu0 %v7545_v6  ;;  %7021 = vmatprep.subr.bf16.mxu1 %v7546_v7 }
 0x3ab   :  { %7000 = vmatpush3.bf16.msra.mxu0 %v7547_v10  ;;  %7022 = vmatpush3.bf16.msra.mxu1 %v7548_v11 }
 0x461   :  { %v5636_v57 = vpop.f32.mrb[8].mxu0  ;;  %v5800_v53 = vpop.f32.mrb[8].mxu1 }
 0x462   :  { %v7037_v26 = vadd.f32 %v5636_v57, %v4182_v17  ;;  %v7039_v27 = vadd.f32 %v5800_v53, %v4190_v18  ;;  %v5638_v12 = vpop.f32.mrb[9].mxu0  ;;  %v5802_v28 = vpop.f32.mrb[9].mxu1 }
 0x463   :  { %v7038_v29 = vadd.f32 %v5638_v12, %v4186_v21  ;;  %v7040_v30 = vadd.f32 %v5802_v28, %v4194_v22  ;;  %v5640_v32 = vpop.f32.mrb[10].mxu0  ;;  %v5804_v33 = vpop.f32.mrb[10].mxu1 }
 0x464   :  { %v5807_v31 = vmax.f32 %v7037_v26, 0.0  ;;  %v5809_v15 = vmax.f32 %v7039_v27, 0.0  ;;  %v5641_v36 = vpop.f32.mrb[11].mxu0  ;;  %v5805_v45 = vpop.f32.mrb[11].mxu1 }
 0x465   :  { %v5808_v25 = vmax.f32 %v7038_v29, 0.0  ;;  %v5810_v19 = vmax.f32 %v7040_v30, 0.0 }
 0x466   :  { %v5811_v2 = vpack.c.bf16 %v5807_v31, %v5807_v31  ;;  %v5813_v35 = vpack.c.bf16 %v5809_v15, %v5809_v15 }
 0x467   :  { %v5812_v16 = vpack.c.bf16 %v5808_v25, %v5808_v25  ;;  %v5814_v23 = vpack.c.bf16 %v5810_v19, %v5810_v19 }
 0x469   :  { %6110 = vmatprep.mubr.bf16.mxu0 %v5812_v16  ;;  %6150 = vmatprep.mubr.bf16.mxu1 %v5814_v23 }
 0x46a   :  { %6111 = vmatmul.mubr.bf16.vlgmr.msra.gmra.mrb[12].mxu0 %v5811_v2  ;;  %6151 = vmatmul.mubr.bf16.vlgmr.msra.gmra.mrb[12].mxu1 %v5813_v35 }
 0x53d   :  { %v7001_v37 = vpop.f32.mrb[12].mxu0  ;;  %v7023_v40 = vpop.f32.mrb[12].mxu1 }
 0x53e   :  { %v7002_v42 = vpop.f32.mrb[13].mxu0  ;;  %v7024_v9 = vpop.f32.mrb[13].mxu1 }
 0x53f   :  { %v7003_v39 = vadd.f32 %v7002_v42, %v7001_v37  ;;  %v7025_v43 = vadd.f32 %v7024_v9, %v7023_v40  ;;  %v7004_v44 = vpop.f32.mrb[14].mxu0  ;;  %v7026_v46 = vpop.f32.mrb[14].mxu1 }
 0x540   :  { %v7005_v34 = vpop.f32.mrb[15].mxu0  ;;  %v7027_v47 = vpop.f32.mrb[15].mxu1 }
 0x541   :  { %v6113_v20 = vadd.f32 %v7003_v39, %v6952_v41 }
 0x543   :  { %v6153_v24 = vadd.f32 %v7025_v43, %v6113_v20 }
 0x545   :  { %6158 = vmax.xlane.f32.xlu0 %v6153_v24 }
 0x5d2   :  { %v6159_v55 = vpop.xlane.xlu0 %6158 }
 0x5d3   :  { %v6160_v49 = vsub.f32 %v6153_v24, %v6159_v55 }
 0x5d5   :  { %v6161_v4 = vmul.f32 1.442695, %v6160_v49 }
 0x5d7   :  { %7549 = vpow2.f32 %v6161_v4 }
 0x5e1   :  { %v7550_v50 = vpop.eup %7549 }
 0x5e2   :  { %6163 = vadd.xlane.f32.xlu0 %v7550_v50 }
 0x66f   :  { %v6164_v48 = vpop.xlane.xlu0 %6163 }
 0x670   :  { %7551 = vrcp.f32 %v6164_v48 }
 0x67a   :  { %v7552_v51 = vpop.eup %7551 }
 0x67b   :  { %v6166_v52 = vmul.f32 %v7552_v51, %v7550_v50 }
 0x67d   :  { %6167 = vst [vmem:[%s7962_s7] sm:$0xff] %v6166_v52 }
 0x67e   :  { %6172 = vsyncpa [#allocation3], 1 }
 0x67f   :  { %6173 = vsyncpa [#allocation5], 1 }
 0x680   :  { %6174 = vsyncpa [#allocation8], 1 }
 0x681   :  { %6175 = vsyncpa [#allocation11], 1 }

</bundles_post_ra>
